<compile_context>
chip_gen: v5e
topology: v5e:2x2
jax: 0.10.0
libtpu: 0.0.40
codegen_flags: <defaults>
</compile_context>

<pallas_src>
import functools
import math

import jax
import jax.numpy as jnp
from jax import lax
from jax.experimental import pallas as pl
from jax.experimental.pallas import tpu as pltpu


def _round_up(x, m):
    return (x + m - 1) // m * m


def _vmem_cap_bytes():
    """Per-generation VMEM limit cap: ~3/4 of physical, at most ~100 MiB."""
    try:
        info = pltpu.get_tpu_info()
        phys = int(getattr(info, "vmem_capacity_bytes", 128 * 1024 * 1024))
    except Exception:  # pragma: no cover - conservative fallback
        phys = 128 * 1024 * 1024
    return int(min(phys * 3 // 4, 100 * 1024 * 1024))


def _bottleneck_unit_kernel(*refs, stride, Ho, Wo, Wo_pad, use_accum):
    if stride == 1:
        x_refs = refs[:1]
        w1_ref, w2_ref, w3_ref, out_ref = refs[1:]
    else:
        x_refs = refs[:2]
        w1_ref, w2_ref, w3_ref, out_ref = refs[2:]

    P = w1_ref.shape[1]
    PE = w3_ref.shape[1]
    Bb = x_refs[0].shape[0]
    w1 = w1_ref[...]

    # ---- conv1: 1x1 + ReLU over the zero-padded extent ---------------------
    # Bias-free 1x1 conv + ReLU(0)=0 -> the padded border/right-fill of h1 is
    # exactly zero, which is what the 3x3 conv's padding=1 requires.
    h1 = []
    for xr in x_refs:
        xp = xr[...]                                  # (Bb, Hp, Wc, Cin), bf16
        _, Hp, Wc, Cin = xp.shape
        h = jnp.dot(xp.reshape(Bb * Hp * Wc, Cin), w1,
                    preferred_element_type=jnp.float32)
        h = jnp.maximum(h, 0.0).astype(jnp.bfloat16).reshape(Bb, Hp, Wc, P)
        h1.append(h)

    # ---- conv2: 3x3, padding=1, stride in {1, 2} ----------------------------
    if stride == 1:
        h1p = h1[0]

        def tap(dy, dx):
            # (Bb, Ho, Wo_pad, P); dx in {1,2} is the only sublane-shifted slice.
            return h1p[:, dy:dy + Ho, dx:dx + Wo_pad, :]
    else:
        Hp = h1[0].shape[1]
        # Rows split by parity with a free leading-dim reshape; column parity
        # was already split outside the kernel (even/odd planes).
        hsplit = [h.reshape(Bb, Hp // 2, 2, h.shape[2], P) for h in h1]

        def tap(dy, dx):
            src = hsplit[dx % 2][:, :, dy % 2]        # (Bb, Hp//2, Wc, P)
            return src[:, dy // 2:dy // 2 + Ho, dx // 2:dx // 2 + Wo_pad, :]

    taps = [(dy, dx) for dy in range(3) for dx in range(3)]
    M = Bb * Ho * Wo_pad
    if use_accum:
        # 9 accumulated K=P matmuls: avoids materializing the 9x-wide im2col
        # copy and its lane-packing (review item #1).
        acc = jnp.dot(tap(*taps[0]).reshape(M, P), w2_ref[0],
                      preferred_element_type=jnp.float32)
        for k in range(1, 9):
            acc = acc + jnp.dot(tap(*taps[k]).reshape(M, P), w2_ref[k],
                                preferred_element_type=jnp.float32)
        h2 = jnp.maximum(acc, 0.0).astype(jnp.bfloat16)
    else:
        # Narrow stage (P < 128): one K=9P matmul keeps the MXU contraction deep.
        lhs = jnp.concatenate([tap(dy, dx) for dy, dx in taps],
                              axis=-1).reshape(M, 9 * P)
        h2 = jnp.dot(lhs, w2_ref[...].reshape(9 * P, P),
                     preferred_element_type=jnp.float32)
        h2 = jnp.maximum(h2, 0.0).astype(jnp.bfloat16)

    # ---- conv3: 1x1 expansion + ReLU (module has ReLU after this conv too) --
    out = jnp.dot(h2, w3_ref[...], preferred_element_type=jnp.float32)
    out = jnp.maximum(out, 0.0).reshape(Bb, Ho, Wo_pad, PE)
    # Slice the width padding away only at the final store (review item #2).
    out_ref[...] = out[:, :, :Wo, :].astype(out_ref.dtype)


def prepare_unit_params(w1_oihw, w2_oihw, w3_oihw):
    """One-time conversion of PyTorch (O, I, kh, kw) conv weights to bf16 matmul operands."""
    p = w1_oihw.shape[0]
    w1m = jnp.transpose(w1_oihw[:, :, 0, 0], (1, 0)).astype(jnp.bfloat16)               # (Cin, P)
    w2m = jnp.transpose(w2_oihw, (2, 3, 1, 0)).reshape(9, p, p).astype(jnp.bfloat16)     # (9, P, P), k=3*dy+dx
    w3m = jnp.transpose(w3_oihw[:, :, 0, 0], (1, 0)).astype(jnp.bfloat16)               # (P, PE)
    return {"w1m": w1m, "w2m": w2m, "w3m": w3m}


def _vmem_estimate(bb, Hp, Wp, Cin, Ho, Wo, Wo_pad, P, PE, use_accum):
    """Per-step VMEM bytes: double-buffered BlockSpec blocks + single-copy intermediates."""
    x_blk = bb * Hp * Wp * Cin * 2                       # bf16 (parity planes sum to same)
    out_blk = bb * Ho * Wo * PE * 2                      # bf16
    w_bytes = (Cin * P + 9 * P * P + P * PE) * 2         # bf16, resident (assume dbl-buffered)
    M = bb * Ho * Wo_pad
    h1 = bb * Hp * Wp * P * 2                            # bf16
    conv1_f32 = bb * Hp * Wp * P * 4                     # transient f32 pre-ReLU
    if use_accum:
        conv2_tmp = M * P * 4 + M * P * 2                # f32 acc + bf16 h2
    else:
        conv2_tmp = M * 9 * P * 2 + M * P * 4 + M * P * 2  # im2col lhs + f32 + bf16 h2
    conv3_tmp = M * PE * 4 + bb * Ho * Wo * PE * 2
    return 2 * (x_blk + out_blk) + 2 * w_bytes + h1 + conv1_f32 + conv2_tmp + conv3_tmp


def bottleneck_unit_forward(x_nhwc, params, *, stride=1, batch_block=None):
    """relu(conv1x1) -> relu(conv3x3 pad=1 stride s) -> relu(conv1x1).  NHWC in/out (bf16 out)."""
    if stride not in (1, 2):
        raise ValueError("stride must be 1 or 2")
    N, H, W, Cin = x_nhwc.shape
    w1m, w2m, w3m = params["w1m"], params["w2m"], params["w3m"]
    assert w1m.shape[0] == Cin, (w1m.shape, Cin)
    P = w1m.shape[1]
    PE = w3m.shape[1]
    Ho = (H - 1) // stride + 1
    Wo = (W - 1) // stride + 1
    Hp = H + 2

    # Compute width of the conv2/conv3 stage: pad Wo up to the bf16 sublane tile
    # so every reshape collapse is a free leading-dim reshape.
    Wo_pad = _round_up(Wo, 16)
    if stride == 1:
        # Need padded x width Wp (multiple of 16) >= Wo_pad + 2 for the dx taps.
        Wp = max(_round_up(W + 2, 16), Wo_pad + 16)
    else:
        if H % 2 or W % 2:
            raise ValueError("stride=2 path expects even H and W")
        # Each column-parity plane must be a multiple of 16 wide (Wp mult of 32)
        # and at least Wo_pad + 1 wide for the dx=2 taps.
        plane_w = Wo_pad + 16
        Wp = 2 * plane_w

    use_accum = P >= 128  # 9-accum K=P path for wide stages; K=9P im2col for narrow ones.

    xb = x_nhwc.astype(jnp.bfloat16)
    x_pad = jnp.pad(xb, ((0, 0), (1, 1), (1, Wp - W - 1), (0, 0)))
    if stride == 1:
        x_inputs = [x_pad]
    else:
        # Fold stride-2 column subsampling into data movement (outside the kernel).
        x_inputs = [x_pad[:, :, 0::2, :], x_pad[:, :, 1::2, :]]

    # ---- pick the number of images per grid step (review item #3) -----------
    cap = _vmem_cap_bytes()
    if batch_block is None:
        batch_block = max(1, min(8, 1024 // max(1, Ho * Wo_pad)))
    bb = max(1, min(int(batch_block), N))
    while bb > 1 and _vmem_estimate(bb, Hp, Wp, Cin, Ho, Wo, Wo_pad, P, PE,
                                    use_accum) > int(cap * 0.9):
        bb -= 1
    while N % bb:
        bb -= 1
    grid = (N // bb,)

    x_specs = [pl.BlockSpec((bb,) + tuple(xi.shape[1:]), lambda n: (n, 0, 0, 0))
               for xi in x_inputs]
    w_specs = [pl.BlockSpec(w1m.shape, lambda n: (0, 0)),
               pl.BlockSpec(w2m.shape, lambda n: (0, 0, 0)),
               pl.BlockSpec(w3m.shape, lambda n: (0, 0))]
    out_spec = pl.BlockSpec((bb, Ho, Wo, PE), lambda n: (n, 0, 0, 0))

    flops = 2 * N * (Hp * Wp * Cin * P + Ho * Wo_pad * 9 * P * P + Ho * Wo_pad * P * PE)
    in_bytes = sum(int(math.prod(xi.shape)) * 2 for xi in x_inputs)
    w_bytes = sum(int(math.prod(w.shape)) * 2 for w in (w1m, w2m, w3m))
    out_bytes = N * Ho * Wo * PE * 2
    cost = pl.CostEstimate(flops=int(flops), transcendentals=0,
                           bytes_accessed=int(in_bytes + w_bytes + out_bytes))

    est = _vmem_estimate(bb, Hp, Wp, Cin, Ho, Wo, Wo_pad, P, PE, use_accum)
    vmem_limit = int(min(cap, max(32 * 1024 * 1024, int(est * 1.25))))

    kernel = functools.partial(_bottleneck_unit_kernel, stride=stride, Ho=Ho, Wo=Wo,
                               Wo_pad=Wo_pad, use_accum=use_accum)
    return pl.pallas_call(
        kernel,
        grid=grid,
        in_specs=x_specs + w_specs,
        out_specs=out_spec,
        out_shape=jax.ShapeDtypeStruct((N, Ho, Wo, PE), jnp.bfloat16),
        compiler_params=pltpu.CompilerParams(
            dimension_semantics=("parallel",),
            vmem_limit_bytes=vmem_limit),
        cost_estimate=cost,
    )(*x_inputs, w1m, w2m, w3m)


def block_reference(x_nhwc_f32, w1, w2, w3, *, stride):
    """Pure-JAX NHWC reference mirroring the PyTorch module (conv+ReLU chain, no skip).

    Intermediate activations are rounded to bf16 (and back) to mirror the kernel's
    bf16 MXU operands with f32 accumulation.
    """
    dn = ("NHWC", "OIHW", "NHWC")

    def conv(a, w, s, pad):
        return lax.conv_general_dilated(a, w, (s, s), pad, dimension_numbers=dn,
                                        precision=lax.Precision.HIGHEST)

    def bf16_round(a):
        return a.astype(jnp.bfloat16).astype(jnp.float32)

    h = bf16_round(jax.nn.relu(conv(x_nhwc_f32, w1, 1, "VALID")))
    h = bf16_round(jax.nn.relu(conv(h, w2, stride, ((1, 1), (1, 1)))))
    return jax.nn.relu(conv(h, w3, 1, "VALID"))


if __name__ == "__main__":
    key = jax.random.PRNGKey(0)
    ks = jax.random.split(key, 12)
    bf = lambda a: a.astype(jnp.bfloat16).astype(jnp.float32)

    # ---- Block A: stride-1 unit at toy widths (K=9P im2col path) ------------
    N, H, W = 2, 16, 16
    c1, p1, exp = 8, 8, 4
    pe1 = p1 * exp
    w1a = 0.15 * jax.random.normal(ks[0], (p1, c1, 1, 1), jnp.float32)
    w2a = 0.15 * jax.random.normal(ks[1], (p1, p1, 3, 3), jnp.float32)
    w3a = 0.15 * jax.random.normal(ks[2], (pe1, p1, 1, 1), jnp.float32)
    x = jax.random.normal(ks[3], (N, H, W, c1), jnp.float32)

    pa = prepare_unit_params(w1a, w2a, w3a)
    y1 = jax.block_until_ready(bottleneck_unit_forward(x, pa, stride=1))
    r1 = block_reference(bf(x), bf(w1a), bf(w2a), bf(w3a), stride=1)
    assert y1.shape == (N, H, W, pe1), (y1.shape, (N, H, W, pe1))
    e1 = float(jnp.max(jnp.abs(y1.astype(jnp.float32) - r1)))
    assert e1 <= 2e-2, e1

    # ---- Block B: stride-2 stage transition (column-parity-plane path) ------
    c2, p2 = pe1, 16
    pe2 = p2 * exp
    w1b = 0.15 * jax.random.normal(ks[4], (p2, c2, 1, 1), jnp.float32)
    w2b = 0.15 * jax.random.normal(ks[5], (p2, p2, 3, 3), jnp.float32)
    w3b = 0.15 * jax.random.normal(ks[6], (pe2, p2, 1, 1), jnp.float32)
    x2 = y1.astype(jnp.float32)                       # bf16-representable values

    pb = prepare_unit_params(w1b, w2b, w3b)
    y2 = jax.block_until_ready(bottleneck_unit_forward(x2, pb, stride=2))
    r2 = block_reference(x2, bf(w1b), bf(w2b), bf(w3b), stride=2)
    assert y2.shape == (N, H // 2, W // 2, pe2), (y2.shape,)
    e2 = float(jnp.max(jnp.abs(y2.astype(jnp.float32) - r2)))
    assert e2 <= 2e-2, e2

    # ---- Block C: real lane-width stage (P=128 -> 9-accum path, Wo=28) ------
    Nc, Hc, Wc = 1, 28, 28
    c3, p3 = 512, 128
    pe3 = p3 * exp
    w1c = 0.05 * jax.random.normal(ks[7], (p3, c3, 1, 1), jnp.float32)
    w2c = 0.05 * jax.random.normal(ks[8], (p3, p3, 3, 3), jnp.float32)
    w3c = 0.05 * jax.random.normal(ks[9], (pe3, p3, 1, 1), jnp.float32)
    xc = jax.random.normal(ks[10], (Nc, Hc, Wc, c3), jnp.float32)

    pc = prepare_unit_params(w1c, w2c, w3c)
    y3 = jax.block_until_ready(bottleneck_unit_forward(xc, pc, stride=1))
    r3 = block_reference(bf(xc), bf(w1c), bf(w2c), bf(w3c), stride=1)
    assert y3.shape == (Nc, Hc, Wc, pe3), (y3.shape,)
    e3 = float(jnp.max(jnp.abs(y3.astype(jnp.float32) - r3)))
    assert e3 <= 2e-2 * (1.0 + float(jnp.max(jnp.abs(r3)))), e3

    print("KERNEL_OK")
</pallas_src>

<mosaic_0001>
module attributes {stable_mosaic.version = 11 : i64} {
  func.func @_bottleneck_unit_kernel(%arg0: i32, %arg1: memref<2x18x32x8xbf16, #tpu.memory_space<vmem>>, %arg2: memref<8x8xbf16, #tpu.memory_space<vmem>>, %arg3: memref<9x8x8xbf16, #tpu.memory_space<vmem>>, %arg4: memref<8x32xbf16, #tpu.memory_space<vmem>>, %arg5: memref<2x16x16x32xbf16, #tpu.memory_space<vmem>>) attributes {dimension_semantics = [#tpu.dimension_semantics<parallel>], iteration_bounds = array<i64: 1>, scalar_prefetch = 0 : i64, scratch_operands = 0 : i64, tpu.core_type = #tpu.core_type<tc>, window_params = [{transform_indices = @transform_0, window_bounds = array<i64: 2, 18, 32, 8>}, {pipeline_mode = #tpu.pipeline_mode<synchronous>, transform_indices = @transform_1, window_bounds = array<i64: 8, 8>}, {pipeline_mode = #tpu.pipeline_mode<synchronous>, transform_indices = @transform_2, window_bounds = array<i64: 9, 8, 8>}, {pipeline_mode = #tpu.pipeline_mode<synchronous>, transform_indices = @transform_3, window_bounds = array<i64: 8, 32>}, {transform_indices = @transform_4, window_bounds = array<i64: 2, 16, 16, 32>}]} {
    %c0 = arith.constant 0 : index
    %c0_0 = arith.constant 0 : index
    %0 = vector.load %arg2[%c0, %c0_0] : memref<8x8xbf16, #tpu.memory_space<vmem>>, vector<8x8xbf16>
    %c0_1 = arith.constant 0 : index
    %c0_2 = arith.constant 0 : index
    %c0_3 = arith.constant 0 : index
    %c0_4 = arith.constant 0 : index
    %1 = vector.load %arg1[%c0_1, %c0_2, %c0_3, %c0_4] : memref<2x18x32x8xbf16, #tpu.memory_space<vmem>>, vector<2x18x32x8xbf16>
    %2 = vector.shape_cast %1 : vector<2x18x32x8xbf16> to vector<1152x8xbf16>
    %cst = arith.constant dense<0.000000e+00> : vector<1152x8xf32>
    %3 = tpu.matmul %2, %0, %cst {dimension_numbers = #tpu.dot_dimension_numbers<[1], [0], [0], [1], [0, 0, 1, 1], [], []>} : vector<1152x8xbf16>, vector<8x8xbf16>, vector<1152x8xf32> -> vector<1152x8xf32>
    %cst_5 = arith.constant 0.000000e+00 : f32
    %4 = vector.broadcast %cst_5 : f32 to vector<1152x8xf32>
    %5 = arith.maximumf %3, %4 : vector<1152x8xf32>
    %6 = arith.truncf %5 : vector<1152x8xf32> to vector<1152x8xbf16>
    %7 = vector.shape_cast %6 : vector<1152x8xbf16> to vector<2x18x32x8xbf16>
    %8 = vector.extract_strided_slice %7 {offsets = [0, 0, 0, 0], sizes = [2, 16, 16, 8], strides = [1, 1, 1, 1]} : vector<2x18x32x8xbf16> to vector<2x16x16x8xbf16>
    %9 = vector.extract_strided_slice %7 {offsets = [0, 0, 1, 0], sizes = [2, 16, 16, 8], strides = [1, 1, 1, 1]} : vector<2x18x32x8xbf16> to vector<2x16x16x8xbf16>
    %10 = vector.extract_strided_slice %7 {offsets = [0, 0, 2, 0], sizes = [2, 16, 16, 8], strides = [1, 1, 1, 1]} : vector<2x18x32x8xbf16> to vector<2x16x16x8xbf16>
    %11 = vector.extract_strided_slice %7 {offsets = [0, 1, 0, 0], sizes = [2, 16, 16, 8], strides = [1, 1, 1, 1]} : vector<2x18x32x8xbf16> to vector<2x16x16x8xbf16>
    %12 = vector.extract_strided_slice %7 {offsets = [0, 1, 1, 0], sizes = [2, 16, 16, 8], strides = [1, 1, 1, 1]} : vector<2x18x32x8xbf16> to vector<2x16x16x8xbf16>
    %13 = vector.extract_strided_slice %7 {offsets = [0, 1, 2, 0], sizes = [2, 16, 16, 8], strides = [1, 1, 1, 1]} : vector<2x18x32x8xbf16> to vector<2x16x16x8xbf16>
    %14 = vector.extract_strided_slice %7 {offsets = [0, 2, 0, 0], sizes = [2, 16, 16, 8], strides = [1, 1, 1, 1]} : vector<2x18x32x8xbf16> to vector<2x16x16x8xbf16>
    %15 = vector.extract_strided_slice %7 {offsets = [0, 2, 1, 0], sizes = [2, 16, 16, 8], strides = [1, 1, 1, 1]} : vector<2x18x32x8xbf16> to vector<2x16x16x8xbf16>
    %16 = vector.extract_strided_slice %7 {offsets = [0, 2, 2, 0], sizes = [2, 16, 16, 8], strides = [1, 1, 1, 1]} : vector<2x18x32x8xbf16> to vector<2x16x16x8xbf16>
    %17 = tpu.concatenate %8, %9, %10, %11, %12, %13, %14, %15, %16 in 3 : vector<2x16x16x8xbf16>, vector<2x16x16x8xbf16>, vector<2x16x16x8xbf16>, vector<2x16x16x8xbf16>, vector<2x16x16x8xbf16>, vector<2x16x16x8xbf16>, vector<2x16x16x8xbf16>, vector<2x16x16x8xbf16>, vector<2x16x16x8xbf16> -> vector<2x16x16x72xbf16>
    %18 = vector.shape_cast %17 : vector<2x16x16x72xbf16> to vector<512x72xbf16>
    %c0_6 = arith.constant 0 : index
    %c0_7 = arith.constant 0 : index
    %c0_8 = arith.constant 0 : index
    %19 = vector.load %arg3[%c0_6, %c0_7, %c0_8] : memref<9x8x8xbf16, #tpu.memory_space<vmem>>, vector<9x8x8xbf16>
    %20 = vector.shape_cast %19 : vector<9x8x8xbf16> to vector<72x8xbf16>
    %cst_9 = arith.constant dense<0.000000e+00> : vector<512x8xf32>
    %21 = tpu.matmul %18, %20, %cst_9 {dimension_numbers = #tpu.dot_dimension_numbers<[1], [0], [0], [1], [0, 0, 1, 1], [], []>} : vector<512x72xbf16>, vector<72x8xbf16>, vector<512x8xf32> -> vector<512x8xf32>
    %cst_10 = arith.constant 0.000000e+00 : f32
    %22 = vector.broadcast %cst_10 : f32 to vector<512x8xf32>
    %23 = arith.maximumf %21, %22 : vector<512x8xf32>
    %24 = arith.truncf %23 : vector<512x8xf32> to vector<512x8xbf16>
    %c0_11 = arith.constant 0 : index
    %c0_12 = arith.constant 0 : index
    %25 = vector.load %arg4[%c0_11, %c0_12] : memref<8x32xbf16, #tpu.memory_space<vmem>>, vector<8x32xbf16>
    %cst_13 = arith.constant dense<0.000000e+00> : vector<512x32xf32>
    %26 = tpu.matmul %24, %25, %cst_13 {dimension_numbers = #tpu.dot_dimension_numbers<[1], [0], [0], [1], [0, 0, 1, 1], [], []>} : vector<512x8xbf16>, vector<8x32xbf16>, vector<512x32xf32> -> vector<512x32xf32>
    %cst_14 = arith.constant 0.000000e+00 : f32
    %27 = vector.broadcast %cst_14 : f32 to vector<512x32xf32>
    %28 = arith.maximumf %26, %27 : vector<512x32xf32>
    %29 = vector.shape_cast %28 : vector<512x32xf32> to vector<2x16x16x32xf32>
    %30 = arith.truncf %29 : vector<2x16x16x32xf32> to vector<2x16x16x32xbf16>
    %c0_15 = arith.constant 0 : index
    %c0_16 = arith.constant 0 : index
    %c0_17 = arith.constant 0 : index
    %c0_18 = arith.constant 0 : index
    %31 = vector.load %arg5[%c0_15, %c0_16, %c0_17, %c0_18] : memref<2x16x16x32xbf16, #tpu.memory_space<vmem>>, vector<2x16x16x32xbf16>
    tpu.vector_store %arg5[%c0_15, %c0_16, %c0_17, %c0_18], %30 {strides = array<i32>} : memref<2x16x16x32xbf16, #tpu.memory_space<vmem>>, vector<2x16x16x32xbf16>,
    return
  }
  func.func @transform_0(%arg0: i32) -> (i32, i32, i32, i32) {
    %c0_i32 = arith.constant 0 : i32
    %c0_i32_0 = arith.constant 0 : i32
    %c0_i32_1 = arith.constant 0 : i32
    %c0_i32_2 = arith.constant 0 : i32
    return %arg0, %c0_i32, %c0_i32_0, %c0_i32_1 : i32, i32, i32, i32
  }
  func.func @transform_1(%arg0: i32) -> (i32, i32) {
    %c0_i32 = arith.constant 0 : i32
    %c0_i32_0 = arith.constant 0 : i32
    %c0_i32_1 = arith.constant 0 : i32
    return %c0_i32, %c0_i32_0 : i32, i32
  }
  func.func @transform_2(%arg0: i32) -> (i32, i32, i32) {
    %c0_i32 = arith.constant 0 : i32
    %c0_i32_0 = arith.constant 0 : i32
    %c0_i32_1 = arith.constant 0 : i32
    %c0_i32_2 = arith.constant 0 : i32
    return %c0_i32, %c0_i32_0, %c0_i32_1 : i32, i32, i32
  }
  func.func @transform_3(%arg0: i32) -> (i32, i32) {
    %c0_i32 = arith.constant 0 : i32
    %c0_i32_0 = arith.constant 0 : i32
    %c0_i32_1 = arith.constant 0 : i32
    return %c0_i32, %c0_i32_0 : i32, i32
  }
  func.func @transform_4(%arg0: i32) -> (i32, i32, i32, i32) {
    %c0_i32 = arith.constant 0 : i32
    %c0_i32_0 = arith.constant 0 : i32
    %c0_i32_1 = arith.constant 0 : i32
    %c0_i32_2 = arith.constant 0 : i32
    return %arg0, %c0_i32, %c0_i32_0, %c0_i32_1 : i32, i32, i32, i32
  }
}

</mosaic_0001>

<bundles_post_ra>
// kernel: tpu_custom_call.1
= control target key start
LH: loop header
LB: loop body
LE: loop exit
PB: predicated region body
PF: predicated region fallthrough
CT: control target
= control target key end

     0   :  { %vm741_vm0 = vcmask 1043456   ;;  %vm524_vm1 = vcmask 64512   ;;  %s6477_s0 = inlined_call_operand.vmem [shape: bf16[2,18,32,8], index: 0, kind: input, shape index: {}]   ;;  %s6478_s1 = inlined_call_operand.vmem [shape: bf16[8,8], index: 1, kind: input, shape index: {}]   ;;  %s6479_s2 = inlined_call_operand.vmem [shape: bf16[9,8,8], index: 2, kind: input, shape index: {}]   ;;  %s6480_s3 = inlined_call_operand.vmem [shape: bf16[8,32], index: 3, kind: input, shape index: {}]   ;;  %s6481_s4 = inlined_call_operand.hbm [shape: bf16[2,16,16,32], index: 4, kind: output, shape index: {}]  }
   0x1   :  { %v19_v0 = vld [vmem:[%s6478_s1] sm:$0xf]  ;;  %v4479_v3 = vld [vmem:[%s6477_s0 + $0x118] sm:$0xff]  ;;  %v4481_v4 = vld [vmem:[%s6477_s0 + $0x128] sm:$0xff] }
   0x2   :  { %v743_v1 = vsel %vm741_vm0, %v19_v0, 0  ;;  %v4444_v2 = vld [vmem:[%s6477_s0] sm:$0xff] }
   0x3   :  { %752 = vmatpush.bf16.msra.mxu0 %v743_v1  ;;  %4520 = vmatpush.bf16.msra.mxu2 %v743_v1 }
   0x4   :  { %9 = vsyncpa [#allocation3], 0  ;;  %4521 = vmatpush.bf16.msra.mxu3 %v743_v1  ;;  %v4445_v5 = vld [vmem:[%s6477_s0 + $0x8] sm:$0xff]  ;;  %v4480_v6 = vld [vmem:[%s6477_s0 + $0x120] sm:$0xff]  ;;  %vm1999_vm2 = vcmask 1046528   ;;  %s4558_s5 = smov 16  }
   0x5   :  { %v4482_v7 = vld [vmem:[%s6477_s0 + $0x130] sm:$0xff]  ;;  %v4483_v9 = vld [vmem:[%s6477_s0 + $0x138] sm:$0xff]  ;;  %v4484_v11 = vld [vmem:[%s6477_s0 + $0x140] sm:$0xff]  ;;  %vm1550_vm3 = vsmask.f32 7424  ;;  %s4559_s8 = smov 8  }
   0x6   :  { %4292 = vmatmul.msk.bf16.vlgmr.msra.gmra.mxu0 %vm524_vm1, %v4444_v2  ;;  %4327 = vmatmul.msk.bf16.vlgmr.msra.gmra.mxu2 %vm524_vm1, %v4479_v3  ;;  %v4446_v8 = vld [vmem:[%s6477_s0 + $0x10] sm:$0xff]  ;;  %v4447_v10 = vld [vmem:[%s6477_s0 + $0x18] sm:$0xff]  ;;  %v4448_v12 = vld [vmem:[%s6477_s0 + $0x20] sm:$0xff]  ;;  %s4560_s9 = smov 24   ;;  %s4561_s12 = smov 40   ;;  %vm2700_vm4 = vcmask 130048  }
   0x7   :  { %4329 = vmatmul.msk.bf16.vlgmr.msra.gmra.mxu3 %vm524_vm1, %v4481_v4  ;;  %v4485_v13 = vld [vmem:[%s6477_s0 + $0x148] sm:$0xff]  ;;  %v4486_v15 = vld [vmem:[%s6477_s0 + $0x150] sm:$0xff]  ;;  %v4487_v17 = vld [vmem:[%s6477_s0 + $0x158] sm:$0xff]  ;;  %s4562_s13 = smov 32   ;;  %s4563_s16 = smov 48   ;;  %vm2765_vm5 = vcmask 195584  }
   0x8   :  { %v4449_v14 = vld [vmem:[%s6477_s0 + $0x28] sm:$0xff]  ;;  %v4450_v16 = vld [vmem:[%s6477_s0 + $0x30] sm:$0xff]  ;;  %v4451_v18 = vld [vmem:[%s6477_s0 + $0x38] sm:$0xff]  ;;  %s4564_s19 = smov 64   ;;  %s4565_s22 = smov 56   ;;  %vm2830_vm6 = vcmask 261120  }
   0x9   :  { %v4488_v19 = vld [vmem:[%s6477_s0 + $0x160] sm:$0xff]  ;;  %v4489_v22 = vld [vmem:[%s6477_s0 + $0x168] sm:$0xff]  ;;  %v4454_v61 = vld [vmem:[%s6477_s0 + $0x50] sm:$0xff]  ;;  %vm2895_vm7 = vcmask 326656   ;;  %vm2960_vm8 = vcmask 392192   ;;  %vm3025_vm9 = vcmask 457728  }
   0xa   :  { %v4452_v20 = vld [vmem:[%s6477_s0 + $0x40] sm:$0xff]  ;;  %v4453_v32 = vld [vmem:[%s6477_s0 + $0x48] sm:$0xff]  ;;  %vm3191_vm10 = vcmask 588800   ;;  %vm3090_vm11 = vcmask 523264   ;;  %vm3921_vm12 = vcmask 257024  }
  0x16   :  { %4293 = vmatmul.msk.bf16.gmra.mxu0 %vm524_vm1, %v4445_v5  ;;  %4328 = vmatmul.msk.bf16.gmra.mxu2 %vm524_vm1, %v4480_v6 }
  0x17   :  { %4330 = vmatmul.msk.bf16.gmra.mxu3 %vm524_vm1, %v4482_v7 }
  0x26   :  { %4294 = vmatmul.msk.bf16.gmra.mxu0 %vm524_vm1, %v4446_v8 }
  0x27   :  { %4331 = vmatmul.msk.bf16.gmra.mxu3 %vm524_vm1, %v4483_v9 }
  0x36   :  { %4295 = vmatmul.msk.bf16.gmra.mxu0 %vm524_vm1, %v4447_v10 }
  0x37   :  { %4332 = vmatmul.msk.bf16.gmra.mxu3 %vm524_vm1, %v4484_v11 }
  0x46   :  { %4296 = vmatmul.msk.bf16.gmra.mxu0 %vm524_vm1, %v4448_v12 }
  0x47   :  { %4333 = vmatmul.msk.bf16.gmra.mxu3 %vm524_vm1, %v4485_v13 }
  0x56   :  { %4297 = vmatmul.msk.bf16.gmra.mxu0 %vm524_vm1, %v4449_v14 }
  0x57   :  { %4334 = vmatmul.msk.bf16.gmra.mxu3 %vm524_vm1, %v4486_v15 }
  0x66   :  { %4298 = vmatmul.msk.bf16.gmra.mxu0 %vm524_vm1, %v4450_v16 }
  0x67   :  { %4335 = vmatmul.msk.bf16.gmra.mxu3 %vm524_vm1, %v4487_v17 }
  0x76   :  { %4299 = vmatmul.msk.bf16.gmra.mxu0 %vm524_vm1, %v4451_v18 }
  0x77   :  { %4336 = vmatmul.msk.bf16.gmra.mxu3 %vm524_vm1, %v4488_v19 }
  0x83   :  { %v754_v21 = vpop.f32.mrf.mxu0 }
  0x84   :  { %v1078_v27 = vmax.f32 %v754_v21, 0.0 }
  0x86   :  { %4300 = vmatmul.msk.bf16.gmra.mxu0 %vm524_vm1, %v4452_v20  ;;  %v1186_v30 = vpack.c.bf16 %v1078_v27, %v1078_v27 }
  0x87   :  { %4337 = vmatmul.msk.bf16.gmra.mxu3 %vm524_vm1, %v4489_v22 }
  0x88   :  { %v1358_v36 = vunpack.c.l.b16 %v1186_v30 }
  0x89   :  { %v4677_v23 = vpop.f32.mrf.mxu2 }
  0x8a   :  { %v921_v24 = vpop.f32.mrf.mxu3 }
  0x8b   :  { %v756_v25 = vpop.f32.mrf.mxu0  ;;  %v1134_v38 = vmax.f32 %v921_v24, 0.0 }
  0x8c   :  { %v1079_v26 = vmax.f32 %v756_v25, 0.0 }
  0x8d   :  { %v1242_v44 = vpack.c.bf16 %v1134_v38, %v1134_v38 }
  0x8e   :  { %v1187_v28 = vpack.c.bf16 %v1079_v26, %v1079_v26 }
  0x8f   :  { %v1502_v53 = vunpack.c.l.b16 %v1242_v44 }
  0x90   :  { %v1359_v34 = vunpack.c.l.b16 %v1187_v28 }
  0x91   :  { %v914_v29 = vpop.f32.mrf.mxu2  ;;  %v1534_v63 = vpack.c.b16 %v1502_v53, %v1502_v53 }
  0x92   :  { %v923_v31 = vpop.f32.mrf.mxu3  ;;  %v4683_v39 = vpack.c.b16 %v1359_v34, %v1358_v36 }
  0x93   :  { %v759_v33 = vpop.f32.mrf.mxu0  ;;  %v1751_v9 = vshll.u32 %v1534_v63, 16  ;;  %v2049_v11 = vrot.slane %v1534_v63, 1 }
  0x94   :  { %v1080_v35 = vmax.f32 %v759_v33, 0.0  ;;  %v2000_v48 = vrot.slane %v4683_v39, 1  ;;  %v1554_v49 = vshll.u32 %v4683_v39, 16  ;;  %v1552_v62 = vshrl.u32 %v4683_v39, 16 }
  0x95   :  { %v1753_v19 = vrot.slane %v1751_v9, 1 }
  0x96   :  { %v1188_v37 = vpack.c.bf16 %v1080_v35, %v1080_v35  ;;  %4301 = vmatmul.msk.bf16.gmra.mxu0 %vm524_vm1, %v4453_v32  ;;  %v1556_v55 = vrot.slane %v1554_v49, 1 }
  0x98   :  { %v1486_v40 = vunpack.c.l.b16 %v1188_v37  ;;  %v1557_v4 = vor.u32 %v1556_v55, %v1552_v62 }
  0x99   :  { %v916_v41 = vpop.f32.mrf.mxu2 }
  0x9a   :  { %v1518_v42 = vpack.c.b16 %v1486_v40, %v1486_v40  ;;  %v925_v43 = vpop.f32.mrf.mxu3  ;;  %v1132_v47 = vmax.f32 %v916_v41, 0.0 }
  0x9b   :  { %v761_v45 = vpop.f32.mrf.mxu0  ;;  %v1135_v50 = vmax.f32 %v925_v43, 0.0 }
  0x9c   :  { %v2001_v46 = vrot.slane %v1518_v42, 1  ;;  %v1559_v51 = vshll.u32 %v1518_v42, 16  ;;  %v1240_v54 = vpack.c.bf16 %v1132_v47, %v1132_v47  ;;  %v4455_v42 = vld [vmem:[%s6477_s0 + $0x58] sm:$0xff] }
  0x9d   :  { %v1243_v56 = vpack.c.bf16 %v1135_v50, %v1135_v50 }
  0x9e   :  { %v2002_v52 = vsel %vm1999_vm2, %v2000_v48, %v2001_v46  ;;  %v1561_v58 = vrot.slane %v1559_v51, 1  ;;  %v1390_v2 = vunpack.c.l.b16 %v1240_v54 }
  0x9f   :  { %2096 = vrot.lane.b32.xlu0 %v2002_v52, %s4558_s5  ;;  %v1392_v5 = vunpack.c.l.b16 %v1243_v56 }
  0xa0   :  { %v1562_v8 = vsel %vm1550_vm3, %v1557_v4, %v1561_v58  ;;  %v4456_v4 = vld [vmem:[%s6477_s0 + $0x60] sm:$0xff] }
  0xa1   :  { %v918_v57 = vpop.f32.mrf.mxu2 }
  0xa2   :  { %v1133_v59 = vmax.f32 %v918_v57, 0.0  ;;  %v927_v60 = vpop.f32.mrf.mxu3 }
  0xa3   :  { %v1136_v0 = vmax.f32 %v927_v60, 0.0  ;;  %v763_v1 = vpop.f32.mrf.mxu0 }
  0xa4   :  { %v1241_v3 = vpack.c.bf16 %v1133_v59, %v1133_v59  ;;  %v1081_v13 = vmax.f32 %v763_v1, 0.0 }
  0xa5   :  { %v1244_v6 = vpack.c.bf16 %v1136_v0, %v1136_v0 }
  0xa6   :  { %v1391_v7 = vunpack.c.l.b16 %v1241_v3  ;;  %4302 = vmatmul.msk.bf16.gmra.mxu0 %vm524_vm1, %v4454_v61  ;;  %v1189_v22 = vpack.c.bf16 %v1081_v13, %v1081_v13 }
  0xa7   :  { %v1393_v10 = vunpack.c.l.b16 %v1244_v6  ;;  %1935 = vrot.lane.b32.xlu0 %v1562_v8, %s4559_s8 }
  0xa8   :  { %v4696_v12 = vpack.c.b16 %v1391_v7, %v1390_v2  ;;  %v1360_v32 = vunpack.c.l.b16 %v1189_v22 }
  0xa9   :  { %v4698_v14 = vpack.c.b16 %v1393_v10, %v1392_v5 }
  0xaa   :  { %v930_v15 = vpop.f32.mrf.mxu3  ;;  %v2048_v16 = vrot.slane %v4696_v12, 1  ;;  %v1744_v17 = vshrl.u32 %v4696_v12, 16  ;;  %v1746_v18 = vshll.u32 %v4696_v12, 16 }
  0xab   :  { %v1137_v20 = vmax.f32 %v930_v15, 0.0  ;;  %v765_v21 = vpop.f32.mrf.mxu0  ;;  %2202 = vrot.lane.b32.xlu1 %v4698_v14, %s4560_s9  ;;  %v1758_v28 = vshll.u32 %v4698_v14, 16  ;;  %v2051_v36 = vrot.slane %v4698_v14, 1  ;;  %v1756_v37 = vshrl.u32 %v4698_v14, 16 }
  0xac   :  { %v1082_v24 = vmax.f32 %v765_v21, 0.0  ;;  %v2050_v25 = vsel %vm1999_vm2, %v2048_v16, %v2049_v11  ;;  %v1748_v26 = vrot.slane %v1746_v18, 1 }
  0xad   :  { %v1245_v27 = vpack.c.bf16 %v1137_v20, %v1137_v20  ;;  %v1760_v38 = vrot.slane %v1758_v28, 1 }
  0xae   :  { %v1190_v29 = vpack.c.bf16 %v1082_v24, %v1082_v24  ;;  %v1749_v30 = vor.u32 %v1748_v26, %v1744_v17 }
  0xaf   :  { %v1503_v31 = vunpack.c.l.b16 %v1245_v27  ;;  %2128 = vrot.lane.b32.xlu0 %v2050_v25, %s4558_s5  ;;  %v1761_v49 = vor.u32 %v1760_v38, %v1756_v37 }
  0xb0   :  { %v1361_v33 = vunpack.c.l.b16 %v1190_v29  ;;  %v1754_v34 = vsel %vm1550_vm3, %v1749_v30, %v1753_v19  ;;  %v4457_v30 = vld [vmem:[%s6477_s0 + $0x68] sm:$0xff] }
  0xb1   :  { %v1535_v35 = vpack.c.b16 %v1503_v31, %v1503_v31  ;;  %1967 = vrot.lane.b32.xlu2 %v1754_v34, %s4559_s8 }
  0xb2   :  { %v4712_v40 = vpack.c.b16 %v1361_v33, %v1360_v32  ;;  %v932_v41 = vpop.f32.mrf.mxu3 }
  0xb3   :  { %v1763_v43 = vshll.u32 %v1535_v35, 16  ;;  %v2052_v44 = vrot.slane %v1535_v35, 1  ;;  %v768_v45 = vpop.f32.mrf.mxu0 }
  0xb4   :  { %v1083_v46 = vmax.f32 %v768_v45, 0.0  ;;  %2170 = vrot.lane.b32.xlu1 %v4712_v40, %s4560_s9  ;;  %v1566_v53 = vshll.u32 %v4712_v40, 16  ;;  %v2003_v59 = vrot.slane %v4712_v40, 1  ;;  %v1564_v0 = vshrl.u32 %v4712_v40, 16 }
  0xb5   :  { %v1765_v47 = vrot.slane %v1763_v43, 1  ;;  %v2053_v48 = vsel %vm1999_vm2, %v2051_v36, %v2052_v44 }
  0xb6   :  { %v1191_v50 = vpack.c.bf16 %v1083_v46, %v1083_v46  ;;  %4303 = vmatmul.msk.bf16.gmra.mxu0 %vm524_vm1, %v4455_v42  ;;  %v1568_v61 = vrot.slane %v1566_v53, 1 }
  0xb7   :  { %2366 = vrot.lane.b32.xlu0 %v2053_v48, %s4561_s12  ;;  %v1766_v52 = vsel %vm1550_vm3, %v1761_v49, %v1765_v47 }
  0xb8   :  { %v1487_v51 = vunpack.c.l.b16 %v1191_v50  ;;  %v1569_v2 = vor.u32 %v1568_v61, %v1564_v0  ;;  %v4458_v50 = vld [vmem:[%s6477_s0 + $0x70] sm:$0xff] }
  0xb9   :  { %2130 = vrot.lane.b32.xlu2 %v2053_v48, %s4558_s5 }
  0xba   :  { %v1519_v54 = vpack.c.b16 %v1487_v51, %v1487_v51  ;;  %v934_v55 = vpop.f32.mrf.mxu3 }
  0xbb   :  { %v770_v56 = vpop.f32.mrf.mxu0  ;;  %v1138_v60 = vmax.f32 %v934_v55, 0.0 }
  0xbc   :  { %v1571_v57 = vshll.u32 %v1519_v54, 16  ;;  %v2004_v58 = vrot.slane %v1519_v54, 1  ;;  %1969 = vrot.lane.b32.xlu1 %v1766_v52, %s4559_s8 }
  0xbd   :  { %v1246_v1 = vpack.c.bf16 %v1138_v60, %v1138_v60 }
  0xbe   :  { %v2005_v62 = vsel %vm1999_vm2, %v2003_v59, %v2004_v58  ;;  %v1573_v63 = vrot.slane %v1571_v57, 1 }
  0xbf   :  { %2098 = vrot.lane.b32.xlu0 %v2005_v62, %s4558_s5  ;;  %v1394_v8 = vunpack.c.l.b16 %v1246_v1 }
  0xc0   :  { %v1574_v7 = vsel %vm1550_vm3, %v1569_v2, %v1573_v63 }
  0xc1   :  { %2296 = vrot.lane.b32.xlu2 %v1766_v52, %s4562_s13 }
  0xc2   :  { %v936_v3 = vpop.f32.mrf.mxu3 }
  0xc3   :  { %v1139_v5 = vmax.f32 %v936_v3, 0.0  ;;  %v772_v6 = vpop.f32.mrf.mxu0 }
  0xc4   :  { %2264 = vrot.lane.b32.xlu1 %v1574_v7, %s4562_s13  ;;  %v1084_v11 = vmax.f32 %v772_v6, 0.0 }
  0xc5   :  { %v1247_v9 = vpack.c.bf16 %v1139_v5, %v1139_v5 }
  0xc6   :  { %4304 = vmatmul.msk.bf16.gmra.mxu0 %vm524_vm1, %v4456_v4  ;;  %v1192_v18 = vpack.c.bf16 %v1084_v11, %v1084_v11 }
  0xc7   :  { %v1395_v10 = vunpack.c.l.b16 %v1247_v9 }
  0xc8   :  { %v1362_v25 = vunpack.c.l.b16 %v1192_v18 }
  0xc9   :  { %v4737_v13 = vpack.c.b16 %v1395_v10, %v1394_v8  ;;  %2334 = vrot.lane.b32.xlu2 %v2005_v62, %s4561_s12 }
  0xca   :  { %v939_v15 = vpop.f32.mrf.mxu3 }
  0xcb   :  { %6485 = vst [vmem:[#allocation5_spill] sm:$0xff] %v4737_v13  ;;  %v1140_v16 = vmax.f32 %v939_v15, 0.0  ;;  %2204 = vrot.lane.b32.xlu0 %v4737_v13, %s4560_s9  ;;  %v774_v17 = vpop.f32.mrf.mxu0  ;;  %v1770_v24 = vshll.u32 %v4737_v13, 16  ;;  %v2054_v28 = vrot.slane %v4737_v13, 1  ;;  %v1768_v35 = vshrl.u32 %v4737_v13, 16  ;;  %v4459_v15 = vld [vmem:[%s6477_s0 + $0x78] sm:$0xff] }
  0xcc   :  { %v1085_v19 = vmax.f32 %v774_v17, 0.0  ;;  %2440 = vrot.lane.b32.xlu1 %v4737_v13, %s4563_s16 }
  0xcd   :  { %v1248_v20 = vpack.c.bf16 %v1140_v16, %v1140_v16  ;;  %v1772_v36 = vrot.slane %v1770_v24, 1 }
  0xce   :  { %v1193_v21 = vpack.c.bf16 %v1085_v19, %v1085_v19 }
  0xcf   :  { %v1504_v22 = vunpack.c.l.b16 %v1248_v20  ;;  %v1773_v43 = vor.u32 %v1772_v36, %v1768_v35  ;;  %v4460_v36 = vld [vmem:[%s6477_s0 + $0x80] sm:$0xff] }
  0xd0   :  { %v1363_v26 = vunpack.c.l.b16 %v1193_v21 }
  0xd1   :  { %v1536_v27 = vpack.c.b16 %v1504_v22, %v1504_v22  ;;  %1937 = vrot.lane.b32.xlu2 %v1574_v7, %s4559_s8 }
  0xd2   :  { %v4747_v29 = vpack.c.b16 %v1363_v26, %v1362_v25  ;;  %v941_v31 = vpop.f32.mrf.mxu3 }
  0xd3   :  { %v1775_v32 = vshll.u32 %v1536_v27, 16  ;;  %v2055_v33 = vrot.slane %v1536_v27, 1  ;;  %v777_v34 = vpop.f32.mrf.mxu0 }
  0xd4   :  { %v1086_v37 = vmax.f32 %v777_v34, 0.0  ;;  %2172 = vrot.lane.b32.xlu1 %v4747_v29, %s4560_s9  ;;  %v2006_v53 = vrot.slane %v4747_v29, 1  ;;  %v1578_v54 = vshll.u32 %v4747_v29, 16  ;;  %v1576_v61 = vshrl.u32 %v4747_v29, 16 }
  0xd5   :  { %v2056_v38 = vsel %vm1999_vm2, %v2054_v28, %v2055_v33  ;;  %v1777_v42 = vrot.slane %v1775_v32, 1 }
  0xd6   :  { %v1194_v41 = vpack.c.bf16 %v1086_v37, %v1086_v37  ;;  %2604 = vrot.lane.b32.xlu0 %v2056_v38, %s4564_s19  ;;  %4305 = vmatmul.msk.bf16.gmra.mxu0 %vm524_vm1, %v4457_v30  ;;  %v1580_v59 = vrot.slane %v1578_v54, 1  ;;  %v4461_v54 = vld [vmem:[%s6477_s0 + $0x88] sm:$0xff] }
  0xd7   :  { %v1778_v47 = vsel %vm1550_vm3, %v1773_v43, %v1777_v42 }
  0xd8   :  { %v1488_v44 = vunpack.c.l.b16 %v1194_v41  ;;  %v1581_v2 = vor.u32 %v1580_v59, %v1576_v61 }
  0xd9   :  { %2408 = vrot.lane.b32.xlu2 %v4747_v29, %s4563_s16 }
  0xda   :  { %v943_v45 = vpop.f32.mrf.mxu3  ;;  %v1520_v48 = vpack.c.b16 %v1488_v44, %v1488_v44 }
  0xdb   :  { %v779_v46 = vpop.f32.mrf.mxu0  ;;  %v1141_v57 = vmax.f32 %v943_v45, 0.0 }
  0xdc   :  { %2132 = vrot.lane.b32.xlu1 %v2056_v38, %s4558_s5  ;;  %v2007_v49 = vrot.slane %v1520_v48, 1  ;;  %v1583_v55 = vshll.u32 %v1520_v48, 16 }
  0xdd   :  { %v1249_v62 = vpack.c.bf16 %v1141_v57, %v1141_v57 }
  0xde   :  { %1971 = vrot.lane.b32.xlu0 %v1778_v47, %s4559_s8  ;;  %v2008_v56 = vsel %vm1999_vm2, %v2006_v53, %v2007_v49  ;;  %v1585_v60 = vrot.slane %v1583_v55, 1 }
  0xdf   :  { %v1396_v5 = vunpack.c.l.b16 %v1249_v62 }
  0xe0   :  { %v1586_v3 = vsel %vm1550_vm3, %v1581_v2, %v1585_v60 }
  0xe1   :  { %2368 = vrot.lane.b32.xlu2 %v2056_v38, %s4561_s12 }
  0xe2   :  { %v945_v51 = vpop.f32.mrf.mxu3 }
  0xe3   :  { %v781_v52 = vpop.f32.mrf.mxu0  ;;  %v1142_v58 = vmax.f32 %v945_v51, 0.0 }
  0xe4   :  { %2298 = vrot.lane.b32.xlu1 %v1778_v47, %s4562_s13  ;;  %v1087_v8 = vmax.f32 %v781_v52, 0.0 }
  0xe5   :  { %v1250_v63 = vpack.c.bf16 %v1142_v58, %v1142_v58 }
  0xe6   :  { %2336 = vrot.lane.b32.xlu0 %v2008_v56, %s4561_s12  ;;  %4306 = vmatmul.msk.bf16.gmra.mxu0 %vm524_vm1, %v4458_v50  ;;  %v1195_v18 = vpack.c.bf16 %v1087_v8, %v1087_v8 }
  0xe7   :  { %v1397_v7 = vunpack.c.l.b16 %v1250_v63 }
  0xe8   :  { %v1364_v21 = vunpack.c.l.b16 %v1195_v18 }
  0xe9   :  { %2534 = vrot.lane.b32.xlu2 %v1778_v47, %s4565_s22  ;;  %v4779_v11 = vpack.c.b16 %v1397_v7, %v1396_v5 }
  0xea   :  { %v948_v0 = vpop.f32.mrf.mxu3 }
  0xeb   :  { %v783_v1 = vpop.f32.mrf.mxu0  ;;  %v1143_v4 = vmax.f32 %v948_v0, 0.0  ;;  %6486 = vst [vmem:[#allocation6_spill] sm:$0xff] %v4779_v11  ;;  %v2057_v28 = vrot.slane %v4779_v11, 1  ;;  %v1782_v30 = vshll.u32 %v4779_v11, 16  ;;  %v1780_v34 = vshrl.u32 %v4779_v11, 16 }
  0xec   :  { %2572 = vrot.lane.b32.xlu1 %v2008_v56, %s4564_s19  ;;  %v1088_v6 = vmax.f32 %v783_v1, 0.0 }
  0xed   :  { %v1251_v9 = vpack.c.bf16 %v1143_v4, %v1143_v4  ;;  %v1784_v35 = vrot.slane %v1782_v30, 1  ;;  %v4462_v30 = vld [vmem:[%s6477_s0 + $0x90] sm:$0xff] }
  0xee   :  { %2502 = vrot.lane.b32.xlu0 %v1586_v3, %s4565_s22  ;;  %v1196_v10 = vpack.c.bf16 %v1088_v6, %v1088_v6 }
  0xef   :  { %v1505_v19 = vunpack.c.l.b16 %v1251_v9  ;;  %v1785_v43 = vor.u32 %v1784_v35, %v1780_v34 }
  0xf0   :  { %v1365_v20 = vunpack.c.l.b16 %v1196_v10 }
  0xf1   :  { %2100 = vrot.lane.b32.xlu2 %v2008_v56, %s4558_s5  ;;  %v1537_v22 = vpack.c.b16 %v1505_v19, %v1505_v19 }
  0xf2   :  { %v950_v16 = vpop.f32.mrf.mxu3  ;;  %v4789_v24 = vpack.c.b16 %v1365_v20, %v1364_v21 }
  0xf3   :  { %v786_v17 = vpop.f32.mrf.mxu0  ;;  %v2058_v27 = vrot.slane %v1537_v22, 1  ;;  %v1787_v32 = vshll.u32 %v1537_v22, 16 }
  0xf4   :  { %1939 = vrot.lane.b32.xlu1 %v1586_v3, %s4559_s8  ;;  %v1089_v31 = vmax.f32 %v786_v17, 0.0  ;;  %v2009_v52 = vrot.slane %v4789_v24, 1  ;;  %v1590_v53 = vshll.u32 %v4789_v24, 16  ;;  %v1588_v1 = vshrl.u32 %v4789_v24, 16 }
  0xf5   :  { %v2059_v33 = vsel %vm1999_vm2, %v2057_v28, %v2058_v27  ;;  %v1789_v42 = vrot.slane %v1787_v32, 1 }
  0xf6   :  { %2442 = vrot.lane.b32.xlu0 %v4779_v11, %s4563_s16  ;;  %4307 = vmatmul.msk.bf16.gmra.mxu0 %vm524_vm1, %v4459_v15  ;;  %v1197_v38 = vpack.c.bf16 %v1089_v31, %v1089_v31  ;;  %v1592_v62 = vrot.slane %v1590_v53, 1 }
  0xf7   :  { %v1790_v45 = vsel %vm1550_vm3, %v1785_v43, %v1789_v42 }
  0xf8   :  { %v1489_v44 = vunpack.c.l.b16 %v1197_v38  ;;  %v1593_v5 = vor.u32 %v1592_v62, %v1588_v1  ;;  %v4519_v1 = vld [vmem:[%s6479_s2 + $0x18] sm:$0xff] }
  0xf9   :  { %2266 = vrot.lane.b32.xlu2 %v1586_v3, %s4562_s13 }
  0xfa   :  { %v952_v25 = vpop.f32.mrf.mxu3  ;;  %v1521_v47 = vpack.c.b16 %v1489_v44, %v1489_v44 }
  0xfb   :  { %v788_v26 = vpop.f32.mrf.mxu0  ;;  %v1144_v60 = vmax.f32 %v952_v25, 0.0 }
  0xfc   :  { %2410 = vrot.lane.b32.xlu1 %v4789_v24, %s4563_s16  ;;  %v2010_v50 = vrot.slane %v1521_v47, 1  ;;  %v1595_v56 = vshll.u32 %v1521_v47, 16 }
  0xfd   :  { %v1252_v3 = vpack.c.bf16 %v1144_v60, %v1144_v60 }
  0xfe   :  { %2174 = vrot.lane.b32.xlu0 %v4789_v24, %s4560_s9  ;;  %v2011_v59 = vsel %vm1999_vm2, %v2009_v52, %v2010_v50  ;;  %v1597_v0 = vrot.slane %v1595_v56, 1 }
  0xff   :  { %v1398_v17 = vunpack.c.l.b16 %v1252_v3 }
 0x100   :  { %v1598_v15 = vsel %vm1550_vm3, %v1593_v5, %v1597_v0  ;;  %v4463_v0 = vld [vmem:[%s6477_s0 + $0x98] sm:$0xff] }
 0x101   :  { %2206 = vrot.lane.b32.xlu2 %v4779_v11, %s4560_s9 }
 0x102   :  { %v954_v37 = vpop.f32.mrf.mxu3 }
 0x103   :  { %v790_v41 = vpop.f32.mrf.mxu0  ;;  %v1145_v61 = vmax.f32 %v954_v37, 0.0 }
 0x104   :  { %2370 = vrot.lane.b32.xlu1 %v2059_v33, %s4561_s12  ;;  %v1090_v7 = vmax.f32 %v790_v41, 0.0 }
 0x105   :  { %v1253_v4 = vpack.c.bf16 %v1145_v61, %v1145_v61 }
 0x106   :  { %2134 = vrot.lane.b32.xlu0 %v2059_v33, %s4558_s5  ;;  %4308 = vmatmul.msk.bf16.gmra.mxu0 %vm524_vm1, %v4460_v36  ;;  %v1198_v21 = vpack.c.bf16 %v1090_v7, %v1090_v7 }
 0x107   :  { %v1399_v18 = vunpack.c.l.b16 %v1253_v4 }
 0x108   :  { %v1366_v28 = vunpack.c.l.b16 %v1198_v21 }
 0x109   :  { %2606 = vrot.lane.b32.xlu2 %v2059_v33, %s4564_s19  ;;  %v4838_v26 = vpack.c.b16 %v1399_v18, %v1398_v17 }
 0x10a   :  { %v957_v46 = vpop.f32.mrf.mxu3 }
 0x10b   :  { %v4809_v48 = vpop.permute.xlu2 %1967  ;;  %v792_v49 = vpop.f32.mrf.mxu0  ;;  %v1146_v63 = vmax.f32 %v957_v46, 0.0  ;;  %6487 = vst [vmem:[#allocation7_spill] sm:$0xff] %v4838_v26  ;;  %v2060_v37 = vrot.slane %v4838_v26, 1  ;;  %v1794_v42 = vshll.u32 %v4838_v26, 16  ;;  %v1792_v44 = vshrl.u32 %v4838_v26, 16 }
 0x10c   :  { %2536 = vrot.lane.b32.xlu1 %v1790_v45, %s4565_s22  ;;  %v1091_v2 = vmax.f32 %v792_v49, 0.0 }
 0x10d   :  { %v1254_v6 = vpack.c.bf16 %v1146_v63, %v1146_v63  ;;  %v1796_v52 = vrot.slane %v1794_v42, 1 }
 0x10e   :  { %2300 = vrot.lane.b32.xlu0 %v1790_v45, %s4562_s13  ;;  %v1199_v16 = vpack.c.bf16 %v1091_v2, %v1091_v2 }
 0x10f   :  { %v1506_v20 = vunpack.c.l.b16 %v1254_v6  ;;  %v1797_v60 = vor.u32 %v1796_v52, %v1792_v44  ;;  %v4516_v44 = vld [vmem:[%s6479_s2] sm:$0xff] }
 0x110   :  { %v1367_v25 = vunpack.c.l.b16 %v1199_v16  ;;  %v4518_v16 = vld [vmem:[%s6479_s2 + $0x10] sm:$0xff]  ;;  %v4464_v52 = vld [vmem:[%s6477_s0 + $0xa0] sm:$0xff] }
 0x111   :  { %v4813_v51 = vpop.permute.xlu0 %2096  ;;  %1973 = vrot.lane.b32.xlu2 %v1790_v45, %s4559_s8  ;;  %v1538_v27 = vpack.c.b16 %v1506_v20, %v1506_v20  ;;  %v3163_v45 = vld [vmem:[%s6479_s2 + $0x20] sm:$0xf] }
 0x112   :  { %v959_v55 = vpop.f32.mrf.mxu3  ;;  %v4848_v34 = vpack.c.b16 %v1367_v25, %v1366_v28  ;;  %v3181_v53 = vunpack.c.l.b16 %v3163_v45  ;;  %v4517_v28 = vld [vmem:[%s6479_s2 + $0x8] sm:$0xff] }
 0x113   :  { %v4821_v57 = vpop.permute.xlu2 %2130  ;;  %v795_v58 = vpop.f32.mrf.mxu0  ;;  %v2061_v36 = vrot.slane %v1538_v27, 1  ;;  %v1799_v47 = vshll.u32 %v1538_v27, 16 }
 0x114   :  { %2102 = vrot.lane.b32.xlu1 %v2011_v59, %s4558_s5  ;;  %v1092_v22 = vmax.f32 %v795_v58, 0.0  ;;  %v2012_v62 = vrot.slane %v4848_v34, 1  ;;  %v1602_v63 = vshll.u32 %v4848_v34, 16  ;;  %v1600_v20 = vshrl.u32 %v4848_v34, 16 }
 0x115   :  { %v4864_v43 = vsel %vm1999_vm2, %v2060_v37, %v2061_v36 }
 0x116   :  { %2574 = vrot.lane.b32.xlu0 %v2011_v59, %s4564_s19  ;;  %4309 = vmatmul.msk.bf16.gmra.mxu0 %vm524_vm1, %v4461_v54  ;;  %v1200_v31 = vpack.c.bf16 %v1092_v22, %v1092_v22  ;;  %v3186_v54 = vpack.c.b16 %v3181_v53, %v3181_v53  ;;  %v1604_v7 = vrot.slane %v1602_v63, 1 }
 0x118   :  { %v1490_v41 = vunpack.c.l.b16 %v1200_v31  ;;  %v3257_v61 = vsel %vm741_vm0, %v3186_v54, 0  ;;  %v1605_v25 = vor.u32 %v1604_v7, %v1600_v20 }
 0x119   :  { %2338 = vrot.lane.b32.xlu2 %v2011_v59, %s4561_s12  ;;  %v4829_v8 = vpop.permute.xlu0 %1935  ;;  %v1801_v59 = vrot.slane %v1799_v47, 1  ;;  %3262 = vmatpush.bf16.msra.mxu1 %v3257_v61 }
 0x11a   :  { %v1522_v46 = vpack.c.b16 %v1490_v41, %v1490_v41 }
 0x11b   :  { %v4831_v9 = vpop.permute.xlu2 %2296  ;;  %v797_v10 = vpop.f32.mrf.mxu0  ;;  %v4895_v6 = vsel %vm1550_vm3, %v1797_v60, %v1801_v59 }
 0x11c   :  { %2268 = vrot.lane.b32.xlu1 %v1598_v15, %s4562_s13  ;;  %v2013_v58 = vrot.slane %v1522_v46, 1  ;;  %v1607_v2 = vshll.u32 %v1522_v46, 16 }
 0x11d   :  { %v4835_v19 = vpop.permute.xlu1 %2202  ;;  %3263 = vmatpush.bf16.msra.mxu1 %v4519_v1 }
 0x11e   :  { %1941 = vrot.lane.b32.xlu0 %v1598_v15, %s4559_s8  ;;  %v2014_v5 = vsel %vm1999_vm2, %v2012_v62, %v2013_v58  ;;  %v1609_v17 = vrot.slane %v1607_v2, 1 }
 0x120   :  { %v1610_v37 = vsel %vm1550_vm3, %v1605_v25, %v1609_v17 }
 0x121   :  { %2504 = vrot.lane.b32.xlu2 %v1598_v15, %s4565_s22  ;;  %v4850_v35 = vpop.permute.xlu0 %2128  ;;  %3264 = vmatpush.bf16.msra.mxu1 %v4518_v16 }
 0x123   :  { %v4844_v32 = vpop.permute.xlu2 %2334  ;;  %v4846_v33 = vpop.f32.mrf.mxu0 }
 0x124   :  { %2208 = vrot.lane.b32.xlu1 %v4838_v26, %s4560_s9  ;;  %v1093_v21 = vmax.f32 %v4846_v33, 0.0 }
 0x125   :  { %3265 = vmatpush.bf16.msra.mxu1 %v4517_v28 }
 0x126   :  { %2412 = vrot.lane.b32.xlu0 %v4848_v34, %s4563_s16  ;;  %v4857_v38 = vpop.permute.xlu1 %2170  ;;  %4310 = vmatmul.msk.bf16.gmra.mxu0 %vm524_vm1, %v4462_v30  ;;  %v1201_v41 = vpack.c.bf16 %v1093_v21, %v1093_v21 }
 0x128   :  { %v1368_v46 = vunpack.c.l.b16 %v1201_v41 }
 0x129   :  { %2444 = vrot.lane.b32.xlu2 %v4838_v26, %s4563_s16  ;;  %v4874_v55 = vpop.permute.xlu0 %2366  ;;  %3266 = vmatpush.bf16.msra.mxu1 %v4516_v44 }
 0x12b   :  { %v4870_v49 = vpop.permute.xlu2 %1937  ;;  %v801_v50 = vpop.f32.mrf.mxu0 }
 0x12c   :  { %2608 = vrot.lane.b32.xlu1 %v4864_v43, %s4564_s19  ;;  %v1094_v10 = vmax.f32 %v801_v50, 0.0 }
 0x12e   :  { %2372 = vrot.lane.b32.xlu0 %v4864_v43, %s4561_s12  ;;  %v4878_v56 = vpop.permute.xlu1 %1969  ;;  %v1202_v27 = vpack.c.bf16 %v1094_v10, %v1094_v10 }
 0x130   :  { %v1369_v33 = vunpack.c.l.b16 %v1202_v27  ;;  %v4465_v27 = vld [vmem:[%s6477_s0 + $0xa8] sm:$0xff] }
 0x131   :  { %2176 = vrot.lane.b32.xlu2 %v4848_v34, %s4560_s9  ;;  %v4908_v22 = vpop.permute.xlu0 %2098 }
 0x132   :  { %v4928_v50 = vpack.c.b16 %v1369_v33, %v1368_v46  ;;  %v2637_v33 = vsel %vm524_vm1, %v4683_v39, %v4829_v8 }
 0x133   :  { %v4891_v3 = vpop.permute.xlu2 %2408  ;;  %v804_v4 = vpop.f32.mrf.mxu0 }
 0x134   :  { %2340 = vrot.lane.b32.xlu1 %v2014_v5, %s4561_s12  ;;  %v1095_v18 = vmax.f32 %v804_v4, 0.0  ;;  %v2015_v62 = vrot.slane %v4928_v50, 1  ;;  %v1614_v63 = vshll.u32 %v4928_v50, 16  ;;  %v1612_v17 = vshrl.u32 %v4928_v50, 16 }
 0x136   :  { %2538 = vrot.lane.b32.xlu0 %v4895_v6, %s4565_s22  ;;  %v4900_v15 = vpop.permute.xlu1 %2264  ;;  %4311 = vmatmul.msk.bf16.gmra.mxu0 %vm524_vm1, %v4463_v0  ;;  %v1203_v30 = vpack.c.bf16 %v1095_v18, %v1095_v18 }
 0x138   :  { %v1491_v45 = vunpack.c.l.b16 %v1203_v30 }
 0x139   :  { %2302 = vrot.lane.b32.xlu2 %v4895_v6, %s4562_s13 }
 0x13a   :  { %v1523_v53 = vpack.c.b16 %v1491_v45, %v1491_v45 }
 0x13b   :  { %v4915_v31 = vpop.permute.xlu2 %2368  ;;  %v806_v36 = vpop.f32.mrf.mxu0 }
 0x13c   :  { %2506 = vrot.lane.b32.xlu1 %v1610_v37, %s4565_s22  ;;  %v2016_v60 = vrot.slane %v1523_v53, 1  ;;  %v1619_v0 = vshll.u32 %v1523_v53, 16 }
 0x13d   :  { %v4925_v47 = vpop.permute.xlu0 %2204 }
 0x13e   :  { %2104 = vrot.lane.b32.xlu0 %v2014_v5, %s4558_s5  ;;  %v4920_v42 = vpop.permute.xlu1 %2440  ;;  %v2017_v4 = vsel %vm1999_vm2, %v2015_v62, %v2016_v60  ;;  %v1621_v16 = vrot.slane %v1619_v0, 1 }
 0x141   :  { %2576 = vrot.lane.b32.xlu2 %v2014_v5, %s4564_s19  ;;  %v1616_v5 = vrot.slane %v1614_v63, 1 }
 0x143   :  { %v4933_v54 = vpop.permute.xlu2 %2534  ;;  %v808_v58 = vpop.f32.mrf.mxu0  ;;  %v1617_v21 = vor.u32 %v1616_v5, %v1612_v17 }
 0x144   :  { %2178 = vrot.lane.b32.xlu1 %v4928_v50, %s4560_s9  ;;  %v1096_v18 = vmax.f32 %v808_v58, 0.0 }
 0x145   :  { %v1622_v36 = vsel %vm1550_vm3, %v1617_v21, %v1621_v16 }
 0x146   :  { %2270 = vrot.lane.b32.xlu0 %v1610_v37, %s4562_s13  ;;  %v4938_v59 = vpop.permute.xlu1 %2172  ;;  %4312 = vmatmul.msk.bf16.gmra.mxu0 %vm524_vm1, %v4464_v52  ;;  %v2702_v52 = vsel %vm2700_vm4, %v2637_v33, %v4813_v51 }
 0x147   :  { %v2767_v39 = vsel %vm2765_vm5, %v2702_v52, %v4857_v38 }
 0x148   :  { %v4941_v61 = vpop.permute.xlu0 %2604  ;;  %v2832_v8 = vsel %vm2830_vm6, %v2767_v39, %v4900_v15 }
 0x149   :  { %1943 = vrot.lane.b32.xlu2 %v1610_v37, %s4559_s8  ;;  %v1204_v37 = vpack.c.bf16 %v1096_v18, %v1096_v18  ;;  %v2897_v51 = vsel %vm2895_vm7, %v2832_v8, %v4844_v32  ;;  %v4466_v18 = vld [vmem:[%s6477_s0 + $0xb0] sm:$0xff] }
 0x14a   :  { %v2962_v15 = vsel %vm2960_vm8, %v2897_v51, %v4891_v3 }
 0x14b   :  { %v4946_v1 = vpop.permute.xlu2 %2100  ;;  %v810_v2 = vpop.f32.mrf.mxu0  ;;  %v1370_v53 = vunpack.c.l.b16 %v1204_v37 }
 0x14c   :  { %2578 = vrot.lane.b32.xlu1 %v2017_v4, %s4564_s19  ;;  %v1097_v7 = vmax.f32 %v810_v2, 0.0 }
 0x14e   :  { %2342 = vrot.lane.b32.xlu0 %v2017_v4, %s4561_s12  ;;  %v4951_v10 = vpop.permute.xlu1 %2132  ;;  %v1205_v25 = vpack.c.bf16 %v1097_v7, %v1097_v7 }
 0x14f   :  { %6488 = vst [vmem:[#allocation8_spill] sm:$0xff] %v4951_v10 }
 0x150   :  { %v4954_v20 = vpop.permute.xlu0 %1971  ;;  %v1371_v44 = vunpack.c.l.b16 %v1205_v25 }
 0x151   :  { %6489 = vst [vmem:[#allocation9_spill] sm:$0xff] %v4954_v20  ;;  %2414 = vrot.lane.b32.xlu2 %v4928_v50, %s4563_s16 }
 0x152   :  { %v4981_v62 = vpack.c.b16 %v1371_v44, %v1370_v53 }
 0x153   :  { %v4961_v28 = vpop.permute.xlu2 %2266  ;;  %v813_v30 = vpop.f32.mrf.mxu0 }
 0x154   :  { %v1098_v41 = vmax.f32 %v813_v30, 0.0  ;;  %1945 = vrot.lane.b32.xlu1 %v1622_v36, %s4559_s8  ;;  %v2018_v16 = vrot.slane %v4981_v62, 1  ;;  %v1626_v32 = vshll.u32 %v4981_v62, 16 }
 0x156   :  { %v1206_v45 = vpack.c.bf16 %v1098_v41, %v1098_v41  ;;  %2508 = vrot.lane.b32.xlu0 %v1622_v36, %s4565_s22  ;;  %v4969_v46 = vpop.permute.xlu1 %2298  ;;  %4313 = vmatmul.msk.bf16.gmra.mxu0 %vm524_vm1, %v4465_v27  ;;  %v1628_v30 = vrot.slane %v1626_v32, 1  ;;  %v1624_v41 = vshrl.u32 %v4981_v62, 16  ;;  %v4490_v32 = vld [vmem:[%s6477_s0 + $0x170] sm:$0xff] }
 0x157   :  { %4338 = vmatmul.msk.bf16.gmra.mxu3 %vm524_vm1, %v4490_v32 }
 0x158   :  { %v1492_v58 = vunpack.c.l.b16 %v1206_v45  ;;  %v4974_v60 = vpop.permute.xlu0 %2336  ;;  %v1629_v45 = vor.u32 %v1628_v30, %v1624_v41 }
 0x159   :  { %2106 = vrot.lane.b32.xlu2 %v2017_v4, %s4558_s5 }
 0x15a   :  { %v1524_v63 = vpack.c.b16 %v1492_v58, %v1492_v58 }
 0x15b   :  { %v4983_v0 = vpop.permute.xlu2 %2206  ;;  %v815_v2 = vpop.f32.mrf.mxu0 }
 0x15c   :  { %6490 = vst [vmem:[#allocation10_spill] sm:$0xff] %v4983_v0  ;;  %2416 = vrot.lane.b32.xlu1 %v4981_v62, %s4563_s16  ;;  %v2019_v4 = vrot.slane %v1524_v63, 1  ;;  %v1631_v21 = vshll.u32 %v1524_v63, 16 }
 0x15e   :  { %2180 = vrot.lane.b32.xlu0 %v4981_v62, %s4560_s9  ;;  %v2573_v38 = vpop.permute.xlu1 %2572  ;;  %v2020_v27 = vsel %vm1999_vm2, %v2018_v16, %v2019_v4  ;;  %v1633_v37 = vrot.slane %v1631_v21, 1 }
 0x160   :  { %v2503_v5 = vpop.permute.xlu0 %2502  ;;  %v1634_v58 = vsel %vm1550_vm3, %v1629_v45, %v1633_v37 }
 0x161   :  { %v3027_v7 = vsel %vm3025_vm9, %v2962_v15, %v2503_v5  ;;  %2272 = vrot.lane.b32.xlu2 %v1622_v36, %s4562_s13  ;;  %v4467_v5 = vld [vmem:[%s6477_s0 + $0xb8] sm:$0xff] }
 0x162   :  { %v3092_v17 = vsel %vm3090_vm11, %v3027_v7, %v2573_v38 }
 0x163   :  { %4380 = vmatmul.msk.bf16.vlgmr.msra.gmra.mxu1 %vm3191_vm10, %v3092_v17  ;;  %v5002_v3 = vpop.permute.xlu2 %2606  ;;  %v817_v25 = vpop.f32.mrf.mxu0 }
 0x164   :  { %6491 = vst [vmem:[#allocation11_spill] sm:$0xff] %v5002_v3  ;;  %2108 = vrot.lane.b32.xlu1 %v2020_v27, %s4558_s5  ;;  %v1099_v33 = vmax.f32 %v817_v25, 0.0 }
 0x166   :  { %2580 = vrot.lane.b32.xlu0 %v2020_v27, %s4564_s19  ;;  %v5007_v36 = vpop.permute.xlu1 %1939  ;;  %4314 = vmatmul.msk.bf16.gmra.mxu0 %vm524_vm1, %v4466_v18  ;;  %v1207_v39 = vpack.c.bf16 %v1099_v33, %v1099_v33 }
 0x168   :  { %v5011_v44 = vpop.permute.xlu0 %2442  ;;  %v1372_v51 = vunpack.c.l.b16 %v1207_v39 }
 0x169   :  { %2344 = vrot.lane.b32.xlu2 %v2020_v27, %s4561_s12 }
 0x16b   :  { %v5014_v52 = vpop.permute.xlu2 %1973  ;;  %v819_v53 = vpop.f32.mrf.mxu0 }
 0x16c   :  { %6492 = vst [vmem:[#allocation12_spill] sm:$0xff] %v5014_v52  ;;  %v1100_v8 = vmax.f32 %v819_v53, 0.0  ;;  %2274 = vrot.lane.b32.xlu1 %v1634_v58, %s4562_s13 }
 0x16e   :  { %v1208_v63 = vpack.c.bf16 %v1100_v8, %v1100_v8  ;;  %1947 = vrot.lane.b32.xlu0 %v1634_v58, %s4559_s8  ;;  %v2411_v2 = vpop.permute.xlu1 %2410 }
 0x170   :  { %v1373_v38 = vunpack.c.l.b16 %v1208_v63  ;;  %v5019_v4 = vpop.permute.xlu0 %2174 }
 0x171   :  { %2510 = vrot.lane.b32.xlu2 %v1634_v58, %s4565_s22 }
 0x172   :  { %v5022_v15 = vpack.c.b16 %v1373_v38, %v1372_v51  ;;  %v2639_v38 = vsel %vm524_vm1, %v4712_v40, %v4870_v49 }
 0x173   :  { %v5027_v7 = vpop.permute.xlu2 %2338  ;;  %v822_v16 = vpop.f32.mrf.mxu0 }
 0x174   :  { %v1101_v17 = vmax.f32 %v822_v16, 0.0  ;;  %v2021_v45 = vrot.slane %v5022_v15, 1  ;;  %v1638_v53 = vshll.u32 %v5022_v15, 16  ;;  %v4468_v16 = vld [vmem:[%s6477_s0 + $0xc0] sm:$0xff]  ;;  %v1636_v32 = vshrl.u32 %v5022_v15, 16 }
 0x176   :  { %v1209_v18 = vpack.c.bf16 %v1101_v17, %v1101_v17  ;;  %2418 = vrot.lane.b32.xlu0 %v5022_v15, %s4563_s16  ;;  %v5035_v21 = vpop.permute.xlu1 %2370  ;;  %4315 = vmatmul.msk.bf16.gmra.mxu0 %vm524_vm1, %v4467_v5  ;;  %v1640_v51 = vrot.slane %v1638_v53, 1  ;;  %v2704_v17 = vsel %vm2700_vm4, %v2639_v38, %v4908_v22 }
 0x177   :  { %6493 = vst [vmem:[#allocation13_spill] sm:$0xff] %v5035_v21  ;;  %v2769_v40 = vsel %vm2765_vm5, %v2704_v17, %v4938_v59 }
 0x178   :  { %v1493_v25 = vunpack.c.l.b16 %v1209_v18  ;;  %v5038_v27 = vpop.permute.xlu0 %2134  ;;  %v1641_v49 = vor.u32 %v1640_v51, %v1636_v32 }
 0x179   :  { %6494 = vst [vmem:[#allocation14_spill] sm:$0xff] %v5038_v27  ;;  %2182 = vrot.lane.b32.xlu2 %v5022_v15, %s4560_s9 }
 0x17a   :  { %v1525_v30 = vpack.c.b16 %v1493_v25, %v1493_v25 }
 0x17b   :  { %v2505_v37 = vpop.permute.xlu2 %2504  ;;  %v824_v41 = vpop.f32.mrf.mxu0 }
 0x17c   :  { %v2022_v33 = vrot.slane %v1525_v30, 1  ;;  %v1643_v58 = vshll.u32 %v1525_v30, 16  ;;  %v4491_v30 = vld [vmem:[%s6477_s0 + $0x178] sm:$0xff]  ;;  %v2834_v41 = vsel %vm2830_vm6, %v2769_v40, %v4961_v28 }
 0x17d   :  { %4339 = vmatmul.msk.bf16.gmra.mxu3 %vm524_vm1, %v4491_v30 }
 0x17e   :  { %v5044_v39 = vpop.permute.xlu1 %2536  ;;  %v2023_v8 = vsel %vm1999_vm2, %v2021_v45, %v2022_v33  ;;  %v1645_v5 = vrot.slane %v1643_v58, 1  ;;  %v2899_v33 = vsel %vm2895_vm7, %v2834_v41, %v4974_v60  ;;  %v4492_v41 = vld [vmem:[%s6477_s0 + $0x180] sm:$0xff] }
 0x17f   :  { %6495 = vst [vmem:[#allocation15_spill] sm:$0xff] %v5044_v39  ;;  %2110 = vrot.lane.b32.xlu0 %v2023_v8, %s4558_s5  ;;  %2346 = vrot.lane.b32.xlu1 %v2023_v8, %s4561_s12  ;;  %v2964_v53 = vsel %vm2960_vm8, %v2899_v33, %v2411_v2 }
 0x180   :  { %v5049_v63 = vpop.permute.xlu0 %2300  ;;  %v1646_v45 = vsel %vm1550_vm3, %v1641_v49, %v1645_v5  ;;  %v3029_v59 = vsel %vm3025_vm9, %v2964_v53, %v2505_v37 }
 0x181   :  { %6496 = vst [vmem:[#allocation16_spill] sm:$0xff] %v5049_v63  ;;  %2582 = vrot.lane.b32.xlu2 %v2023_v8, %s4564_s19 }
 0x183   :  { %v5061_v18 = vpop.permute.xlu2 %2444  ;;  %v826_v25 = vpop.f32.mrf.mxu0 }
 0x184   :  { %6497 = vst [vmem:[#allocation17_spill] sm:$0xff] %v5061_v18  ;;  %v1102_v28 = vmax.f32 %v826_v25, 0.0  ;;  %v4469_v25 = vld [vmem:[%s6477_s0 + $0xc8] sm:$0xff] }
 0x186   :  { %v5073_v22 = vpop.permute.xlu1 %2102  ;;  %4316 = vmatmul.msk.bf16.gmra.mxu0 %vm524_vm1, %v4468_v16  ;;  %v1210_v38 = vpack.c.bf16 %v1102_v28, %v1102_v28 }
 0x187   :  { %2276 = vrot.lane.b32.xlu0 %v1646_v45, %s4562_s13  ;;  %2512 = vrot.lane.b32.xlu1 %v1646_v45, %s4565_s22 }
 0x188   :  { %v2575_v58 = vpop.permute.xlu0 %2574  ;;  %v1374_v32 = vunpack.c.l.b16 %v1210_v38 }
 0x189   :  { %v3094_v8 = vsel %vm3090_vm11, %v3029_v59, %v2575_v58  ;;  %1949 = vrot.lane.b32.xlu2 %v1646_v45, %s4559_s8 }
 0x18a   :  { %4381 = vmatmul.msk.bf16.gmra.mxu1 %vm3191_vm10, %v3094_v8 }
 0x18b   :  { %v5084_v60 = vpop.permute.xlu2 %2176  ;;  %v828_v51 = vpop.f32.mrf.mxu0 }
 0x18c   :  { %v1103_v5 = vmax.f32 %v828_v51, 0.0 }
 0x18d   :  { %4340 = vmatmul.msk.bf16.gmra.mxu3 %vm524_vm1, %v4492_v41 }
 0x18e   :  { %v1211_v2 = vpack.c.bf16 %v1103_v5, %v1103_v5  ;;  %v2269_v16 = vpop.permute.xlu1 %2268 }
 0x190   :  { %v1375_v17 = vunpack.c.l.b16 %v1211_v2  ;;  %v5086_v30 = vpop.permute.xlu0 %1941 }
 0x192   :  { %v5088_v37 = vpack.c.b16 %v1375_v17, %v1374_v32 }
 0x193   :  { %v5093_v40 = vpop.permute.xlu2 %2302  ;;  %v831_v49 = vpop.f32.mrf.mxu0 }
 0x194   :  { %6498 = vst [vmem:[#allocation18_spill] sm:$0xff] %v5093_v40  ;;  %v1104_v33 = vmax.f32 %v831_v49, 0.0  ;;  %2184 = vrot.lane.b32.xlu1 %v5088_v37, %s4560_s9  ;;  %2420 = vrot.lane.b32.xlu2 %v5088_v37, %s4563_s16  ;;  %v2024_v5 = vrot.slane %v5088_v37, 1  ;;  %v1650_v2 = vshll.u32 %v5088_v37, 16 }
 0x196   :  { %v1212_v45 = vpack.c.bf16 %v1104_v33, %v1104_v33  ;;  %v5103_v53 = vpop.permute.xlu1 %2208  ;;  %4317 = vmatmul.msk.bf16.gmra.mxu0 %vm524_vm1, %v4469_v25  ;;  %v1652_v41 = vrot.slane %v1650_v2, 1 }
 0x197   :  { %6499 = vst [vmem:[#allocation19_spill] sm:$0xff] %v5103_v53 }
 0x198   :  { %v1494_v59 = vunpack.c.l.b16 %v1212_v45  ;;  %v2413_v28 = vpop.permute.xlu0 %2412  ;;  %v4470_v45 = vld [vmem:[%s6477_s0 + $0xd0] sm:$0xff] }
 0x19a   :  { %v1526_v58 = vpack.c.b16 %v1494_v59, %v1494_v59  ;;  %v1648_v59 = vshrl.u32 %v5088_v37, 16 }
 0x19b   :  { %v2577_v8 = vpop.permute.xlu2 %2576  ;;  %v833_v51 = vpop.f32.mrf.mxu0 }
 0x19c   :  { %v2025_v38 = vrot.slane %v1526_v58, 1  ;;  %v1655_v32 = vshll.u32 %v1526_v58, 16  ;;  %v4493_v51 = vld [vmem:[%s6477_s0 + $0x188] sm:$0xff] }
 0x19d   :  { %4341 = vmatmul.msk.bf16.gmra.mxu3 %vm524_vm1, %v4493_v51 }
 0x19e   :  { %v5108_v17 = vpop.permute.xlu1 %2608  ;;  %v2026_v49 = vsel %vm1999_vm2, %v2024_v5, %v2025_v38  ;;  %v1657_v33 = vrot.slane %v1655_v32, 1  ;;  %v1653_v38 = vor.u32 %v1652_v41, %v1648_v59  ;;  %v2641_v5 = vsel %vm524_vm1, %v4747_v29, %v5007_v36 }
 0x19f   :  { %6500 = vst [vmem:[#allocation20_spill] sm:$0xff] %v5108_v17  ;;  %2112 = vrot.lane.b32.xlu2 %v2026_v49, %s4558_s5  ;;  %2348 = vrot.lane.b32.xlu0 %v2026_v49, %s4561_s12 }
 0x1a0   :  { %v5113_v25 = vpop.permute.xlu0 %2372  ;;  %2584 = vrot.lane.b32.xlu1 %v2026_v49, %s4564_s19  ;;  %v1658_v32 = vsel %vm1550_vm3, %v1653_v38, %v1657_v33  ;;  %v2706_v49 = vsel %vm2700_vm4, %v2641_v5, %v4946_v1 }
 0x1a1   :  { %6501 = vst [vmem:[#allocation21_spill] sm:$0xff] %v5113_v25  ;;  %v2771_v29 = vsel %vm2765_vm5, %v2706_v49, %v5019_v4  ;;  %v4494_v49 = vld [vmem:[%s6477_s0 + $0x190] sm:$0xff] }
 0x1a2   :  { %v2836_v36 = vsel %vm2830_vm6, %v2771_v29, %v2269_v16 }
 0x1a3   :  { %v835_v58 = vpop.f32.mrf.mxu0  ;;  %v5126_v26 = vpop.permute.xlu2 %1943  ;;  %v2901_v38 = vsel %vm2895_vm7, %v2836_v36, %v5027_v7  ;;  %v4471_v7 = vld [vmem:[%s6477_s0 + $0xd8] sm:$0xff] }
 0x1a4   :  { %v1105_v41 = vmax.f32 %v835_v58, 0.0  ;;  %v2966_v25 = vsel %vm2960_vm8, %v2901_v38, %v2413_v28 }
 0x1a6   :  { %v5129_v2 = vpop.permute.xlu1 %2340  ;;  %4318 = vmatmul.msk.bf16.gmra.mxu0 %vm524_vm1, %v4470_v45  ;;  %v1213_v51 = vpack.c.bf16 %v1105_v41, %v1105_v41 }
 0x1a7   :  { %2278 = vrot.lane.b32.xlu2 %v1658_v32, %s4562_s13  ;;  %2514 = vrot.lane.b32.xlu0 %v1658_v32, %s4565_s22 }
 0x1a8   :  { %v5137_v59 = vpop.permute.xlu0 %2538  ;;  %1951 = vrot.lane.b32.xlu1 %v1658_v32, %s4559_s8  ;;  %v1376_v53 = vunpack.c.l.b16 %v1213_v51 }
 0x1a9   :  { %6502 = vst [vmem:[#allocation22_spill] sm:$0xff] %v5137_v59  ;;  %v4505_v59 = vld [vmem:[%s6477_s0 + $0x1e8] sm:$0xff] }
 0x1ab   :  { %v837_v45 = vpop.f32.mrf.mxu0  ;;  %v2415_v58 = vpop.permute.xlu2 %2414 }
 0x1ac   :  { %v1106_v33 = vmax.f32 %v837_v45, 0.0  ;;  %v2643_v45 = vsel %vm524_vm1, %v4789_v24, %v5086_v30 }
 0x1ad   :  { %4342 = vmatmul.msk.bf16.gmra.mxu3 %vm524_vm1, %v4494_v49 }
 0x1ae   :  { %v1214_v40 = vpack.c.bf16 %v1106_v33, %v1106_v33  ;;  %v2507_v1 = vpop.permute.xlu1 %2506 }
 0x1af   :  { %v3031_v5 = vsel %vm3025_vm9, %v2966_v25, %v2507_v1 }
 0x1b0   :  { %v1377_v32 = vunpack.c.l.b16 %v1214_v40  ;;  %v5147_v27 = vpop.permute.xlu0 %2104  ;;  %v3096_v4 = vsel %vm3090_vm11, %v3031_v5, %v2577_v8  ;;  %v2708_v5 = vsel %vm2700_vm4, %v2643_v45, %v5073_v22  ;;  %v4472_v22 = vld [vmem:[%s6477_s0 + $0xe0] sm:$0xff]  ;;  %v4495_v45 = vld [vmem:[%s6477_s0 + $0x198] sm:$0xff] }
 0x1b1   :  { %4382 = vmatmul.msk.bf16.gmra.mxu1 %vm3191_vm10, %v3096_v4  ;;  %v2773_v30 = vsel %vm2765_vm5, %v2708_v5, %v5084_v60 }
 0x1b2   :  { %v5151_v16 = vpack.c.b16 %v1377_v32, %v1376_v53 }
 0x1b3   :  { %v840_v28 = vpop.f32.mrf.mxu0  ;;  %v5165_v29 = vpop.permute.xlu2 %2106 }
 0x1b4   :  { %v1107_v25 = vmax.f32 %v840_v28, 0.0  ;;  %2186 = vrot.lane.b32.xlu0 %v5151_v16, %s4560_s9  ;;  %2422 = vrot.lane.b32.xlu1 %v5151_v16, %s4563_s16  ;;  %v2027_v38 = vrot.slane %v5151_v16, 1  ;;  %v1662_v1 = vshll.u32 %v5151_v16, 16 }
 0x1b6   :  { %v1215_v40 = vpack.c.bf16 %v1107_v25, %v1107_v25  ;;  %v2179_v53 = vpop.permute.xlu1 %2178  ;;  %4319 = vmatmul.msk.bf16.gmra.mxu0 %vm524_vm1, %v4471_v7  ;;  %v1664_v24 = vrot.slane %v1662_v1, 1 }
 0x1b8   :  { %v1495_v8 = vunpack.c.l.b16 %v1215_v40  ;;  %v2271_v41 = vpop.permute.xlu0 %2270  ;;  %v1660_v40 = vshrl.u32 %v5151_v16, 16 }
 0x1b9   :  { %v2838_v25 = vsel %vm2830_vm6, %v2773_v30, %v2271_v41 }
 0x1ba   :  { %v1527_v36 = vpack.c.b16 %v1495_v8, %v1495_v8 }
 0x1bb   :  { %v842_v51 = vpop.f32.mrf.mxu0  ;;  %v2273_v8 = vpop.permute.xlu2 %2272 }
 0x1bc   :  { %v2028_v33 = vrot.slane %v1527_v36, 1  ;;  %v1667_v32 = vshll.u32 %v1527_v36, 16  ;;  %v1665_v51 = vor.u32 %v1664_v24, %v1660_v40  ;;  %v2645_v40 = vsel %vm524_vm1, %v4848_v34, %v5126_v26  ;;  %v4496_v26 = vld [vmem:[%s6477_s0 + $0x1a0] sm:$0xff] }
 0x1bd   :  { %4343 = vmatmul.msk.bf16.gmra.mxu3 %vm524_vm1, %v4495_v45 }
 0x1be   :  { %v2579_v4 = vpop.permute.xlu1 %2578  ;;  %v2029_v7 = vsel %vm1999_vm2, %v2027_v38, %v2028_v33  ;;  %v1669_v49 = vrot.slane %v1667_v32, 1  ;;  %v2903_v33 = vsel %vm2895_vm7, %v2838_v25, %v5129_v2  ;;  %v3524_v2 = vld [vmem:[%s6480_s3] sm:$0xf] }
 0x1bf   :  { %2114 = vrot.lane.b32.xlu1 %v2029_v7, %s4558_s5  ;;  %2350 = vrot.lane.b32.xlu2 %v2029_v7, %s4561_s12  ;;  %v2968_v1 = vsel %vm2960_vm8, %v2903_v33, %v2415_v58 }
 0x1c0   :  { %v2343_v28 = vpop.permute.xlu0 %2342  ;;  %2586 = vrot.lane.b32.xlu0 %v2029_v7, %s4564_s19  ;;  %v1670_v60 = vsel %vm1550_vm3, %v1665_v51, %v1669_v49  ;;  %v3622_v7 = vsel %vm741_vm0, %v3524_v2, 0 }
 0x1c1   :  { %3631 = vmatpush.bf16.msrb.mxu2 %v3622_v7 }
 0x1c3   :  { %v844_v36 = vpop.f32.mrf.mxu0  ;;  %v5206_v58 = vpop.permute.xlu2 %2344 }
 0x1c4   :  { %v1108_v41 = vmax.f32 %v844_v36, 0.0 }
 0x1c6   :  { %4320 = vmatmul.msk.bf16.gmra.mxu0 %vm524_vm1, %v4472_v22  ;;  %v5195_v38 = vpop.permute.xlu1 %1945  ;;  %v1216_v49 = vpack.c.bf16 %v1108_v41, %v1108_v41 }
 0x1c7   :  { %2280 = vrot.lane.b32.xlu1 %v1670_v60, %s4562_s13  ;;  %2516 = vrot.lane.b32.xlu2 %v1670_v60, %s4565_s22 }
 0x1c8   :  { %v2509_v5 = vpop.permute.xlu0 %2508  ;;  %1953 = vrot.lane.b32.xlu0 %v1670_v60, %s4559_s8  ;;  %v1378_v36 = vunpack.c.l.b16 %v1216_v49 }
 0x1c9   :  { %v3033_v32 = vsel %vm3025_vm9, %v2968_v1, %v2509_v5  ;;  %v4473_v1 = vld [vmem:[%s6477_s0 + $0xe8] sm:$0xff] }
 0x1ca   :  { %v3098_v24 = vsel %vm3090_vm11, %v3033_v32, %v2579_v4  ;;  %v2710_v4 = vsel %vm2700_vm4, %v2645_v40, %v5147_v27 }
 0x1cb   :  { %4383 = vmatmul.msk.bf16.gmra.mxu1 %vm3191_vm10, %v3098_v24  ;;  %v846_v30 = vpop.f32.mrf.mxu0  ;;  %v2775_v33 = vsel %vm2765_vm5, %v2710_v4, %v2179_v53 }
 0x1cc   :  { %v1109_v25 = vmax.f32 %v846_v30, 0.0  ;;  %v2840_v5 = vsel %vm2830_vm6, %v2775_v33, %v2273_v8  ;;  %v2511_v8 = vpop.permute.xlu2 %2510 }
 0x1cd   :  { %v2905_v34 = vsel %vm2895_vm7, %v2840_v5, %v2343_v28  ;;  %4344 = vmatmul.msk.bf16.gmra.mxu3 %vm524_vm1, %v4496_v26 }
 0x1ce   :  { %v1217_v22 = vpack.c.bf16 %v1109_v25, %v1109_v25  ;;  %v2417_v41 = vpop.permute.xlu1 %2416 }
 0x1cf   :  { %v2970_v27 = vsel %vm2960_vm8, %v2905_v34, %v2417_v41 }
 0x1d0   :  { %v1379_v45 = vunpack.c.l.b16 %v1217_v22  ;;  %v5211_v51 = vpop.permute.xlu0 %2180  ;;  %v3035_v30 = vsel %vm3025_vm9, %v2970_v27, %v2511_v8 }
 0x1d2   :  { %v5216_v60 = vpack.c.b16 %v1379_v45, %v1378_v36 }
 0x1d3   :  { %v849_v2 = vpop.f32.mrf.mxu0 }
 0x1d4   :  { %v1110_v32 = vmax.f32 %v849_v2, 0.0  ;;  %2188 = vrot.lane.b32.xlu2 %v5216_v60, %s4560_s9  ;;  %2424 = vrot.lane.b32.xlu0 %v5216_v60, %s4563_s16  ;;  %v2030_v40 = vrot.slane %v5216_v60, 1  ;;  %v1674_v36 = vshll.u32 %v5216_v60, 16  ;;  %v4474_v2 = vld [vmem:[%s6477_s0 + $0xf0] sm:$0xff]  ;;  %v1672_v26 = vshrl.u32 %v5216_v60, 16 }
 0x1d6   :  { %v1218_v53 = vpack.c.bf16 %v1110_v32, %v1110_v32  ;;  %4321 = vmatmul.msk.bf16.gmra.mxu0 %vm524_vm1, %v4473_v1  ;;  %v5239_v33 = vpop.permute.xlu1 %2108  ;;  %v1676_v1 = vrot.slane %v1674_v36, 1  ;;  %v4497_v32 = vld [vmem:[%s6477_s0 + $0x1a8] sm:$0xff] }
 0x1d8   :  { %v1496_v7 = vunpack.c.l.b16 %v1218_v53  ;;  %v2581_v24 = vpop.permute.xlu0 %2580  ;;  %v1677_v27 = vor.u32 %v1676_v1, %v1672_v26  ;;  %v5263_v1 = vpop.permute.xlu2 %2182 }
 0x1d9   :  { %v3100_v28 = vsel %vm3090_vm11, %v3035_v30, %v2581_v24 }
 0x1da   :  { %v1528_v49 = vpack.c.b16 %v1496_v7, %v1496_v7 }
 0x1db   :  { %4384 = vmatmul.msk.bf16.gmra.mxu1 %vm3191_vm10, %v3100_v28  ;;  %v851_v25 = vpop.f32.mrf.mxu0 }
 0x1dc   :  { %v2031_v22 = vrot.slane %v1528_v49, 1  ;;  %v1679_v45 = vshll.u32 %v1528_v49, 16 }
 0x1dd   :  { %4345 = vmatmul.msk.bf16.gmra.mxu3 %vm524_vm1, %v4497_v32 }
 0x1de   :  { %v2032_v4 = vsel %vm1999_vm2, %v2030_v40, %v2031_v22  ;;  %v1681_v5 = vrot.slane %v1679_v45, 1  ;;  %v2275_v24 = vpop.permute.xlu1 %2274 }
 0x1df   :  { %2116 = vrot.lane.b32.xlu0 %v2032_v4, %s4558_s5  ;;  %2352 = vrot.lane.b32.xlu1 %v2032_v4, %s4561_s12 }
 0x1e0   :  { %v3268_v41 = vpop.f32.mrf.mxu1  ;;  %2588 = vrot.lane.b32.xlu2 %v2032_v4, %s4564_s19  ;;  %v1682_v53 = vsel %vm1550_vm3, %v1677_v27, %v1681_v5  ;;  %v5257_v22 = vpop.permute.xlu0 %1947  ;;  %v2647_v4 = vsel %vm524_vm1, %v4928_v50, %v5195_v38  ;;  %v4498_v50 = vld [vmem:[%s6477_s0 + $0x1b0] sm:$0xff] }
 0x1e1   :  { %v3428_v30 = vmax.f32 %v3268_v41, 0.0  ;;  %v2712_v32 = vsel %vm2700_vm4, %v2647_v4, %v5165_v29 }
 0x1e2   :  { %v2777_v38 = vsel %vm2765_vm5, %v2712_v32, %v5211_v51  ;;  %v961_v51 = vpop.f32.mrf.mxu3 }
 0x1e3   :  { %v853_v34 = vpop.f32.mrf.mxu0 }
 0x1e4   :  { %v1111_v8 = vmax.f32 %v853_v34, 0.0  ;;  %v4475_v34 = vld [vmem:[%s6477_s0 + $0xf8] sm:$0xff] }
 0x1e6   :  { %4322 = vmatmul.msk.bf16.gmra.mxu0 %vm524_vm1, %v4474_v2  ;;  %v1219_v40 = vpack.c.bf16 %v1111_v8, %v1111_v8  ;;  %v2842_v8 = vsel %vm2830_vm6, %v2777_v38, %v2275_v24 }
 0x1e7   :  { %2282 = vrot.lane.b32.xlu0 %v1682_v53, %s4562_s13  ;;  %2518 = vrot.lane.b32.xlu1 %v1682_v53, %s4565_s22 }
 0x1e8   :  { %v3270_v7 = vpop.f32.mrf.mxu1  ;;  %1955 = vrot.lane.b32.xlu2 %v1682_v53, %s4559_s8  ;;  %v1380_v5 = vunpack.c.l.b16 %v1219_v40  ;;  %v2419_v29 = vpop.permute.xlu0 %2418 }
 0x1e9   :  { %v3429_v28 = vmax.f32 %v3270_v7, 0.0  ;;  %v2583_v40 = vpop.permute.xlu2 %2582 }
 0x1eb   :  { %v3492_v49 = vpack.c.bf16 %v3429_v28, %v3428_v30  ;;  %v855_v25 = vpop.f32.mrf.mxu0  ;;  %v2907_v30 = vsel %vm2895_vm7, %v2842_v8, %v5206_v58  ;;  %v963_v8 = vpop.f32.mrf.mxu3 }
 0x1ec   :  { %v1112_v36 = vmax.f32 %v855_v25, 0.0 }
 0x1ed   :  { %4412 = vmatmul.msk.bf16.vlgmr.msrb.gmra.mxu2 %vm524_vm1, %v3492_v49  ;;  %4346 = vmatmul.msk.bf16.gmra.mxu3 %vm524_vm1, %v4498_v50  ;;  %v2972_v49 = vsel %vm2960_vm8, %v2907_v30, %v2419_v29  ;;  %v1148_v29 = vmax.f32 %v963_v8, 0.0  ;;  %v4476_v30 = vld [vmem:[%s6477_s0 + $0x100] sm:$0xff] }
 0x1ee   :  { %v1220_v45 = vpack.c.bf16 %v1112_v36, %v1112_v36 }
 0x1f0   :  { %v1381_v2 = vunpack.c.l.b16 %v1220_v45 }
 0x1f1   :  { %v5265_v26 = vpop.permute.xlu1 %2346  ;;  %v5295_v50 = vpop.permute.xlu0 %2110 }
 0x1f2   :  { %v5267_v41 = vpack.c.b16 %v1381_v2, %v1380_v5 }
 0x1f3   :  { %v858_v27 = vpop.f32.mrf.mxu0 }
 0x1f4   :  { %v1113_v53 = vmax.f32 %v858_v27, 0.0  ;;  %2190 = vrot.lane.b32.xlu1 %v5267_v41, %s4560_s9  ;;  %2426 = vrot.lane.b32.xlu2 %v5267_v41, %s4563_s16  ;;  %v2033_v2 = vrot.slane %v5267_v41, 1  ;;  %v1147_v27 = vmax.f32 %v961_v51, 0.0 }
 0x1f6   :  { %v1221_v7 = vpack.c.bf16 %v1113_v53, %v1113_v53  ;;  %4323 = vmatmul.msk.bf16.gmra.mxu0 %vm524_vm1, %v4475_v34  ;;  %v1686_v34 = vshll.u32 %v5267_v41, 16  ;;  %v1255_v53 = vpack.c.bf16 %v1147_v27, %v1147_v27 }
 0x1f8   :  { %v1497_v28 = vunpack.c.l.b16 %v1221_v7  ;;  %v1688_v38 = vrot.slane %v1686_v34, 1 }
 0x1f9   :  { %v2513_v25 = vpop.permute.xlu1 %2512 }
 0x1fa   :  { %v1529_v36 = vpack.c.b16 %v1497_v28, %v1497_v28  ;;  %v3037_v45 = vsel %vm3025_vm9, %v2972_v49, %v2513_v25  ;;  %v1684_v28 = vshrl.u32 %v5267_v41, 16  ;;  %v1400_v49 = vunpack.c.l.b16 %v1255_v53 }
 0x1fb   :  { %v860_v4 = vpop.f32.mrf.mxu0  ;;  %v3102_v24 = vsel %vm3090_vm11, %v3037_v45, %v2583_v40  ;;  %v1256_v25 = vpack.c.bf16 %v1148_v29, %v1148_v29  ;;  %v4499_v40 = vld [vmem:[%s6477_s0 + $0x1b8] sm:$0xff]  ;;  %v5307_v45 = vpop.permute.xlu2 %1949 }
 0x1fc   :  { %v2034_v5 = vrot.slane %v1529_v36, 1  ;;  %4385 = vmatmul.msk.bf16.gmra.mxu1 %vm3191_vm10, %v3102_v24  ;;  %v1691_v58 = vshll.u32 %v1529_v36, 16  ;;  %v1689_v36 = vor.u32 %v1688_v38, %v1684_v28  ;;  %v2649_v38 = vsel %vm524_vm1, %v4981_v62, %v5257_v22 }
 0x1fd   :  { %v1401_v4 = vunpack.c.l.b16 %v1256_v25  ;;  %4347 = vmatmul.msk.bf16.gmra.mxu3 %vm524_vm1, %v4499_v40 }
 0x1fe   :  { %v2035_v32 = vsel %vm1999_vm2, %v2033_v2, %v2034_v5  ;;  %v1693_v7 = vrot.slane %v1691_v58, 1 }
 0x1ff   :  { %2118 = vrot.lane.b32.xlu2 %v2035_v32, %s4558_s5  ;;  %2354 = vrot.lane.b32.xlu0 %v2035_v32, %s4561_s12  ;;  %v5314_v2 = vpack.c.b16 %v1401_v4, %v1400_v49 }
 0x200   :  { %2590 = vrot.lane.b32.xlu1 %v2035_v32, %s4564_s19  ;;  %v1694_v24 = vsel %vm1550_vm3, %v1689_v36, %v1693_v7  ;;  %v5317_v58 = vpop.f32.mrf.mxu3  ;;  %v2277_v32 = vpop.permute.xlu0 %2276 }
 0x203   :  { %v862_v51 = vpop.f32.mrf.mxu0  ;;  %v2421_v29 = vpop.permute.xlu2 %2420 }
 0x204   :  { %v1114_v34 = vmax.f32 %v862_v51, 0.0 }
 0x206   :  { %4324 = vmatmul.msk.bf16.gmra.mxu0 %vm524_vm1, %v4476_v30  ;;  %v1222_v53 = vpack.c.bf16 %v1114_v34, %v1114_v34  ;;  %v2714_v30 = vsel %vm2700_vm4, %v2649_v38, %v5239_v33  ;;  %v5328_v11 = vpop.permute.xlu1 %2184  ;;  %v4477_v33 = vld [vmem:[%s6477_s0 + $0x108] sm:$0xff] }
 0x207   :  { %v3273_v5 = vpop.f32.mrf.mxu1  ;;  %2284 = vrot.lane.b32.xlu2 %v1694_v24, %s4562_s13  ;;  %2520 = vrot.lane.b32.xlu0 %v1694_v24, %s4565_s22 }
 0x208   :  { %1957 = vrot.lane.b32.xlu1 %v1694_v24, %s4559_s8  ;;  %v1382_v49 = vunpack.c.l.b16 %v1222_v53  ;;  %v3430_v51 = vmax.f32 %v3273_v5, 0.0  ;;  %v968_v36 = vpop.f32.mrf.mxu3  ;;  %v2779_v24 = vsel %vm2765_vm5, %v2714_v30, %v5263_v1 }
 0x209   :  { %v2844_v34 = vsel %vm2830_vm6, %v2779_v24, %v2277_v32 }
 0x20a   :  { %v2909_v32 = vsel %vm2895_vm7, %v2844_v34, %v5265_v26 }
 0x20b   :  { %v864_v27 = vpop.f32.mrf.mxu0  ;;  %v5342_v1 = vpop.permute.xlu2 %2112  ;;  %v2974_v30 = vsel %vm2960_vm8, %v2909_v32, %v2421_v29 }
 0x20c   :  { %v1115_v8 = vmax.f32 %v864_v27, 0.0  ;;  %v4500_v27 = vld [vmem:[%s6477_s0 + $0x1c0] sm:$0xff] }
 0x20d   :  { %4348 = vmatmul.msk.bf16.gmra.mxu3 %vm524_vm1, %v4500_v27 }
 0x20e   :  { %v1223_v7 = vpack.c.bf16 %v1115_v8, %v1115_v8 }
 0x20f   :  { %v3275_v28 = vpop.f32.mrf.mxu1 }
 0x210   :  { %v1383_v25 = vunpack.c.l.b16 %v1223_v7  ;;  %v3431_v40 = vmax.f32 %v3275_v28, 0.0  ;;  %v970_v7 = vpop.f32.mrf.mxu3 }
 0x211   :  { %v5324_v4 = vpop.permute.xlu0 %2348 }
 0x212   :  { %v5330_v62 = vpack.c.b16 %v1383_v25, %v1382_v49  ;;  %v3493_v22 = vpack.c.bf16 %v3431_v40, %v3430_v51  ;;  %v2585_v49 = vpop.permute.xlu1 %2584 }
 0x213   :  { %v867_v5 = vpop.f32.mrf.mxu0  ;;  %v2279_v29 = vpop.permute.xlu2 %2278 }
 0x214   :  { %v1116_v38 = vmax.f32 %v867_v5, 0.0  ;;  %4413 = vmatmul.msk.bf16.gmra.mxu2 %vm524_vm1, %v3493_v22  ;;  %2192 = vrot.lane.b32.xlu0 %v5330_v62, %s4560_s9  ;;  %v2036_v26 = vrot.slane %v5330_v62, 1  ;;  %v1698_v22 = vshll.u32 %v5330_v62, 16  ;;  %v1150_v5 = vmax.f32 %v970_v7, 0.0 }
 0x215   :  { %2428 = vrot.lane.b32.xlu1 %v5330_v62, %s4563_s16 }
 0x216   :  { %v1224_v53 = vpack.c.bf16 %v1116_v38, %v1116_v38  ;;  %4325 = vmatmul.msk.bf16.gmra.mxu0 %vm524_vm1, %v4477_v33  ;;  %v1700_v27 = vrot.slane %v1698_v22, 1  ;;  %v1258_v38 = vpack.c.bf16 %v1150_v5, %v1150_v5 }
 0x218   :  { %v1498_v8 = vunpack.c.l.b16 %v1224_v53  ;;  %v972_v32 = vpop.f32.mrf.mxu3  ;;  %v1402_v7 = vunpack.c.l.b16 %v1258_v38 }
 0x219   :  { %v2515_v28 = vpop.permute.xlu0 %2514  ;;  %v1151_v53 = vmax.f32 %v972_v32, 0.0 }
 0x21a   :  { %v1530_v51 = vpack.c.b16 %v1498_v8, %v1498_v8  ;;  %v3039_v25 = vsel %vm3025_vm9, %v2974_v30, %v2515_v28  ;;  %v4478_v30 = vld [vmem:[%s6477_s0 + $0x110] sm:$0xff]  ;;  %v1696_v28 = vshrl.u32 %v5330_v62, 16 }
 0x21b   :  { %v869_v40 = vpop.f32.mrf.mxu0  ;;  %v3104_v36 = vsel %vm3090_vm11, %v3039_v25, %v2585_v49  ;;  %v4501_v25 = vld [vmem:[%s6477_s0 + $0x1c8] sm:$0xff]  ;;  %v5372_v22 = vpop.permute.xlu2 %2350 }
 0x21c   :  { %v2037_v24 = vrot.slane %v1530_v51, 1  ;;  %4386 = vmatmul.msk.bf16.gmra.mxu1 %vm3191_vm10, %v3104_v36  ;;  %v1703_v33 = vshll.u32 %v1530_v51, 16  ;;  %v1259_v51 = vpack.c.bf16 %v1151_v53, %v1151_v53  ;;  %v5367_v40 = vpop.permute.xlu1 %1951  ;;  %v1701_v36 = vor.u32 %v1700_v27, %v1696_v28 }
 0x21d   :  { %4349 = vmatmul.msk.bf16.gmra.mxu3 %vm524_vm1, %v4501_v25 }
 0x21e   :  { %v2038_v34 = vsel %vm1999_vm2, %v2036_v26, %v2037_v24  ;;  %v1705_v8 = vrot.slane %v1703_v33, 1  ;;  %v1403_v24 = vunpack.c.l.b16 %v1259_v51 }
 0x21f   :  { %2120 = vrot.lane.b32.xlu1 %v2038_v34, %s4558_s5  ;;  %2356 = vrot.lane.b32.xlu2 %v2038_v34, %s4561_s12 }
 0x220   :  { %2592 = vrot.lane.b32.xlu0 %v2038_v34, %s4564_s19  ;;  %v1706_v26 = vsel %vm1550_vm3, %v1701_v36, %v1705_v8  ;;  %v5376_v33 = vpack.c.b16 %v1403_v24, %v1402_v7  ;;  %v2651_v34 = vsel %vm524_vm1, %v5022_v15, %v5307_v45  ;;  %v5382_v27 = vpop.f32.mrf.mxu3 }
 0x221   :  { %v2716_v38 = vsel %vm2700_vm4, %v2651_v34, %v5295_v50 }
 0x222   :  { %v2781_v32 = vsel %vm2765_vm5, %v2716_v38, %v5328_v11 }
 0x223   :  { %v871_v49 = vpop.f32.mrf.mxu0  ;;  %v2846_v51 = vsel %vm2830_vm6, %v2781_v32, %v2279_v29 }
 0x224   :  { %v1117_v5 = vmax.f32 %v871_v49, 0.0  ;;  %v2911_v15 = vsel %vm2895_vm7, %v2846_v51, %v5324_v4  ;;  %v4502_v4 = vld [vmem:[%s6477_s0 + $0x1d0] sm:$0xff] }
 0x226   :  { %4326 = vmatmul.msk.bf16.gmra.mxu0 %vm524_vm1, %v4478_v30  ;;  %v5388_v53 = vpop.permute.xlu0 %2186  ;;  %v1225_v30 = vpack.c.bf16 %v1117_v5, %v1117_v5  ;;  %v2423_v28 = vpop.permute.xlu1 %2422 }
 0x227   :  { %2286 = vrot.lane.b32.xlu1 %v1706_v26, %s4562_s13  ;;  %2522 = vrot.lane.b32.xlu2 %v1706_v26, %s4565_s22  ;;  %v2976_v25 = vsel %vm2960_vm8, %v2911_v15, %v2423_v28 }
 0x228   :  { %1959 = vrot.lane.b32.xlu0 %v1706_v26, %s4559_s8  ;;  %v1384_v36 = vunpack.c.l.b16 %v1225_v30  ;;  %v977_v24 = vpop.f32.mrf.mxu3  ;;  %v2517_v26 = vpop.permute.xlu2 %2516 }
 0x229   :  { %v3041_v5 = vsel %vm3025_vm9, %v2976_v25, %v2517_v26 }
 0x22b   :  { %v873_v8 = vpop.f32.mrf.mxu0 }
 0x22c   :  { %v1118_v7 = vmax.f32 %v873_v8, 0.0 }
 0x22d   :  { %4350 = vmatmul.msk.bf16.gmra.mxu3 %vm524_vm1, %v4502_v4 }
 0x22e   :  { %v1226_v45 = vpack.c.bf16 %v1118_v7, %v1118_v7  ;;  %v3278_v49 = vpop.f32.mrf.mxu1 }
 0x22f   :  { %v3432_v28 = vmax.f32 %v3278_v49, 0.0 }
 0x230   :  { %v1385_v50 = vunpack.c.l.b16 %v1226_v45  ;;  %v979_v15 = vpop.f32.mrf.mxu3  ;;  %v5436_v52 = vpop.permute.xlu2 %2188 }
 0x232   :  { %v5394_v11 = vpack.c.b16 %v1385_v50, %v1384_v36  ;;  %v2587_v34 = vpop.permute.xlu0 %2586 }
 0x233   :  { %v876_v38 = vpop.f32.mrf.mxu0  ;;  %v3106_v8 = vsel %vm3090_vm11, %v3041_v5, %v2587_v34 }
 0x234   :  { %v1119_v29 = vmax.f32 %v876_v38, 0.0  ;;  %4387 = vmatmul.msk.bf16.gmra.mxu1 %vm3191_vm10, %v3106_v8  ;;  %2194 = vrot.lane.b32.xlu2 %v5394_v11, %s4560_s9  ;;  %v2039_v24 = vrot.slane %v5394_v11, 1  ;;  %v1710_v26 = vshll.u32 %v5394_v11, 16  ;;  %v1153_v38 = vmax.f32 %v979_v15, 0.0  ;;  %v5411_v8 = vpop.permute.xlu1 %2114  ;;  %v4503_v15 = vld [vmem:[%s6477_s0 + $0x1d8] sm:$0xff] }
 0x235   :  { %2430 = vrot.lane.b32.xlu0 %v5394_v11, %s4563_s16 }
 0x236   :  { %v1227_v32 = vpack.c.bf16 %v1119_v29, %v1119_v29  ;;  %v3280_v30 = vpop.f32.mrf.mxu1  ;;  %v1712_v49 = vrot.slane %v1710_v26, 1  ;;  %v1261_v4 = vpack.c.bf16 %v1153_v38, %v1153_v38 }
 0x237   :  { %v3433_v7 = vmax.f32 %v3280_v30, 0.0 }
 0x238   :  { %v1499_v51 = vunpack.c.l.b16 %v1227_v32  ;;  %v981_v29 = vpop.f32.mrf.mxu3 }
 0x239   :  { %v3494_v45 = vpack.c.bf16 %v3433_v7, %v3432_v28  ;;  %v1154_v32 = vmax.f32 %v981_v29, 0.0  ;;  %v1708_v28 = vshrl.u32 %v5394_v11, 16 }
 0x23a   :  { %v1531_v25 = vpack.c.b16 %v1499_v51, %v1499_v51  ;;  %v1404_v51 = vunpack.c.l.b16 %v1261_v4 }
 0x23b   :  { %v878_v36 = vpop.f32.mrf.mxu0  ;;  %4414 = vmatmul.msk.bf16.gmra.mxu2 %vm524_vm1, %v3494_v45  ;;  %v1262_v45 = vpack.c.bf16 %v1154_v32, %v1154_v32  ;;  %v5429_v32 = vpop.permute.xlu0 %1953 }
 0x23c   :  { %v2040_v50 = vrot.slane %v1531_v25, 1  ;;  %v1715_v34 = vshll.u32 %v1531_v25, 16  ;;  %v1713_v25 = vor.u32 %v1712_v49, %v1708_v28  ;;  %v2281_v38 = vpop.permute.xlu1 %2280 }
 0x23d   :  { %v1405_v36 = vunpack.c.l.b16 %v1262_v45  ;;  %4351 = vmatmul.msk.bf16.gmra.mxu3 %vm524_vm1, %v4503_v15 }
 0x23e   :  { %v2041_v5 = vsel %vm1999_vm2, %v2039_v24, %v2040_v50  ;;  %v1717_v30 = vrot.slane %v1715_v34, 1 }
 0x23f   :  { %2122 = vrot.lane.b32.xlu0 %v2041_v5, %s4558_s5  ;;  %2358 = vrot.lane.b32.xlu1 %v2041_v5, %s4561_s12  ;;  %v5424_v24 = vpack.c.b16 %v1405_v36, %v1404_v51 }
 0x240   :  { %2594 = vrot.lane.b32.xlu2 %v2041_v5, %s4564_s19  ;;  %v1718_v50 = vsel %vm1550_vm3, %v1713_v25, %v1717_v30  ;;  %v5427_v5 = vpop.f32.mrf.mxu3  ;;  %v2653_v30 = vsel %vm524_vm1, %v5088_v37, %v5367_v40  ;;  %v4504_v37 = vld [vmem:[%s6477_s0 + $0x1e0] sm:$0xff] }
 0x243   :  { %v880_v7 = vpop.f32.mrf.mxu0 }
 0x244   :  { %v1120_v26 = vmax.f32 %v880_v7, 0.0 }
 0x246   :  { %v1228_v49 = vpack.c.bf16 %v1120_v26, %v1120_v26  ;;  %v2718_v26 = vsel %vm2700_vm4, %v2653_v30, %v5342_v1  ;;  %v2425_v1 = vpop.permute.xlu0 %2424 }
 0x247   :  { %2288 = vrot.lane.b32.xlu0 %v1718_v50, %s4562_s13  ;;  %2524 = vrot.lane.b32.xlu1 %v1718_v50, %s4565_s22  ;;  %v2783_v40 = vsel %vm2765_vm5, %v2718_v26, %v5388_v53 }
 0x248   :  { %v3283_v34 = vpop.f32.mrf.mxu1  ;;  %1961 = vrot.lane.b32.xlu2 %v1718_v50, %s4559_s8  ;;  %v1386_v45 = vunpack.c.l.b16 %v1228_v49  ;;  %v986_v7 = vpop.f32.mrf.mxu3  ;;  %v2848_v49 = vsel %vm2830_vm6, %v2783_v40, %v2281_v38 }
 0x249   :  { %v3434_v25 = vmax.f32 %v3283_v34, 0.0  ;;  %v2913_v30 = vsel %vm2895_vm7, %v2848_v49, %v5372_v22 }
 0x24b   :  { %v882_v4 = vpop.f32.mrf.mxu0 }
 0x24c   :  { %v1121_v29 = vmax.f32 %v882_v4, 0.0 }
 0x24d   :  { %4352 = vmatmul.msk.bf16.gmra.mxu3 %vm524_vm1, %v4504_v37 }
 0x24e   :  { %v1229_v28 = vpack.c.bf16 %v1121_v29, %v1121_v29 }
 0x250   :  { %v1387_v51 = vunpack.c.l.b16 %v1229_v28  ;;  %v3285_v15 = vpop.f32.mrf.mxu1 }
 0x251   :  { %v3435_v36 = vmax.f32 %v3285_v15, 0.0  ;;  %v5434_v50 = vpop.permute.xlu1 %2352  ;;  %v2978_v15 = vsel %vm2960_vm8, %v2913_v30, %v2425_v1  ;;  %v5463_v1 = vpop.permute.xlu0 %2116 }
 0x252   :  { %v5438_v17 = vpack.c.b16 %v1387_v51, %v1386_v45  ;;  %v988_v51 = vpop.f32.mrf.mxu3 }
 0x253   :  { %v3495_v4 = vpack.c.bf16 %v3435_v36, %v3434_v25  ;;  %v885_v29 = vpop.f32.mrf.mxu0  ;;  %v2589_v25 = vpop.permute.xlu2 %2588  ;;  %v1156_v49 = vmax.f32 %v988_v51, 0.0 }
 0x254   :  { %v1122_v34 = vmax.f32 %v885_v29, 0.0  ;;  %2196 = vrot.lane.b32.xlu1 %v5438_v17, %s4560_s9  ;;  %2432 = vrot.lane.b32.xlu2 %v5438_v17, %s4563_s16  ;;  %v2042_v37 = vrot.slane %v5438_v17, 1  ;;  %v1722_v22 = vshll.u32 %v5438_v17, 16 }
 0x255   :  { %4415 = vmatmul.msk.bf16.gmra.mxu2 %vm524_vm1, %v3495_v4 }
 0x256   :  { %v1230_v28 = vpack.c.bf16 %v1122_v34, %v1122_v34  ;;  %v1724_v30 = vrot.slane %v1722_v22, 1 }
 0x258   :  { %v1500_v45 = vunpack.c.l.b16 %v1230_v28  ;;  %v3288_v53 = vpop.f32.mrf.mxu1 }
 0x259   :  { %v2519_v7 = vpop.permute.xlu1 %2518 }
 0x25a   :  { %v1532_v36 = vpack.c.b16 %v1500_v45, %v1500_v45  ;;  %v3043_v26 = vsel %vm3025_vm9, %v2978_v15, %v2519_v7  ;;  %v1264_v45 = vpack.c.bf16 %v1156_v49, %v1156_v49  ;;  %v990_v15 = vpop.f32.mrf.mxu3  ;;  %v3436_v7 = vmax.f32 %v3288_v53, 0.0 }
 0x25b   :  { %v887_v38 = vpop.f32.mrf.mxu0  ;;  %v3108_v4 = vsel %vm3090_vm11, %v3043_v26, %v2589_v25  ;;  %v1157_v26 = vmax.f32 %v990_v15, 0.0  ;;  %v5472_v21 = vpop.permute.xlu2 %1955 }
 0x25c   :  { %v2043_v29 = vrot.slane %v1532_v36, 1  ;;  %4388 = vmatmul.msk.bf16.gmra.mxu1 %vm3191_vm10, %v3108_v4  ;;  %v1727_v40 = vshll.u32 %v1532_v36, 16  ;;  %v1720_v36 = vshrl.u32 %v5438_v17, 16 }
 0x25d   :  { %4353 = vmatmul.msk.bf16.gmra.mxu3 %vm524_vm1, %v4505_v59 }
 0x25e   :  { %v2044_v34 = vsel %vm1999_vm2, %v2042_v37, %v2043_v29  ;;  %v1729_v38 = vrot.slane %v1727_v40, 1  ;;  %v1406_v29 = vunpack.c.l.b16 %v1264_v45  ;;  %v1265_v37 = vpack.c.bf16 %v1157_v26, %v1157_v26 }
 0x25f   :  { %2124 = vrot.lane.b32.xlu2 %v2044_v34, %s4558_s5  ;;  %2360 = vrot.lane.b32.xlu0 %v2044_v34, %s4561_s12  ;;  %v1725_v18 = vor.u32 %v1724_v30, %v1720_v36  ;;  %v2655_v45 = vsel %vm524_vm1, %v5151_v16, %v5429_v32 }
 0x260   :  { %v3290_v28 = vpop.f32.mrf.mxu1  ;;  %2596 = vrot.lane.b32.xlu1 %v2044_v34, %s4564_s19  ;;  %v1407_v22 = vunpack.c.l.b16 %v1265_v37 }
 0x261   :  { %v3437_v25 = vmax.f32 %v3290_v28, 0.0  ;;  %v1730_v53 = vsel %vm1550_vm3, %v1725_v18, %v1729_v38  ;;  %v2283_v28 = vpop.permute.xlu0 %2282 }
 0x262   :  { %v5479_v40 = vpack.c.b16 %v1407_v22, %v1406_v29  ;;  %v5482_v49 = vpop.f32.mrf.mxu3 }
 0x263   :  { %v3496_v4 = vpack.c.bf16 %v3437_v25, %v3436_v7  ;;  %v889_v51 = vpop.f32.mrf.mxu0  ;;  %v2427_v18 = vpop.permute.xlu2 %2426  ;;  %v2720_v25 = vsel %vm2700_vm4, %v2655_v45, %v5411_v8  ;;  %v4506_v8 = vld [vmem:[%s6477_s0 + $0x1f0] sm:$0xff] }
 0x264   :  { %v1123_v34 = vmax.f32 %v889_v51, 0.0  ;;  %v2785_v37 = vsel %vm2765_vm5, %v2720_v25, %v5436_v52 }
 0x265   :  { %4416 = vmatmul.msk.bf16.gmra.mxu2 %vm524_vm1, %v3496_v4  ;;  %v2850_v32 = vsel %vm2830_vm6, %v2785_v37, %v2283_v28 }
 0x266   :  { %v1231_v59 = vpack.c.bf16 %v1123_v34, %v1123_v34  ;;  %v5493_v22 = vpop.permute.xlu1 %2190  ;;  %v2915_v28 = vsel %vm2895_vm7, %v2850_v32, %v5434_v50 }
 0x267   :  { %2290 = vrot.lane.b32.xlu2 %v1730_v53, %s4562_s13  ;;  %2526 = vrot.lane.b32.xlu0 %v1730_v53, %s4565_s22 }
 0x268   :  { %1963 = vrot.lane.b32.xlu1 %v1730_v53, %s4559_s8  ;;  %v1388_v26 = vunpack.c.l.b16 %v1231_v59 }
 0x26a   :  { %v995_v4 = vpop.f32.mrf.mxu3 }
 0x26b   :  { %v891_v30 = vpop.f32.mrf.mxu0  ;;  %v5505_v52 = vpop.permute.xlu2 %2118 }
 0x26c   :  { %v1124_v15 = vmax.f32 %v891_v30, 0.0 }
 0x26d   :  { %4354 = vmatmul.msk.bf16.gmra.mxu3 %vm524_vm1, %v4506_v8 }
 0x26e   :  { %v1232_v7 = vpack.c.bf16 %v1124_v15, %v1124_v15 }
 0x270   :  { %v1389_v38 = vunpack.c.l.b16 %v1232_v7  ;;  %v3633_v36 = vpop.f32.mrf.mxu2 }
 0x271   :  { %v3793_v51 = vmax.f32 %v3633_v36, 0.0  ;;  %v5489_v29 = vpop.permute.xlu0 %2354 }
 0x272   :  { %v5495_v16 = vpack.c.b16 %v1389_v38, %v1388_v26  ;;  %v997_v7 = vpop.f32.mrf.mxu3  ;;  %v2980_v38 = vsel %vm2960_vm8, %v2915_v28, %v2427_v18  ;;  %v2591_v4 = vpop.permute.xlu1 %2590 }
 0x273   :  { %v3857_v53 = vpack.c.bf16 %v3793_v51, %v3793_v51  ;;  %v894_v34 = vpop.f32.mrf.mxu0  ;;  %v1159_v28 = vmax.f32 %v997_v7, 0.0 }
 0x274   :  { %v1125_v30 = vmax.f32 %v894_v34, 0.0  ;;  %2198 = vrot.lane.b32.xlu0 %v5495_v16, %s4560_s9  ;;  %2434 = vrot.lane.b32.xlu1 %v5495_v16, %s4563_s16  ;;  %v2045_v50 = vrot.slane %v5495_v16, 1  ;;  %v1734_v32 = vshll.u32 %v5495_v16, 16 }
 0x275   :  { %3922 = vst.msk [vmem:[#allocation2] sm:$0xf] %vm3921_vm12, %v3857_v53 }
 0x276   :  { %v1233_v45 = vpack.c.bf16 %v1125_v30, %v1125_v30 }
 0x278   :  { %v1501_v59 = vunpack.c.l.b16 %v1233_v45  ;;  %v3635_v15 = vpop.f32.mrf.mxu2  ;;  %v2285_v45 = vpop.permute.xlu2 %2284 }
 0x279   :  { %v3794_v25 = vmax.f32 %v3635_v15, 0.0  ;;  %v3293_v26 = vpop.f32.mrf.mxu1  ;;  %v2521_v36 = vpop.permute.xlu0 %2520 }
 0x27a   :  { %v1533_v51 = vpack.c.b16 %v1501_v59, %v1501_v59  ;;  %v3045_v37 = vsel %vm3025_vm9, %v2980_v38, %v2521_v36  ;;  %v1736_v59 = vrot.slane %v1734_v32, 1  ;;  %v999_v15 = vpop.f32.mrf.mxu3  ;;  %v1732_v38 = vshrl.u32 %v5495_v16, 16  ;;  %v5526_v7 = vpop.permute.xlu1 %1957 }
 0x27b   :  { %v3858_v34 = vpack.c.bf16 %v3794_v25, %v3794_v25  ;;  %v896_v53 = vpop.f32.mrf.mxu0  ;;  %v3110_v8 = vsel %vm3090_vm11, %v3045_v37, %v2591_v4  ;;  %v3438_v4 = vmax.f32 %v3293_v26, 0.0 }
 0x27c   :  { %v2046_v63 = vrot.slane %v1533_v51, 1  ;;  %4389 = vmatmul.msk.bf16.gmra.mxu1 %vm3191_vm10, %v3110_v8  ;;  %v1739_v30 = vshll.u32 %v1533_v51, 16  ;;  %v1737_v8 = vor.u32 %v1736_v59, %v1732_v38 }
 0x27d   :  { %3923 = vst.msk [vmem:[#allocation2 + $0x4] sm:$0xf] %vm3921_vm12, %v3858_v34  ;;  %v1267_v34 = vpack.c.bf16 %v1159_v28, %v1159_v28  ;;  %v2657_v28 = vsel %vm524_vm1, %v5216_v60, %v5472_v21 }
 0x27e   :  { %v2047_v18 = vsel %vm1999_vm2, %v2045_v50, %v2046_v63  ;;  %v1741_v36 = vrot.slane %v1739_v30, 1  ;;  %v4507_v63 = vld [vmem:[%s6477_s0 + $0x1f8] sm:$0xff]  ;;  %v1160_v50 = vmax.f32 %v999_v15, 0.0  ;;  %v2722_v38 = vsel %vm2700_vm4, %v2657_v28, %v5463_v1 }
 0x27f   :  { %2126 = vrot.lane.b32.xlu1 %v2047_v18, %s4558_s5  ;;  %2362 = vrot.lane.b32.xlu2 %v2047_v18, %s4561_s12  ;;  %v1408_v30 = vunpack.c.l.b16 %v1267_v34 }
 0x280   :  { %2598 = vrot.lane.b32.xlu0 %v2047_v18, %s4564_s19  ;;  %4355 = vmatmul.msk.bf16.gmra.mxu3 %vm524_vm1, %v4507_v63  ;;  %v1742_v32 = vsel %vm1550_vm3, %v1737_v8, %v1741_v36  ;;  %v1268_v26 = vpack.c.bf16 %v1160_v50, %v1160_v50  ;;  %v5531_v18 = vpop.permute.xlu2 %2356  ;;  %v2787_v36 = vsel %vm2765_vm5, %v2722_v38, %v5493_v22 }
 0x281   :  { %v3295_v25 = vpop.f32.mrf.mxu1  ;;  %v2852_v60 = vsel %vm2830_vm6, %v2787_v36, %v2285_v45 }
 0x282   :  { %v3439_v37 = vmax.f32 %v3295_v25, 0.0  ;;  %v1409_v15 = vunpack.c.l.b16 %v1268_v26  ;;  %v5539_v25 = vpop.f32.mrf.mxu3 }
 0x283   :  { %v898_v51 = vpop.f32.mrf.mxu0 }
 0x284   :  { %v3497_v53 = vpack.c.bf16 %v3439_v37, %v3438_v4  ;;  %v1126_v59 = vmax.f32 %v898_v51, 0.0  ;;  %v5547_v37 = vpack.c.b16 %v1409_v15, %v1408_v30  ;;  %v2917_v51 = vsel %vm2895_vm7, %v2852_v60, %v5489_v29 }
 0x286   :  { %4417 = vmatmul.msk.bf16.gmra.mxu2 %vm524_vm1, %v3497_v53  ;;  %v5545_v4 = vpop.permute.xlu0 %2192  ;;  %v1234_v63 = vpack.c.bf16 %v1126_v59, %v1126_v59  ;;  %v4508_v59 = vld [vmem:[%s6477_s0 + $0x200] sm:$0xff] }
 0x287   :  { %2292 = vrot.lane.b32.xlu1 %v1742_v32, %s4562_s13  ;;  %2528 = vrot.lane.b32.xlu2 %v1742_v32, %s4565_s22  ;;  %v2429_v53 = vpop.permute.xlu1 %2428 }
 0x288   :  { %1965 = vrot.lane.b32.xlu0 %v1742_v32, %s4559_s8  ;;  %v2982_v50 = vsel %vm2960_vm8, %v2917_v51, %v2429_v53  ;;  %v2164_v1 = vunpack.c.l.b16 %v1234_v63  ;;  %v2523_v22 = vpop.permute.xlu2 %2522 }
 0x289   :  { %v3047_v30 = vsel %vm3025_vm9, %v2982_v50, %v2523_v22 }
 0x28a   :  { %v1004_v26 = vpop.f32.mrf.mxu3 }
 0x28b   :  { %v900_v34 = vpop.f32.mrf.mxu0 }
 0x28c   :  { %v1127_v21 = vmax.f32 %v900_v34, 0.0 }
 0x28e   :  { %v1235_v8 = vpack.c.bf16 %v1127_v21, %v1127_v21 }
 0x290   :  { %v2165_v32 = vunpack.c.l.b16 %v1235_v8  ;;  %4356 = vmatmul.msk.bf16.gmra.mxu3 %vm524_vm1, %v4508_v59 }
 0x292   :  { %v2168_v28 = vpack.c.b16 %v2165_v32, %v2164_v1  ;;  %v2593_v38 = vpop.permute.xlu0 %2592  ;;  %v1006_v60 = vpop.f32.mrf.mxu3 }
 0x293   :  { %v903_v15 = vpop.f32.mrf.mxu0  ;;  %v3112_v45 = vsel %vm3090_vm11, %v3047_v30, %v2593_v38 }
 0x294   :  { %v1128_v36 = vmax.f32 %v903_v15, 0.0  ;;  %4390 = vmatmul.msk.bf16.gmra.mxu1 %vm3191_vm10, %v3112_v45  ;;  %2200 = vrot.lane.b32.xlu2 %v2168_v28, %s4560_s9  ;;  %v2243_v34 = vshll.u32 %v2168_v28, 16  ;;  %v2328_v38 = vrot.slane %v2168_v28, 1  ;;  %v2241_v30 = vshrl.u32 %v2168_v28, 16 }
 0x295   :  { %2436 = vrot.lane.b32.xlu0 %v2168_v28, %s4563_s16  ;;  %v1162_v15 = vmax.f32 %v1006_v60, 0.0 }
 0x296   :  { %v1236_v29 = vpack.c.bf16 %v1128_v36, %v1128_v36  ;;  %v2245_v1 = vrot.slane %v2243_v34, 1 }
 0x297   :  { %v3638_v63 = vpop.f32.mrf.mxu2  ;;  %v1270_v28 = vpack.c.bf16 %v1162_v15, %v1162_v15 }
 0x298   :  { %v2236_v53 = vunpack.c.l.b16 %v1236_v29  ;;  %v3795_v21 = vmax.f32 %v3638_v63, 0.0  ;;  %v2246_v36 = vor.u32 %v2245_v1, %v2241_v30  ;;  %v5566_v29 = vpop.permute.xlu1 %2120  ;;  %v1131_v1 = vmax.f32 %v4677_v23, 0.0 }
 0x299   :  { %v3298_v51 = vpop.f32.mrf.mxu1  ;;  %v1410_v30 = vunpack.c.l.b16 %v1270_v28 }
 0x29a   :  { %v2238_v8 = vpack.c.b16 %v2236_v53, %v2236_v53  ;;  %v3859_v50 = vpack.c.bf16 %v3795_v21, %v3795_v21  ;;  %v1008_v53 = vpop.f32.mrf.mxu3  ;;  %v3440_v60 = vmax.f32 %v3298_v51, 0.0  ;;  %v1239_v51 = vpack.c.bf16 %v1131_v1, %v1131_v1  ;;  %v5585_v1 = vpop.permute.xlu0 %1959 }
 0x29b   :  { %v905_v32 = vpop.f32.mrf.mxu0 }
 0x29c   :  { %v2248_v26 = vshll.u32 %v2238_v8, 16  ;;  %v2329_v22 = vrot.slane %v2238_v8, 1  ;;  %3924 = vst.msk [vmem:[#allocation2 + $0x8] sm:$0xf] %vm3921_vm12, %v3859_v50  ;;  %v1149_v32 = vmax.f32 %v5317_v58, 0.0 }
 0x29e   :  { %v2250_v45 = vrot.slane %v2248_v26, 1  ;;  %v2330_v59 = vsel %vm1999_vm2, %v2328_v38, %v2329_v22  ;;  %v1163_v22 = vmax.f32 %v1008_v53, 0.0  ;;  %v1257_v15 = vpack.c.bf16 %v1149_v32, %v1149_v32 }
 0x29f   :  { %v3640_v0 = vpop.f32.mrf.mxu2  ;;  %2364 = vrot.lane.b32.xlu1 %v2330_v59, %s4561_s12  ;;  %2600 = vrot.lane.b32.xlu2 %v2330_v59, %s4564_s19  ;;  %v2474_v53 = vunpack.c.l.b16 %v1239_v51 }
 0x2a0   :  { %v3796_v34 = vmax.f32 %v3640_v0, 0.0  ;;  %v2251_v63 = vsel %vm1550_vm3, %v2246_v36, %v2250_v45  ;;  %v4509_v0 = vld [vmem:[%s6477_s0 + $0x208] sm:$0xff]  ;;  %v1271_v45 = vpack.c.bf16 %v1163_v22, %v1163_v22 }
 0x2a1   :  { %v3300_v21 = vpop.f32.mrf.mxu1  ;;  %2294 = vrot.lane.b32.xlu0 %v2251_v63, %s4562_s13  ;;  %4357 = vmatmul.msk.bf16.gmra.mxu3 %vm524_vm1, %v4509_v0  ;;  %v2476_v22 = vpack.c.b16 %v2474_v53, %v2474_v53  ;;  %v5596_v53 = vpop.permute.xlu2 %2194 }
 0x2a2   :  { %v3860_v8 = vpack.c.bf16 %v3796_v34, %v3796_v34  ;;  %v3441_v50 = vmax.f32 %v3300_v21, 0.0  ;;  %v1411_v23 = vunpack.c.l.b16 %v1271_v45  ;;  %v5579_v59 = vpop.f32.mrf.mxu3  ;;  %v2287_v34 = vpop.permute.xlu1 %2286  ;;  %v1507_v21 = vunpack.c.l.b16 %v1257_v15 }
 0x2a3   :  { %v907_v26 = vpop.f32.mrf.mxu0 }
 0x2a4   :  { %3925 = vst.msk [vmem:[#allocation2 + $0xc] sm:$0xf] %vm3921_vm12, %v3860_v8  ;;  %v3498_v38 = vpack.c.bf16 %v3441_v50, %v3440_v60  ;;  %v1129_v58 = vmax.f32 %v907_v26, 0.0  ;;  %v5581_v36 = vpack.c.b16 %v1411_v23, %v1410_v30  ;;  %v5583_v0 = vpack.c.b16 %v1507_v21, %v1507_v21 }
 0x2a5   :  { %v2659_v30 = vsel %vm524_vm1, %v5267_v41, %v5526_v7  ;;  %v2486_v23 = vshll.u32 %v2476_v22, 16  ;;  %v1804_v21 = vshrl.u32 %v5314_v2, 16 }
 0x2a6   :  { %4418 = vmatmul.msk.bf16.gmra.mxu2 %vm524_vm1, %v3498_v38  ;;  %v1237_v28 = vpack.c.bf16 %v1129_v58, %v1129_v58  ;;  %v1811_v58 = vshll.u32 %v5583_v0, 16  ;;  %v2724_v41 = vsel %vm2700_vm4, %v2659_v30, %v5505_v52 }
 0x2a7   :  { %2530 = vrot.lane.b32.xlu1 %v2251_v63, %s4565_s22  ;;  %v1806_v63 = vshll.u32 %v5314_v2, 16  ;;  %v2431_v20 = vpop.permute.xlu0 %2430  ;;  %v2488_v30 = vrot.slane %v2486_v23, 1 }
 0x2a8   :  { %v2402_v32 = vunpack.c.l.b16 %v1237_v28  ;;  %v4510_v28 = vld [vmem:[%s6477_s0 + $0x210] sm:$0xff]  ;;  %v1813_v13 = vrot.slane %v1811_v58, 1 }
 0x2a9   :  { %v2595_v58 = vpop.permute.xlu2 %2594 }
 0x2aa   :  { %v1013_v38 = vpop.f32.mrf.mxu3 }
 0x2ab   :  { %v909_v60 = vpop.f32.mrf.mxu0 }
 0x2ac   :  { %v1130_v8 = vmax.f32 %v909_v60, 0.0  ;;  %v1808_v60 = vrot.slane %v1806_v63, 1 }
 0x2ae   :  { %v1238_v50 = vpack.c.bf16 %v1130_v8, %v1130_v8  ;;  %v2567_v8 = vrot.slane %v2476_v22, 1  ;;  %v1809_v52 = vor.u32 %v1808_v60, %v1804_v21  ;;  %v2063_v60 = vrot.slane %v5314_v2, 1 }
 0x2af   :  { %2446 = vrot.lane.b32.xlu1 %v5314_v2, %s4563_s16 }
 0x2b0   :  { %v2403_v26 = vunpack.c.l.b16 %v1238_v50 }
 0x2b1   :  { %v3303_v45 = vpop.f32.mrf.mxu1  ;;  %v5593_v15 = vpop.permute.xlu1 %2358  ;;  %4358 = vmatmul.msk.bf16.gmra.mxu3 %vm524_vm1, %v4510_v28 }
 0x2b2   :  { %v2406_v51 = vpack.c.b16 %v2403_v26, %v2402_v32  ;;  %v1152_v32 = vmax.f32 %v5382_v27, 0.0  ;;  %v2789_v26 = vsel %vm2765_vm5, %v2724_v41, %v5545_v4  ;;  %v1015_v39 = vpop.f32.mrf.mxu3 }
 0x2b3   :  { %v2854_v63 = vsel %vm2830_vm6, %v2789_v26, %v2287_v34  ;;  %v3442_v34 = vmax.f32 %v3303_v45, 0.0  ;;  %v1165_v23 = vmax.f32 %v1015_v39, 0.0 }
 0x2b4   :  { %2438 = vrot.lane.b32.xlu2 %v2406_v51, %s4563_s16  ;;  %v2566_v7 = vrot.slane %v2406_v51, 1  ;;  %v2481_v50 = vshll.u32 %v2406_v51, 16  ;;  %v2479_v10 = vshrl.u32 %v2406_v51, 16  ;;  %v1260_v27 = vpack.c.bf16 %v1152_v32, %v1152_v32 }
 0x2b5   :  { %v2919_v4 = vsel %vm2895_vm7, %v2854_v63, %v5531_v18  ;;  %v1273_v39 = vpack.c.bf16 %v1165_v23, %v1165_v23 }
 0x2b6   :  { %v2568_v38 = vsel %vm1999_vm2, %v2566_v7, %v2567_v8  ;;  %v2483_v22 = vrot.slane %v2481_v50, 1  ;;  %v2984_v28 = vsel %vm2960_vm8, %v2919_v4, %v2431_v20  ;;  %v2064_v20 = vrot.slane %v5583_v0, 1  ;;  %v5628_v50 = vpop.permute.xlu0 %2122  ;;  %v4511_v4 = vld [vmem:[%s6477_s0 + $0x218] sm:$0xff] }
 0x2b7   :  { %2602 = vrot.lane.b32.xlu1 %v2568_v38, %s4564_s19  ;;  %v1818_v0 = vshll.u32 %v5376_v33, 16 }
 0x2b8   :  { %v2484_v3 = vor.u32 %v2483_v22, %v2479_v10  ;;  %v5619_v10 = vsel %vm1550_vm3, %v1809_v52, %v1813_v13  ;;  %v2065_v52 = vsel %vm1999_vm2, %v2063_v60, %v2064_v20  ;;  %v2661_v20 = vsel %vm524_vm1, %v5330_v62, %v5585_v1 }
 0x2b9   :  { %v3305_v41 = vpop.f32.mrf.mxu1  ;;  %v2525_v8 = vpop.permute.xlu1 %2524 }
 0x2ba   :  { %v3443_v26 = vmax.f32 %v3305_v41, 0.0  ;;  %v2489_v51 = vsel %vm1550_vm3, %v2484_v3, %v2488_v30  ;;  %v3049_v7 = vsel %vm3025_vm9, %v2984_v28, %v2525_v8  ;;  %v1508_v3 = vunpack.c.l.b16 %v1260_v27  ;;  %v1017_v32 = vpop.f32.mrf.mxu3 }
 0x2bb   :  { %2532 = vrot.lane.b32.xlu0 %v2489_v51, %s4565_s22  ;;  %v3114_v18 = vsel %vm3090_vm11, %v3049_v7, %v2595_v58  ;;  %v1166_v38 = vmax.f32 %v1017_v32, 0.0  ;;  %v1412_v30 = vunpack.c.l.b16 %v1273_v39  ;;  %v1820_v8 = vrot.slane %v1818_v0, 1 }
 0x2bc   :  { %v3499_v21 = vpack.c.bf16 %v3443_v26, %v3442_v34  ;;  %2540 = vrot.lane.b32.xlu2 %v5619_v10, %s4565_s22  ;;  %4391 = vmatmul.msk.bf16.gmra.mxu1 %vm3191_vm10, %v3114_v18  ;;  %v1540_v22 = vpack.c.b16 %v1508_v3, %v1508_v3  ;;  %v1816_v26 = vshrl.u32 %v5376_v33, 16  ;;  %v2066_v39 = vrot.slane %v5376_v33, 1 }
 0x2bd   :  { %v1274_v27 = vpack.c.bf16 %v1166_v38, %v1166_v38  ;;  %v1155_v32 = vmax.f32 %v5427_v5, 0.0  ;;  %v4512_v5 = vld [vmem:[%s6477_s0 + $0x220] sm:$0xff] }
 0x2be   :  { %4419 = vmatmul.msk.bf16.gmra.mxu2 %vm524_vm1, %v3499_v21  ;;  %v3643_v45 = vpop.f32.mrf.mxu2  ;;  %v1823_v28 = vshll.u32 %v1540_v22, 16  ;;  %v2289_v23 = vpop.permute.xlu0 %2288  ;;  %v1821_v18 = vor.u32 %v1820_v8, %v1816_v26  ;;  %v2067_v60 = vrot.slane %v1540_v22, 1 }
 0x2bf   :  { %v3797_v13 = vmax.f32 %v3643_v45, 0.0  ;;  %1975 = vrot.lane.b32.xlu1 %v4895_v6, %s4559_s8  ;;  %v5641_v6 = vpop.permute.xlu2 %1961  ;;  %v1413_v41 = vunpack.c.l.b16 %v1274_v27  ;;  %v1263_v0 = vpack.c.bf16 %v1155_v32, %v1155_v32 }
 0x2c0   :  { %v1825_v21 = vrot.slane %v1823_v28, 1 }
 0x2c1   :  { %v3861_v63 = vpack.c.bf16 %v3797_v13, %v3797_v13  ;;  %4359 = vmatmul.msk.bf16.gmra.mxu3 %vm524_vm1, %v4511_v4  ;;  %v5647_v58 = vpack.c.b16 %v1413_v41, %v1412_v30  ;;  %v2726_v13 = vsel %vm2700_vm4, %v2661_v20, %v5566_v29  ;;  %v5677_v29 = vsel %vm1999_vm2, %v2066_v39, %v2067_v60 }
 0x2c2   :  { %v5649_v7 = vpop.f32.mrf.mxu3  ;;  %v5659_v45 = vsel %vm1550_vm3, %v1821_v18, %v1825_v21  ;;  %v2791_v62 = vsel %vm2765_vm5, %v2726_v13, %v5596_v53  ;;  %v1509_v27 = vunpack.c.l.b16 %v1263_v0  ;;  %v1158_v0 = vmax.f32 %v5482_v49, 0.0 }
 0x2c3   :  { %3926 = vst.msk [vmem:[#allocation2 + $0x10] sm:$0xf] %vm3921_vm12, %v3861_v63  ;;  %2610 = vrot.lane.b32.xlu0 %v2065_v52, %s4564_s19  ;;  %v2856_v22 = vsel %vm2830_vm6, %v2791_v62, %v2289_v23  ;;  %v2069_v62 = vrot.slane %v5424_v24, 1 }
 0x2c4   :  { %2136 = vrot.lane.b32.xlu2 %v4864_v43, %s4558_s5  ;;  %v2921_v53 = vsel %vm2895_vm7, %v2856_v22, %v5593_v15  ;;  %v1541_v18 = vpack.c.b16 %v1509_v27, %v1509_v27  ;;  %v1828_v22 = vshrl.u32 %v5424_v24, 16 }
 0x2c6   :  { %v3645_v34 = vpop.f32.mrf.mxu2  ;;  %v5671_v1 = vpop.permute.xlu1 %2196  ;;  %v1835_v60 = vshll.u32 %v1541_v18, 16 }
 0x2c7   :  { %v3798_v51 = vmax.f32 %v3645_v34, 0.0  ;;  %2304 = vrot.lane.b32.xlu1 %v5619_v10, %s4562_s13  ;;  %v2433_v3 = vpop.permute.xlu2 %2432 }
 0x2c8   :  { %v2986_v26 = vsel %vm2960_vm8, %v2921_v53, %v2433_v3 }
 0x2c9   :  { %v3862_v43 = vpack.c.bf16 %v3798_v51, %v3798_v51 }
 0x2ca   :  { %v1022_v63 = vpop.f32.mrf.mxu3 }
 0x2cb   :  { %3927 = vst.msk [vmem:[#allocation2 + $0x14] sm:$0xf] %vm3921_vm12, %v3862_v43  ;;  %2210 = vrot.lane.b32.xlu0 %v5314_v2, %s4560_s9 }
 0x2cc   :  { %2374 = vrot.lane.b32.xlu2 %v2065_v52, %s4561_s12 }
 0x2cf   :  { %2542 = vrot.lane.b32.xlu1 %v5659_v45, %s4565_s22  ;;  %v5684_v30 = vpop.permute.xlu2 %2124 }
 0x2d1   :  { %v5667_v38 = vpop.permute.xlu0 %2360  ;;  %4360 = vmatmul.msk.bf16.gmra.mxu3 %vm524_vm1, %v4512_v5 }
 0x2d2   :  { %v1024_v41 = vpop.f32.mrf.mxu3  ;;  %v2597_v51 = vpop.permute.xlu1 %2596 }
 0x2d3   :  { %2448 = vrot.lane.b32.xlu0 %v5376_v33, %s4563_s16  ;;  %v1168_v15 = vmax.f32 %v1024_v41, 0.0 }
 0x2d4   :  { %2612 = vrot.lane.b32.xlu2 %v5677_v29, %s4564_s19 }
 0x2d5   :  { %v1276_v3 = vpack.c.bf16 %v1168_v15, %v1168_v15 }
 0x2d7   :  { %2138 = vrot.lane.b32.xlu1 %v2065_v52, %s4558_s5  ;;  %v1830_v52 = vshll.u32 %v5424_v24, 16  ;;  %v2291_v20 = vpop.permute.xlu2 %2290 }
 0x2d8   :  { %v3648_v4 = vpop.f32.mrf.mxu2 }
 0x2d9   :  { %v3799_v28 = vmax.f32 %v3648_v4, 0.0  ;;  %v3308_v34 = vpop.f32.mrf.mxu1  ;;  %v2527_v8 = vpop.permute.xlu0 %2526  ;;  %v1832_v4 = vrot.slane %v1830_v52, 1 }
 0x2da   :  { %v3051_v23 = vsel %vm3025_vm9, %v2986_v26, %v2527_v8  ;;  %v1026_v39 = vpop.f32.mrf.mxu3  ;;  %v3444_v53 = vmax.f32 %v3308_v34, 0.0  ;;  %v4513_v8 = vld [vmem:[%s6477_s0 + $0x228] sm:$0xff]  ;;  %v1837_v34 = vrot.slane %v1835_v60, 1 }
 0x2db   :  { %v3863_v43 = vpack.c.bf16 %v3799_v28, %v3799_v28  ;;  %1977 = vrot.lane.b32.xlu0 %v5619_v10, %s4559_s8  ;;  %v3116_v21 = vsel %vm3090_vm11, %v3051_v23, %v2597_v51  ;;  %v2070_v10 = vrot.slane %v1541_v18, 1  ;;  %v1169_v5 = vmax.f32 %v1026_v39, 0.0  ;;  %v5710_v51 = vpop.permute.xlu1 %1963 }
 0x2dc   :  { %4392 = vmatmul.msk.bf16.gmra.mxu1 %vm3191_vm10, %v3116_v21  ;;  %2212 = vrot.lane.b32.xlu2 %v5376_v33, %s4560_s9  ;;  %v1414_v28 = vunpack.c.l.b16 %v1276_v3  ;;  %v1833_v15 = vor.u32 %v1832_v4, %v1828_v22  ;;  %v2663_v3 = vsel %vm524_vm1, %v5394_v11, %v5641_v6 }
 0x2dd   :  { %3928 = vst.msk [vmem:[#allocation2 + $0x18] sm:$0xf] %vm3921_vm12, %v3863_v43  ;;  %v1277_v26 = vpack.c.bf16 %v1169_v5, %v1169_v5  ;;  %v1266_v43 = vpack.c.bf16 %v1158_v0, %v1158_v0  ;;  %v5718_v21 = vsel %vm1999_vm2, %v2069_v62, %v2070_v10  ;;  %v2728_v39 = vsel %vm2700_vm4, %v2663_v3, %v5628_v50 }
 0x2de   :  { %v1838_v22 = vsel %vm1550_vm3, %v1833_v15, %v1837_v34  ;;  %v4514_v34 = vld [vmem:[%s6477_s0 + $0x230] sm:$0xff] }
 0x2df   :  { %2376 = vrot.lane.b32.xlu1 %v5677_v29, %s4561_s12  ;;  %v1415_v49 = vunpack.c.l.b16 %v1277_v26  ;;  %v5720_v18 = vpop.permute.xlu2 %2362 }
 0x2e0   :  { %v3650_v13 = vpop.f32.mrf.mxu2 }
 0x2e1   :  { %v3800_v32 = vmax.f32 %v3650_v13, 0.0  ;;  %v3310_v63 = vpop.f32.mrf.mxu1  ;;  %4361 = vmatmul.msk.bf16.gmra.mxu3 %vm524_vm1, %v4513_v8  ;;  %v5724_v52 = vpack.c.b16 %v1415_v49, %v1414_v28 }
 0x2e2   :  { %v3445_v27 = vmax.f32 %v3310_v63, 0.0  ;;  %v5729_v60 = vpop.f32.mrf.mxu3  ;;  %v2793_v63 = vsel %vm2765_vm5, %v2728_v39, %v5671_v1 }
 0x2e3   :  { %v3864_v41 = vpack.c.bf16 %v3800_v32, %v3800_v32  ;;  %2306 = vrot.lane.b32.xlu0 %v5659_v45, %s4562_s13  ;;  %v1510_v32 = vunpack.c.l.b16 %v1266_v43  ;;  %v2858_v11 = vsel %vm2830_vm6, %v2793_v63, %v2291_v20  ;;  %v1161_v43 = vmax.f32 %v5539_v25, 0.0 }
 0x2e4   :  { %v3500_v23 = vpack.c.bf16 %v3445_v27, %v3444_v53  ;;  %2450 = vrot.lane.b32.xlu2 %v5424_v24, %s4563_s16  ;;  %v2923_v6 = vsel %vm2895_vm7, %v2858_v11, %v5667_v38  ;;  %v1842_v53 = vshll.u32 %v5479_v40, 16  ;;  %v1840_v38 = vshrl.u32 %v5479_v40, 16 }
 0x2e5   :  { %3929 = vst.msk [vmem:[#allocation2 + $0x1c] sm:$0xf] %vm3921_vm12, %v3864_v41  ;;  %v1542_v50 = vpack.c.b16 %v1510_v32, %v1510_v32  ;;  %v1269_v39 = vpack.c.bf16 %v1161_v43, %v1161_v43  ;;  %v2072_v25 = vrot.slane %v5479_v40, 1 }
 0x2e6   :  { %4420 = vmatmul.msk.bf16.gmra.mxu2 %vm524_vm1, %v3500_v23  ;;  %v5735_v62 = vpop.permute.xlu0 %2198  ;;  %v2435_v0 = vpop.permute.xlu1 %2434  ;;  %v1844_v49 = vrot.slane %v1842_v53, 1 }
 0x2e7   :  { %2614 = vrot.lane.b32.xlu1 %v5718_v21, %s4564_s19  ;;  %v2988_v1 = vsel %vm2960_vm8, %v2923_v6, %v2435_v0  ;;  %v2529_v41 = vpop.permute.xlu2 %2528  ;;  %v2073_v63 = vrot.slane %v1542_v50, 1 }
 0x2e8   :  { %v3653_v13 = vpop.f32.mrf.mxu2  ;;  %v3053_v20 = vsel %vm3025_vm9, %v2988_v1, %v2529_v41 }
 0x2e9   :  { %v3801_v10 = vmax.f32 %v3653_v13, 0.0 }
 0x2ea   :  { %v1031_v4 = vpop.f32.mrf.mxu3 }
 0x2eb   :  { %v3865_v5 = vpack.c.bf16 %v3801_v10, %v3801_v10  ;;  %2544 = vrot.lane.b32.xlu0 %v1838_v22, %s4565_s22 }
 0x2ec   :  { %1979 = vrot.lane.b32.xlu2 %v5659_v45, %s4559_s8  ;;  %v1847_v45 = vshll.u32 %v1542_v50, 16  ;;  %v1854_v50 = vshll.u32 %v5547_v37, 16 }
 0x2ed   :  { %3930 = vst.msk [vmem:[#allocation2 + $0x20] sm:$0xf] %vm3921_vm12, %v3865_v5  ;;  %v1511_v5 = vunpack.c.l.b16 %v1269_v39 }
 0x2ee   :  { %v1849_v15 = vrot.slane %v1847_v45, 1  ;;  %v1856_v43 = vrot.slane %v1854_v50, 1 }
 0x2ef   :  { %2214 = vrot.lane.b32.xlu1 %v5424_v24, %s4560_s9  ;;  %v5772_v0 = vpop.permute.xlu2 %2200  ;;  %v1543_v41 = vpack.c.b16 %v1511_v5, %v1511_v5 }
 0x2f0   :  { %v3655_v27 = vpop.f32.mrf.mxu2 }
 0x2f1   :  { %v3802_v28 = vmax.f32 %v3655_v27, 0.0  ;;  %4362 = vmatmul.msk.bf16.gmra.mxu3 %vm524_vm1, %v4514_v34  ;;  %v5775_v6 = vpop.permute.xlu1 %2126  ;;  %v2074_v27 = vsel %vm1999_vm2, %v2072_v25, %v2073_v63  ;;  %v1852_v34 = vshrl.u32 %v5547_v37, 16 }
 0x2f2   :  { %v2599_v26 = vpop.permute.xlu0 %2598  ;;  %v1033_v3 = vpop.f32.mrf.mxu3 }
 0x2f3   :  { %v3866_v8 = vpack.c.bf16 %v3802_v28, %v3802_v28  ;;  %v3118_v23 = vsel %vm3090_vm11, %v3053_v20, %v2599_v26  ;;  %2140 = vrot.lane.b32.xlu0 %v5677_v29, %s4558_s5  ;;  %v1845_v29 = vor.u32 %v1844_v49, %v1840_v38  ;;  %v1171_v32 = vmax.f32 %v1033_v3, 0.0 }
 0x2f4   :  { %4393 = vmatmul.msk.bf16.gmra.mxu1 %vm3191_vm10, %v3118_v23  ;;  %2308 = vrot.lane.b32.xlu2 %v1838_v22, %s4562_s13  ;;  %v1859_v38 = vshll.u32 %v1543_v41, 16 }
 0x2f5   :  { %3931 = vst.msk [vmem:[#allocation2 + $0x24] sm:$0xf] %vm3921_vm12, %v3866_v8  ;;  %v5767_v10 = vsel %vm1550_vm3, %v1845_v29, %v1849_v15  ;;  %v1279_v11 = vpack.c.bf16 %v1171_v32, %v1171_v32  ;;  %v1857_v32 = vor.u32 %v1856_v43, %v1852_v34 }
 0x2f7   :  { %2452 = vrot.lane.b32.xlu1 %v5479_v40, %s4563_s16  ;;  %v1416_v26 = vunpack.c.l.b16 %v1279_v11  ;;  %v2076_v11 = vrot.slane %v1543_v41, 1 }
 0x2f9   :  { %v3313_v13 = vpop.f32.mrf.mxu1  ;;  %v2601_v49 = vpop.permute.xlu2 %2600 }
 0x2fa   :  { %v1035_v1 = vpop.f32.mrf.mxu3  ;;  %v3446_v28 = vmax.f32 %v3313_v13, 0.0  ;;  %v1861_v13 = vrot.slane %v1859_v38, 1 }
 0x2fb   :  { %2378 = vrot.lane.b32.xlu0 %v5718_v21, %s4561_s12  ;;  %v1172_v4 = vmax.f32 %v1035_v1, 0.0  ;;  %v1966_v1 = vpop.permute.xlu0 %1965 }
 0x2fc   :  { %2546 = vrot.lane.b32.xlu2 %v5767_v10, %s4565_s22  ;;  %v5801_v5 = vsel %vm1550_vm3, %v1857_v32, %v1861_v13 }
 0x2fd   :  { %v1280_v20 = vpack.c.bf16 %v1172_v4, %v1172_v4 }
 0x2ff   :  { %1981 = vrot.lane.b32.xlu1 %v1838_v22, %s4559_s8  ;;  %v4515_v22 = vld [vmem:[%s6477_s0 + $0x238] sm:$0xff]  ;;  %v1417_v23 = vunpack.c.l.b16 %v1280_v20  ;;  %s4566_s0 = smov [#allocation2]  }
 0x301   :  { %v3315_v53 = vpop.f32.mrf.mxu1  ;;  %4363 = vmatmul.msk.bf16.gmra.mxu3 %vm524_vm1, %v4515_v22  ;;  %v5790_v15 = vpack.c.b16 %v1417_v23, %v1416_v26 }
 0x302   :  { %v3447_v45 = vmax.f32 %v3315_v53, 0.0  ;;  %v2075_v53 = vrot.slane %v5547_v37, 1 }
 0x303   :  { %2616 = vrot.lane.b32.xlu0 %v2074_v27, %s4564_s19  ;;  %v5792_v29 = vpop.f32.mrf.mxu3 }
 0x304   :  { %v3501_v8 = vpack.c.bf16 %v3447_v45, %v3446_v28  ;;  %2142 = vrot.lane.b32.xlu2 %v5718_v21, %s4558_s5  ;;  %v2293_v21 = vpop.permute.xlu1 %2292  ;;  %v1164_v28 = vmax.f32 %v5579_v59, 0.0  ;;  %v2665_v45 = vsel %vm524_vm1, %v5438_v17, %v5710_v51  ;;  %v5815_v41 = vsel %vm1999_vm2, %v2075_v53, %v2076_v11 }
 0x306   :  { %4421 = vmatmul.msk.bf16.gmra.mxu2 %vm524_vm1, %v3501_v8  ;;  %v2730_v8 = vsel %vm2700_vm4, %v2665_v45, %v5684_v30  ;;  %v1272_v59 = vpack.c.bf16 %v1164_v28, %v1164_v28  ;;  %v1866_v28 = vshll.u32 %v5581_v36, 16  ;;  %v2667_v45 = vsel %vm524_vm1, %v5495_v16, %v1966_v1 }
 0x307   :  { %2310 = vrot.lane.b32.xlu1 %v5767_v10, %s4562_s13  ;;  %v2795_v17 = vsel %vm2765_vm5, %v2730_v8, %v5735_v62  ;;  %v2437_v34 = vpop.permute.xlu0 %2436 }
 0x308   :  { %v2860_v51 = vsel %vm2830_vm6, %v2795_v17, %v2293_v21  ;;  %v1868_v17 = vrot.slane %v1866_v28, 1 }
 0x309   :  { %v3658_v3 = vpop.f32.mrf.mxu2  ;;  %v2925_v30 = vsel %vm2895_vm7, %v2860_v51, %v5720_v18  ;;  %v1167_v51 = vmax.f32 %v5649_v7, 0.0 }
 0x30a   :  { %v3803_v39 = vmax.f32 %v3658_v3, 0.0  ;;  %v1512_v3 = vunpack.c.l.b16 %v1272_v59  ;;  %v1864_v59 = vshrl.u32 %v5581_v36, 16 }
 0x30b   :  { %2216 = vrot.lane.b32.xlu0 %v5479_v40, %s4560_s9  ;;  %v1040_v4 = vpop.f32.mrf.mxu3 }
 0x30c   :  { %v3867_v63 = vpack.c.bf16 %v3803_v39, %v3803_v39  ;;  %2380 = vrot.lane.b32.xlu2 %v2074_v27, %s4561_s12  ;;  %v2990_v39 = vsel %vm2960_vm8, %v2925_v30, %v2437_v34  ;;  %v1544_v4 = vpack.c.b16 %v1512_v3, %v1512_v3  ;;  %v2732_v34 = vsel %vm2700_vm4, %v2667_v45, %v5775_v6 }
 0x30d   :  { %v1869_v6 = vor.u32 %v1868_v17, %v1864_v59 }
 0x30e   :  { %3932 = vst.msk [vmem:[#allocation2 + $0x28] sm:$0xf] %vm3921_vm12, %v3867_v63  ;;  %v5798_v25 = vpop.permute.xlu2 %2438 }
 0x30f   :  { %2548 = vrot.lane.b32.xlu1 %v5801_v5, %s4565_s22 }
 0x311   :  { %v3318_v50 = vpop.f32.mrf.mxu1  ;;  %v3660_v26 = vpop.f32.mrf.mxu2 }
 0x312   :  { %v3804_v20 = vmax.f32 %v3660_v26, 0.0  ;;  %v5810_v22 = vpop.permute.xlu1 %2364  ;;  %v3448_v32 = vmax.f32 %v3318_v50, 0.0  ;;  %v1871_v50 = vshll.u32 %v1544_v4, 16 }
 0x313   :  { %2454 = vrot.lane.b32.xlu0 %v5547_v37, %s4563_s16  ;;  %v1042_v43 = vpop.f32.mrf.mxu3 }
 0x314   :  { %v3868_v23 = vpack.c.bf16 %v3804_v20, %v3804_v20  ;;  %2618 = vrot.lane.b32.xlu2 %v5815_v41, %s4564_s19  ;;  %v1174_v11 = vmax.f32 %v1042_v43, 0.0  ;;  %v2079_v20 = vrot.slane %v1544_v4, 1  ;;  %v2295_v43 = vpop.permute.xlu0 %2294  ;;  %v1873_v30 = vrot.slane %v1871_v50, 1 }
 0x316   :  { %3933 = vst.msk [vmem:[#allocation2 + $0x2c] sm:$0xf] %vm3921_vm12, %v3868_v23  ;;  %v5825_v38 = vpop.permute.xlu2 %2540  ;;  %v2078_v23 = vrot.slane %v5581_v36, 1  ;;  %v1874_v4 = vsel %vm1550_vm3, %v1869_v6, %v1873_v30 }
 0x317   :  { %2144 = vrot.lane.b32.xlu1 %v2074_v27, %s4558_s5 }
 0x318   :  { %v5862_v7 = vsel %vm1999_vm2, %v2078_v23, %v2079_v20  ;;  %v1878_v23 = vshll.u32 %v5647_v58, 16 }
 0x319   :  { %v3320_v13 = vpop.f32.mrf.mxu1 }
 0x31a   :  { %v3449_v63 = vmax.f32 %v3320_v13, 0.0  ;;  %v2531_v62 = vpop.permute.xlu1 %2530  ;;  %v2797_v13 = vsel %vm2765_vm5, %v2732_v34, %v5772_v0 }
 0x31b   :  { %v3055_v21 = vsel %vm3025_vm9, %v2990_v39, %v2531_v62  ;;  %1983 = vrot.lane.b32.xlu0 %v5767_v10, %s4559_s8  ;;  %v1282_v10 = vpack.c.bf16 %v1174_v11, %v1174_v11 }
 0x31c   :  { %v3502_v53 = vpack.c.bf16 %v3449_v63, %v3448_v32  ;;  %v3120_v27 = vsel %vm3090_vm11, %v3055_v21, %v2601_v49  ;;  %2218 = vrot.lane.b32.xlu2 %v5547_v37, %s4560_s9  ;;  %v1044_v49 = vpop.f32.mrf.mxu3  ;;  %v1275_v32 = vpack.c.bf16 %v1167_v51, %v1167_v51  ;;  %v2862_v63 = vsel %vm2830_vm6, %v2797_v13, %v2295_v43 }
 0x31d   :  { %4394 = vmatmul.msk.bf16.gmra.mxu1 %vm3191_vm10, %v3120_v27  ;;  %v1175_v26 = vmax.f32 %v1044_v49, 0.0  ;;  %v1418_v16 = vunpack.c.l.b16 %v1282_v10  ;;  %v2927_v0 = vsel %vm2895_vm7, %v2862_v63, %v5810_v22 }
 0x31e   :  { %4422 = vmatmul.msk.bf16.gmra.mxu2 %vm524_vm1, %v3502_v53  ;;  %v5839_v18 = vpop.permute.xlu2 %2136  ;;  %v1513_v28 = vunpack.c.l.b16 %v1275_v32  ;;  %v2992_v45 = vsel %vm2960_vm8, %v2927_v0, %v5798_v25  ;;  %v2669_v25 = vsel %vm524_vm1, %v4696_v12, %v4809_v48  ;;  %v1170_v12 = vmax.f32 %v5729_v60, 0.0 }
 0x31f   :  { %2382 = vrot.lane.b32.xlu1 %v5815_v41, %s4561_s12  ;;  %v1283_v1 = vpack.c.bf16 %v1175_v26, %v1175_v26 }
 0x320   :  { %v1545_v26 = vpack.c.b16 %v1513_v28, %v1513_v28  ;;  %v1278_v63 = vpack.c.bf16 %v1170_v12, %v1170_v12 }
 0x321   :  { %v1419_v3 = vunpack.c.l.b16 %v1283_v1  ;;  %v1880_v1 = vrot.slane %v1878_v23, 1 }
 0x322   :  { %v5846_v8 = vpop.permute.xlu1 %2446  ;;  %v1883_v34 = vshll.u32 %v1545_v26, 16  ;;  %v2082_v28 = vrot.slane %v1545_v26, 1 }
 0x323   :  { %2312 = vrot.lane.b32.xlu0 %v5801_v5, %s4562_s13  ;;  %v5867_v62 = vpack.c.b16 %v1419_v3, %v1418_v16  ;;  %v1876_v16 = vshrl.u32 %v5647_v58, 16  ;;  %v2734_v3 = vsel %vm2700_vm4, %v2669_v25, %v4850_v35 }
 0x324   :  { %2456 = vrot.lane.b32.xlu2 %v5581_v36, %s4563_s16  ;;  %v5869_v21 = vpop.f32.mrf.mxu3  ;;  %v1885_v13 = vrot.slane %v1883_v34, 1  ;;  %v2799_v6 = vsel %vm2765_vm5, %v2734_v3, %v4835_v19  ;;  %v1888_v3 = vshrl.u32 %v5724_v52, 16 }
 0x325   :  { %v2864_v60 = vsel %vm2830_vm6, %v2799_v6, %v4831_v9 }
 0x326   :  { %v5859_v39 = vpop.permute.xlu2 %2374 }
 0x327   :  { %2620 = vrot.lane.b32.xlu1 %v5862_v7, %s4564_s19 }
 0x329   :  { %v3663_v11 = vpop.f32.mrf.mxu2 }
 0x32a   :  { %v3805_v53 = vmax.f32 %v3663_v11, 0.0  ;;  %v2603_v27 = vpop.permute.xlu1 %2602 }
 0x32b   :  { %2550 = vrot.lane.b32.xlu0 %v1874_v4, %s4565_s22 }
 0x32c   :  { %v3869_v10 = vpack.c.bf16 %v3805_v53, %v3805_v53  ;;  %1985 = vrot.lane.b32.xlu2 %v5801_v5, %s4559_s8  ;;  %v1049_v5 = vpop.f32.mrf.mxu3  ;;  %v2929_v53 = vsel %vm2895_vm7, %v2864_v60, %v4874_v55 }
 0x32d   :  { %v2533_v49 = vpop.permute.xlu0 %2532  ;;  %v2994_v19 = vsel %vm2960_vm8, %v2929_v53, %v4920_v42  ;;  %v2671_v42 = vsel %vm524_vm1, %v4698_v14, %v4878_v56 }
 0x32e   :  { %3934 = vst.msk [vmem:[#allocation2 + $0x30] sm:$0xf] %vm3921_vm12, %v3869_v10  ;;  %v3057_v50 = vsel %vm3025_vm9, %v2992_v45, %v2533_v49  ;;  %v5881_v22 = vpop.permute.xlu2 %2612  ;;  %v3059_v9 = vsel %vm3025_vm9, %v2994_v19, %v4933_v54  ;;  %v1514_v10 = vunpack.c.l.b16 %v1278_v63  ;;  %v2081_v49 = vrot.slane %v5647_v58, 1 }
 0x32f   :  { %2220 = vrot.lane.b32.xlu1 %v5581_v36, %s4560_s9  ;;  %v3122_v20 = vsel %vm3090_vm11, %v3057_v50, %v2603_v27  ;;  %v3124_v55 = vsel %vm3090_vm11, %v3059_v9, %v4941_v61  ;;  %v1890_v61 = vshll.u32 %v5724_v52, 16  ;;  %v2736_v14 = vsel %vm2700_vm4, %v2671_v42, %v4821_v57 }
 0x330   :  { %4395 = vmatmul.msk.bf16.gmra.mxu1 %vm3191_vm10, %v3122_v20  ;;  %v1546_v26 = vpack.c.b16 %v1514_v10, %v1514_v10 }
 0x331   :  { %v3665_v59 = vpop.f32.mrf.mxu2  ;;  %v1892_v12 = vrot.slane %v1890_v61, 1 }
 0x332   :  { %v3806_v17 = vmax.f32 %v3665_v59, 0.0  ;;  %v5891_v51 = vpop.permute.xlu1 %1975  ;;  %v2083_v59 = vsel %vm1999_vm2, %v2081_v49, %v2082_v28  ;;  %v2085_v10 = vrot.slane %v1546_v26, 1 }
 0x333   :  { %2146 = vrot.lane.b32.xlu0 %v5815_v41, %s4558_s5  ;;  %v1881_v41 = vor.u32 %v1880_v1, %v1876_v16  ;;  %v2801_v16 = vsel %vm2765_vm5, %v2736_v14, %v4925_v47  ;;  %v1895_v1 = vshll.u32 %v1546_v26, 16 }
 0x334   :  { %v3870_v43 = vpack.c.bf16 %v3806_v17, %v3806_v17  ;;  %2314 = vrot.lane.b32.xlu2 %v1874_v4, %s4562_s13  ;;  %v5909_v32 = vpop.f32.mrf.mxu3 }
 0x335   :  { %v5899_v30 = vpop.permute.xlu0 %2610  ;;  %v5918_v0 = vsel %vm1550_vm3, %v1881_v41, %v1885_v13  ;;  %v1897_v41 = vrot.slane %v1895_v1, 1 }
 0x336   :  { %3935 = vst.msk [vmem:[#allocation2 + $0x34] sm:$0xf] %vm3921_vm12, %v3870_v43  ;;  %v5903_v48 = vpop.permute.xlu2 %2212 }
 0x337   :  { %2458 = vrot.lane.b32.xlu1 %v5647_v58, %s4563_s16 }
 0x339   :  { %v3323_v35 = vpop.f32.mrf.mxu1 }
 0x33a   :  { %v5911_v11 = vpop.permute.xlu1 %2304  ;;  %v3450_v25 = vmax.f32 %v3323_v35, 0.0  ;;  %v1893_v35 = vor.u32 %v1892_v12, %v1888_v3  ;;  %v6509_v3 = vld [vmem:[#allocation16_spill] sm:$0xff] }
 0x33b   :  { %2384 = vrot.lane.b32.xlu0 %v5862_v7, %s4561_s12 }
 0x33c   :  { %2552 = vrot.lane.b32.xlu2 %v5918_v0, %s4565_s22  ;;  %v5937_v50 = vpop.f32.mrf.mxu3  ;;  %v5983_v28 = vsel %vm1550_vm3, %v1893_v35, %v1897_v41  ;;  %v6510_v41 = vld [vmem:[#allocation13_spill] sm:$0xff] }
 0x33d   :  { %v5926_v27 = vpop.permute.xlu0 %2210 }
 0x33e   :  { %v5930_v45 = vpop.permute.xlu2 %2450 }
 0x33f   :  { %1987 = vrot.lane.b32.xlu1 %v1874_v4, %s4559_s8 }
 0x340   :  { %4396 = vmatmul.msk.bf16.gmra.mxu1 %vm3191_vm10, %v3124_v55  ;;  %v2084_v55 = vrot.slane %v5724_v52, 1 }
 0x341   :  { %v3668_v54 = vpop.f32.mrf.mxu2  ;;  %v3325_v23 = vpop.f32.mrf.mxu1 }
 0x342   :  { %v3807_v20 = vmax.f32 %v3668_v54, 0.0  ;;  %v5942_v5 = vpop.permute.xlu1 %2542  ;;  %v3451_v4 = vmax.f32 %v3325_v23, 0.0  ;;  %v1173_v54 = vmax.f32 %v5792_v29, 0.0  ;;  %v6506_v23 = vld [vmem:[#allocation5_spill] sm:$0xff]  ;;  %v6000_v26 = vsel %vm1999_vm2, %v2084_v55, %v2085_v10  ;;  %v6513_v55 = vld [vmem:[#allocation20_spill] sm:$0xff] }
 0x343   :  { %2622 = vrot.lane.b32.xlu0 %v2083_v59, %s4564_s19 }
 0x344   :  { %v3871_v17 = vpack.c.bf16 %v3807_v20, %v3807_v20  ;;  %2148 = vrot.lane.b32.xlu2 %v5862_v7, %s4558_s5  ;;  %v3503_v56 = vpack.c.bf16 %v3451_v4, %v3450_v25  ;;  %v2866_v7 = vsel %vm2830_vm6, %v2801_v16, %v4969_v46  ;;  %v5964_v57 = vpop.f32.mrf.mxu3  ;;  %v6503_v46 = vld [vmem:[#allocation15_spill] sm:$0xff]  ;;  %v6505_v20 = vld [vmem:[#allocation9_spill] sm:$0xff]  ;;  %v6507_v4 = vld [vmem:[#allocation8_spill] sm:$0xff]  ;;  %v1281_v14 = vpack.c.bf16 %v1173_v54, %v1173_v54 }
 0x345   :  { %v5951_v34 = vpop.permute.xlu0 %2448  ;;  %v2931_v47 = vsel %vm2895_vm7, %v2866_v7, %v4915_v31  ;;  %v2673_v61 = vsel %vm524_vm1, %v6506_v23, %v6505_v20 }
 0x346   :  { %3936 = vst.msk [vmem:[#allocation2 + $0x38] sm:$0xf] %vm3921_vm12, %v3871_v17  ;;  %v5956_v43 = vpop.permute.xlu2 %1979  ;;  %4423 = vmatmul.msk.bf16.gmra.mxu2 %vm524_vm1, %v3503_v56  ;;  %v2996_v60 = vsel %vm2960_vm8, %v2931_v47, %v5011_v44  ;;  %v6504_v44 = vld [vmem:[#allocation11_spill] sm:$0xff]  ;;  %v2738_v17 = vsel %vm2700_vm4, %v2673_v61, %v6507_v4  ;;  %v6508_v56 = vld [vmem:[#allocation10_spill] sm:$0xff]  ;;  %v2087_v61 = vrot.slane %v5790_v15, 1 }
 0x347   :  { %2316 = vrot.lane.b32.xlu1 %v5918_v0, %s4562_s13  ;;  %v3061_v53 = vsel %vm3025_vm9, %v2996_v60, %v6503_v46  ;;  %v2803_v16 = vsel %vm2765_vm5, %v2738_v17, %v6508_v56  ;;  %v6511_v60 = vld [vmem:[#allocation17_spill] sm:$0xff]  ;;  %v1900_v56 = vshrl.u32 %v5790_v15, 16 }
 0x348   :  { %v3126_v49 = vsel %vm3090_vm11, %v3061_v53, %v6504_v44  ;;  %v2868_v12 = vsel %vm2830_vm6, %v2803_v16, %v6509_v3  ;;  %v6512_v53 = vld [vmem:[#allocation22_spill] sm:$0xff]  ;;  %v1176_v3 = vmax.f32 %v5869_v21, 0.0 }
 0x349   :  { %v3670_v13 = vpop.f32.mrf.mxu2 }
 0x34a   :  { %v3808_v6 = vmax.f32 %v3670_v13, 0.0  ;;  %v5968_v63 = vpop.permute.xlu1 %2138  ;;  %v1515_v13 = vunpack.c.l.b16 %v1281_v14 }
 0x34b   :  { %2222 = vrot.lane.b32.xlu0 %v5647_v58, %s4560_s9 }
 0x34c   :  { %v3872_v19 = vpack.c.bf16 %v3808_v6, %v3808_v6  ;;  %2386 = vrot.lane.b32.xlu2 %v2083_v59, %s4561_s12  ;;  %v1058_v42 = vpop.f32.mrf.mxu3  ;;  %v2933_v6 = vsel %vm2895_vm7, %v2868_v12, %v6510_v41  ;;  %v6514_v12 = vld [vmem:[#allocation12_spill] sm:$0xff] }
 0x34d   :  { %v5977_v9 = vpop.permute.xlu0 %1977  ;;  %v2998_v46 = vsel %vm2960_vm8, %v2933_v6, %v6511_v60 }
 0x34e   :  { %3937 = vst.msk [vmem:[#allocation2 + $0x3c] sm:$0xf] %vm3921_vm12, %v3872_v19  ;;  %v5980_v31 = vpop.permute.xlu2 %2308  ;;  %v3063_v19 = vsel %vm3025_vm9, %v2998_v46, %v6512_v53  ;;  %v6517_v53 = vld [vmem:[#allocation19_spill] sm:$0xff] }
 0x34f   :  { %2554 = vrot.lane.b32.xlu1 %v5983_v28, %s4565_s22  ;;  %v3128_v42 = vsel %vm3090_vm11, %v3063_v19, %v6513_v55 }
 0x350   :  { %4397 = vmatmul.msk.bf16.gmra.mxu1 %vm3191_vm10, %v3126_v49  ;;  %v1902_v49 = vshll.u32 %v5790_v15, 16 }
 0x352   :  { %v5995_v25 = vpop.permute.xlu1 %2376  ;;  %v1904_v16 = vrot.slane %v1902_v49, 1 }
 0x353   :  { %2460 = vrot.lane.b32.xlu0 %v5724_v52, %s4563_s16 }
 0x354   :  { %2624 = vrot.lane.b32.xlu2 %v6000_v26, %s4564_s19  ;;  %v6015_v7 = vpop.f32.mrf.mxu3  ;;  %v1905_v55 = vor.u32 %v1904_v16, %v1900_v56 }
 0x355   :  { %v6006_v29 = vpop.permute.xlu0 %2306 }
 0x356   :  { %v6010_v1 = vpop.permute.xlu2 %2546 }
 0x357   :  { %2150 = vrot.lane.b32.xlu1 %v2083_v59, %s4558_s5  ;;  %v1547_v59 = vpack.c.b16 %v1515_v13, %v1515_v13  ;;  %v6515_v13 = vld [vmem:[#allocation6_spill] sm:$0xff] }
 0x358   :  { %v2675_v41 = vsel %vm524_vm1, %v6515_v13, %v6514_v12  ;;  %v6519_v13 = vld [vmem:[#allocation21_spill] sm:$0xff] }
 0x359   :  { %v3328_v47 = vpop.f32.mrf.mxu1  ;;  %v1907_v54 = vshll.u32 %v1547_v59, 16  ;;  %v2088_v20 = vrot.slane %v1547_v59, 1 }
 0x35a   :  { %v6019_v35 = vpop.permute.xlu1 %2614  ;;  %v3452_v4 = vmax.f32 %v3328_v47, 0.0  ;;  %v6516_v47 = vld [vmem:[#allocation14_spill] sm:$0xff] }
 0x35b   :  { %1989 = vrot.lane.b32.xlu0 %v5918_v0, %s4559_s8  ;;  %v2740_v60 = vsel %vm2700_vm4, %v2675_v41, %v6516_v47  ;;  %v1909_v21 = vrot.slane %v1907_v54, 1  ;;  %v6063_v49 = vsel %vm1999_vm2, %v2087_v61, %v2088_v20  ;;  %v6520_v47 = vld [vmem:[#allocation7_spill] sm:$0xff] }
 0x35c   :  { %2224 = vrot.lane.b32.xlu2 %v5724_v52, %s4560_s9  ;;  %v6039_v0 = vpop.f32.mrf.mxu3  ;;  %v2805_v19 = vsel %vm2765_vm5, %v2740_v60, %v6517_v53  ;;  %v2677_v60 = vsel %vm524_vm1, %v6520_v47, %v5891_v51 }
 0x35d   :  { %v6029_v10 = vpop.permute.xlu0 %2544  ;;  %v6076_v20 = vsel %vm1550_vm3, %v1905_v55, %v1909_v21  ;;  %v2742_v51 = vsel %vm2700_vm4, %v2677_v60, %v5839_v18 }
 0x35e   :  { %v6031_v44 = vpop.permute.xlu2 %2142 }
 0x35f   :  { %2388 = vrot.lane.b32.xlu1 %v6000_v26, %s4561_s12 }
 0x360   :  { %4398 = vmatmul.msk.bf16.gmra.mxu1 %vm3191_vm10, %v3128_v42  ;;  %v1284_v42 = vpack.c.bf16 %v1176_v3, %v1176_v3 }
 0x361   :  { %v3330_v23 = vpop.f32.mrf.mxu1 }
 0x362   :  { %v3453_v17 = vmax.f32 %v3330_v23, 0.0  ;;  %v6042_v14 = vpop.permute.xlu1 %2214  ;;  %v1516_v56 = vunpack.c.l.b16 %v1284_v42 }
 0x363   :  { %2318 = vrot.lane.b32.xlu0 %v5983_v28, %s4562_s13 }
 0x364   :  { %v3504_v6 = vpack.c.bf16 %v3453_v17, %v3452_v4  ;;  %2462 = vrot.lane.b32.xlu2 %v5790_v15, %s4563_s16  ;;  %v6067_v23 = vpop.f32.mrf.mxu3  ;;  %v6518_v4 = vld [vmem:[#allocation18_spill] sm:$0xff]  ;;  %v1548_v21 = vpack.c.b16 %v1516_v56, %v1516_v56 }
 0x365   :  { %v6055_v46 = vpop.permute.xlu0 %2140  ;;  %v2870_v17 = vsel %vm2830_vm6, %v2805_v19, %v6518_v4 }
 0x366   :  { %4424 = vmatmul.msk.bf16.gmra.mxu2 %vm524_vm1, %v3504_v6  ;;  %v6060_v59 = vpop.permute.xlu2 %2380  ;;  %v2935_v54 = vsel %vm2895_vm7, %v2870_v17, %v6519_v13  ;;  %v2807_v17 = vsel %vm2765_vm5, %v2742_v51, %v5926_v27 }
 0x367   :  { %2626 = vrot.lane.b32.xlu1 %v6063_v49, %s4564_s19  ;;  %v3000_v61 = vsel %vm2960_vm8, %v2935_v54, %v5846_v8  ;;  %v1919_v54 = vshll.u32 %v1548_v21, 16 }
 0x368   :  { %v3065_v53 = vsel %vm3025_vm9, %v3000_v61, %v5825_v38  ;;  %v1177_v38 = vmax.f32 %v5909_v32, 0.0  ;;  %v2872_v32 = vsel %vm2830_vm6, %v2807_v17, %v5911_v11 }
 0x369   :  { %v3673_v12 = vpop.f32.mrf.mxu2  ;;  %v3130_v19 = vsel %vm3090_vm11, %v3065_v53, %v5899_v30  ;;  %v1178_v30 = vmax.f32 %v5937_v50, 0.0  ;;  %v2937_v53 = vsel %vm2895_vm7, %v2872_v32, %v5859_v39 }
 0x36a   :  { %v3809_v41 = vmax.f32 %v3673_v12, 0.0  ;;  %v6073_v6 = vpop.permute.xlu1 %2452  ;;  %v1285_v27 = vpack.c.bf16 %v1177_v38, %v1177_v38  ;;  %v3002_v11 = vsel %vm2960_vm8, %v2937_v53, %v5951_v34  ;;  %v2091_v34 = vrot.slane %v1548_v21, 1 }
 0x36b   :  { %2556 = vrot.lane.b32.xlu0 %v6076_v20, %s4565_s22  ;;  %v1286_v50 = vpack.c.bf16 %v1178_v30, %v1178_v30  ;;  %v3067_v39 = vsel %vm3025_vm9, %v3002_v11, %v5942_v5  ;;  %v2090_v5 = vrot.slane %v5867_v62, 1 }
 0x36c   :  { %v3873_v16 = vpack.c.bf16 %v3809_v41, %v3809_v41  ;;  %1991 = vrot.lane.b32.xlu2 %v5983_v28, %s4559_s8  ;;  %v1914_v28 = vshll.u32 %v5867_v62, 16  ;;  %v1067_v55 = vpop.f32.mrf.mxu3  ;;  %v1912_v41 = vshrl.u32 %v5867_v62, 16  ;;  %v3132_v21 = vsel %vm3090_vm11, %v3067_v39, %v5881_v22 }
 0x36d   :  { %v6084_v3 = vpop.permute.xlu0 %2378 }
 0x36e   :  { %3938 = vst.msk [vmem:[#allocation2 + $0x40] sm:$0xf] %vm3921_vm12, %v3873_v16  ;;  %v6092_v8 = vpop.permute.xlu2 %2618  ;;  %v1916_v61 = vrot.slane %v1914_v28, 1  ;;  %v1179_v16 = vmax.f32 %v5964_v57, 0.0  ;;  %v1420_v28 = vunpack.c.l.b16 %v1285_v27  ;;  %v1421_v57 = vunpack.c.l.b16 %v1286_v50 }
 0x36f   :  { %2226 = vrot.lane.b32.xlu1 %v5790_v15, %s4560_s9  ;;  %v2092_v50 = vsel %vm1999_vm2, %v2090_v5, %v2091_v34  ;;  %v1181_v34 = vmax.f32 %v6039_v0, 0.0  ;;  %v1182_v0 = vmax.f32 %v6067_v23, 0.0 }
 0x370   :  { %4399 = vmatmul.msk.bf16.gmra.mxu1 %vm3191_vm10, %v3130_v19  ;;  %v1917_v60 = vor.u32 %v1916_v61, %v1912_v41  ;;  %v1287_v51 = vpack.c.bf16 %v1179_v16, %v1179_v16  ;;  %v6145_v41 = vpack.c.b16 %v1421_v57, %v1420_v28 }
 0x371   :  { %v3333_v42 = vpop.f32.mrf.mxu1  ;;  %v3675_v4 = vpop.f32.mrf.mxu2 }
 0x372   :  { %v3810_v12 = vmax.f32 %v3675_v4, 0.0  ;;  %v6106_v13 = vpop.permute.xlu1 %1981  ;;  %v3454_v38 = vmax.f32 %v3333_v42, 0.0  ;;  %v2679_v42 = vsel %vm524_vm1, %v5314_v2, %v5977_v9  ;;  %v1517_v61 = vunpack.c.l.b16 %v1287_v51 }
 0x373   :  { %2152 = vrot.lane.b32.xlu0 %v6000_v26, %s4558_s5  ;;  %v1921_v26 = vrot.slane %v1919_v54, 1  ;;  %v2744_v2 = vsel %vm2700_vm4, %v2679_v42, %v5968_v63  ;;  %v1926_v16 = vshll.u32 %v6145_v41, 16  ;;  %v1924_v53 = vshrl.u32 %v6145_v41, 16 }
 0x374   :  { %v3874_v18 = vpack.c.bf16 %v3810_v12, %v3810_v12  ;;  %2320 = vrot.lane.b32.xlu2 %v6076_v20, %s4562_s13  ;;  %v6125_v19 = vpop.f32.mrf.mxu3  ;;  %v1549_v9 = vpack.c.b16 %v1517_v61, %v1517_v61  ;;  %v2093_v5 = vrot.slane %v6145_v41, 1 }
 0x375   :  { %v6115_v56 = vpop.permute.xlu0 %2616  ;;  %v6134_v30 = vsel %vm1550_vm3, %v1917_v60, %v1921_v26  ;;  %v1928_v11 = vrot.slane %v1926_v16, 1 }
 0x376   :  { %3939 = vst.msk [vmem:[#allocation2 + $0x44] sm:$0xf] %vm3921_vm12, %v3874_v18  ;;  %v6119_v47 = vpop.permute.xlu2 %2218  ;;  %v1931_v63 = vshll.u32 %v1549_v9, 16  ;;  %v2094_v61 = vrot.slane %v1549_v9, 1 }
 0x377   :  { %2464 = vrot.lane.b32.xlu1 %v5867_v62, %s4563_s16  ;;  %v1929_v51 = vor.u32 %v1928_v11, %v1924_v53 }
 0x379   :  { %v3335_v55 = vpop.f32.mrf.mxu1 }
 0x37a   :  { %v3455_v4 = vmax.f32 %v3335_v55, 0.0  ;;  %v6129_v17 = vpop.permute.xlu1 %2310  ;;  %v1933_v55 = vrot.slane %v1931_v63, 1 }
 0x37b   :  { %2390 = vrot.lane.b32.xlu0 %v6063_v49, %s4561_s12 }
 0x37c   :  { %v3505_v12 = vpack.c.bf16 %v3455_v4, %v3454_v38  ;;  %2558 = vrot.lane.b32.xlu2 %v6134_v30, %s4565_s22  ;;  %v6156_v32 = vpop.f32.mrf.mxu3 }
 0x37d   :  { %v6140_v54 = vpop.permute.xlu0 %2216 }
 0x37e   :  { %4425 = vmatmul.msk.bf16.gmra.mxu2 %vm524_vm1, %v3505_v12  ;;  %v6148_v18 = vpop.permute.xlu2 %2456  ;;  %v1180_v12 = vmax.f32 %v6015_v7, 0.0  ;;  %v2681_v7 = vsel %vm524_vm1, %v5376_v33, %v5956_v43  ;;  %v1290_v43 = vpack.c.bf16 %v1182_v0, %v1182_v0 }
 0x37f   :  { %1993 = vrot.lane.b32.xlu1 %v6076_v20, %s4559_s8  ;;  %v2809_v20 = vsel %vm2765_vm5, %v2744_v2, %v5903_v48  ;;  %v2746_v2 = vsel %vm2700_vm4, %v2681_v7, %v6055_v46 }
 0x380   :  { %4400 = vmatmul.msk.bf16.gmra.mxu1 %vm3191_vm10, %v3132_v21  ;;  %v2874_v22 = vsel %vm2830_vm6, %v2809_v20, %v6006_v29  ;;  %v1288_v16 = vpack.c.bf16 %v1180_v12, %v1180_v12  ;;  %v1289_v20 = vpack.c.bf16 %v1181_v34, %v1181_v34  ;;  %v2811_v33 = vsel %vm2765_vm5, %v2746_v2, %v6042_v14 }
 0x381   :  { %v2939_v48 = vsel %vm2895_vm7, %v2874_v22, %v5995_v25  ;;  %v1183_v12 = vmax.f32 %v6125_v19, 0.0 }
 0x382   :  { %v6160_v27 = vpop.permute.xlu1 %2548  ;;  %v3004_v38 = vsel %vm2960_vm8, %v2939_v48, %v5930_v45  ;;  %v6199_v45 = vsel %vm1550_vm3, %v1929_v51, %v1933_v55  ;;  %v2166_v53 = vunpack.c.l.b16 %v1288_v16  ;;  %v2167_v11 = vunpack.c.l.b16 %v1289_v20 }
 0x383   :  { %2628 = vrot.lane.b32.xlu0 %v2092_v50, %s4564_s19  ;;  %v3069_v4 = vsel %vm3025_vm9, %v3004_v38, %v6029_v10  ;;  %v2237_v55 = vunpack.c.l.b16 %v1290_v43  ;;  %v1291_v7 = vpack.c.bf16 %v1183_v12, %v1183_v12 }
 0x384   :  { %2154 = vrot.lane.b32.xlu2 %v6063_v49, %s4558_s5  ;;  %v6180_v28 = vpop.f32.mrf.mxu3  ;;  %v3134_v10 = vsel %vm3090_vm11, %v3069_v4, %v6019_v35  ;;  %v6218_v35 = vsel %vm1999_vm2, %v2093_v5, %v2094_v61  ;;  %v1184_v61 = vmax.f32 %v6156_v32, 0.0 }
 0x385   :  { %v6171_v26 = vpop.permute.xlu0 %2454 }
 0x386   :  { %v6173_v60 = vpop.permute.xlu2 %1985  ;;  %v1292_v16 = vpack.c.bf16 %v1184_v61, %v1184_v61 }
 0x387   :  { %2322 = vrot.lane.b32.xlu1 %v6134_v30, %s4562_s13 }
 0x389   :  { %v3678_v49 = vpop.f32.mrf.mxu2 }
 0x38a   :  { %v3811_v57 = vmax.f32 %v3678_v49, 0.0  ;;  %v6182_v29 = vpop.permute.xlu1 %2144  ;;  %v2876_v49 = vsel %vm2830_vm6, %v2811_v33, %v5980_v31 }
 0x38b   :  { %2228 = vrot.lane.b32.xlu0 %v5867_v62, %s4560_s9  ;;  %v2941_v14 = vsel %vm2895_vm7, %v2876_v49, %v6084_v3  ;;  %v2683_v3 = vsel %vm524_vm1, %v5424_v24, %v6106_v13  ;;  %v2404_v49 = vunpack.c.l.b16 %v1291_v7 }
 0x38c   :  { %v3875_v39 = vpack.c.bf16 %v3811_v57, %v3811_v57  ;;  %2392 = vrot.lane.b32.xlu2 %v2092_v50, %s4561_s12  ;;  %v1076_v21 = vpop.f32.mrf.mxu3  ;;  %v6234_v57 = vpack.c.b16 %v2167_v11, %v2166_v53  ;;  %v3006_v4 = vsel %vm2960_vm8, %v2941_v14, %v6073_v6  ;;  %v2748_v24 = vsel %vm2700_vm4, %v2683_v3, %v6031_v44 }
 0x38d   :  { %v6191_v25 = vpop.permute.xlu0 %1983  ;;  %v1185_v44 = vmax.f32 %v6180_v28, 0.0  ;;  %v2405_v14 = vunpack.c.l.b16 %v1292_v16 }
 0x38e   :  { %3940 = vst.msk [vmem:[#allocation2 + $0x48] sm:$0xf] %vm3921_vm12, %v3875_v39  ;;  %v6196_v42 = vpop.permute.xlu2 %2314  ;;  %v2239_v39 = vpack.c.b16 %v2237_v55, %v2237_v55  ;;  %v2255_v6 = vshll.u32 %v6234_v57, 16  ;;  %v2331_v19 = vrot.slane %v6234_v57, 1  ;;  %v2253_v5 = vshrl.u32 %v6234_v57, 16 }
 0x38f   :  { %2560 = vrot.lane.b32.xlu1 %v6199_v45, %s4565_s22  ;;  %v1293_v28 = vpack.c.bf16 %v1185_v44, %v1185_v44  ;;  %v2407_v12 = vpack.c.b16 %v2405_v14, %v2404_v49 }
 0x390   :  { %4401 = vmatmul.msk.bf16.gmra.mxu1 %vm3191_vm10, %v3134_v10  ;;  %v2260_v10 = vshll.u32 %v2239_v39, 16  ;;  %v2257_v2 = vrot.slane %v2255_v6, 1 }
 0x391   :  { %v3680_v9 = vpop.f32.mrf.mxu2  ;;  %v2475_v6 = vunpack.c.l.b16 %v1293_v28 }
 0x392   :  { %v3812_v22 = vmax.f32 %v3680_v9, 0.0  ;;  %v6213_v63 = vpop.permute.xlu1 %2382  ;;  %v2258_v11 = vor.u32 %v2257_v2, %v2253_v5 }
 0x393   :  { %2466 = vrot.lane.b32.xlu0 %v6145_v41, %s4563_s16 }
 0x394   :  { %v3876_v23 = vpack.c.bf16 %v3812_v22, %v3812_v22  ;;  %2630 = vrot.lane.b32.xlu2 %v6218_v35, %s4564_s19 }
 0x395   :  { %v6224_v46 = vpop.permute.xlu0 %2312 }
 0x396   :  { %3941 = vst.msk [vmem:[#allocation2 + $0x4c] sm:$0xf] %vm3921_vm12, %v3876_v23  ;;  %v6227_v48 = vpop.permute.xlu2 %2552  ;;  %v2262_v23 = vrot.slane %v2260_v10, 1 }
 0x397   :  { %2156 = vrot.lane.b32.xlu1 %v2092_v50, %s4558_s5  ;;  %v3071_v50 = vsel %vm3025_vm9, %v3006_v4, %v6010_v1  ;;  %v2332_v1 = vrot.slane %v2239_v39, 1 }
 0x399   :  { %v2333_v53 = vsel %vm1999_vm2, %v2331_v19, %v2332_v1 }
 0x39a   :  { %v3338_v51 = vpop.f32.mrf.mxu1  ;;  %v6236_v38 = vpop.permute.xlu1 %2620 }
 0x39b   :  { %1995 = vrot.lane.b32.xlu0 %v6134_v30, %s4559_s8  ;;  %v3136_v30 = vsel %vm3090_vm11, %v3071_v50, %v6115_v56  ;;  %v2813_v56 = vsel %vm2765_vm5, %v2748_v24, %v6140_v54  ;;  %v3456_v9 = vmax.f32 %v3338_v51, 0.0  ;;  %v2263_v50 = vsel %vm1550_vm3, %v2258_v11, %v2262_v23 }
 0x39c   :  { %2230 = vrot.lane.b32.xlu2 %v6145_v41, %s4560_s9  ;;  %v2878_v54 = vsel %vm2830_vm6, %v2813_v56, %v6129_v17  ;;  %v2477_v24 = vpack.c.b16 %v2475_v6, %v2475_v6 }
 0x39d   :  { %v6244_v31 = vpop.permute.xlu0 %2550  ;;  %v2943_v55 = vsel %vm2895_vm7, %v2878_v54, %v6060_v59 }
 0x39e   :  { %v6252_v34 = vpop.permute.xlu2 %2148  ;;  %v3008_v51 = vsel %vm2960_vm8, %v2943_v55, %v6171_v26  ;;  %v2685_v26 = vsel %vm524_vm1, %v5479_v40, %v6191_v25  ;;  %v2498_v5 = vshll.u32 %v2477_v24, 16  ;;  %v2491_v40 = vshrl.u32 %v2407_v12, 16 }
 0x39f   :  { %2394 = vrot.lane.b32.xlu1 %v6218_v35, %s4561_s12  ;;  %v2570_v54 = vrot.slane %v2477_v24, 1 }
 0x3a0   :  { %4402 = vmatmul.msk.bf16.gmra.mxu1 %vm3191_vm10, %v3136_v30  ;;  %v3073_v30 = vsel %vm3025_vm9, %v3008_v51, %v6160_v27  ;;  %v2493_v27 = vshll.u32 %v2407_v12, 16 }
 0x3a1   :  { %v3683_v13 = vpop.f32.mrf.mxu2  ;;  %v3138_v1 = vsel %vm3090_vm11, %v3073_v30, %v6092_v8 }
 0x3a2   :  { %v3813_v32 = vmax.f32 %v3683_v13, 0.0  ;;  %v3340_v0 = vpop.f32.mrf.mxu1  ;;  %v6267_v21 = vpop.permute.xlu1 %2220  ;;  %v2495_v25 = vrot.slane %v2493_v27, 1 }
 0x3a3   :  { %v3457_v20 = vmax.f32 %v3340_v0, 0.0  ;;  %2324 = vrot.lane.b32.xlu0 %v6199_v45, %s4562_s13  ;;  %v2500_v0 = vrot.slane %v2498_v5, 1 }
 0x3a4   :  { %v3877_v22 = vpack.c.bf16 %v3813_v32, %v3813_v32  ;;  %2468 = vrot.lane.b32.xlu2 %v6234_v57, %s4563_s16  ;;  %v2496_v2 = vor.u32 %v2495_v25, %v2491_v40 }
 0x3a5   :  { %v3506_v33 = vpack.c.bf16 %v3457_v20, %v3456_v9  ;;  %v6276_v43 = vpop.permute.xlu0 %2146 }
 0x3a6   :  { %3942 = vst.msk [vmem:[#allocation2 + $0x50] sm:$0xf] %vm3921_vm12, %v3877_v22  ;;  %v6284_v17 = vpop.permute.xlu2 %2386 }
 0x3a7   :  { %4426 = vmatmul.msk.bf16.gmra.mxu2 %vm524_vm1, %v3506_v33  ;;  %2632 = vrot.lane.b32.xlu1 %v2333_v53, %s4564_s19  ;;  %v2569_v33 = vrot.slane %v2407_v12, 1 }
 0x3a9   :  { %v3685_v4 = vpop.f32.mrf.mxu2  ;;  %v2571_v11 = vsel %vm1999_vm2, %v2569_v33, %v2570_v54 }
 0x3aa   :  { %v3814_v39 = vmax.f32 %v3685_v4, 0.0  ;;  %v6288_v3 = vpop.permute.xlu1 %2458 }
 0x3ab   :  { %2562 = vrot.lane.b32.xlu0 %v2263_v50, %s4565_s22 }
 0x3ac   :  { %v3878_v61 = vpack.c.bf16 %v3814_v39, %v3814_v39  ;;  %1997 = vrot.lane.b32.xlu2 %v6199_v45, %s4559_s8  ;;  %v2750_v45 = vsel %vm2700_vm4, %v2685_v26, %v6182_v29 }
 0x3ad   :  { %v3343_v59 = vpop.f32.mrf.mxu1  ;;  %v2385_v10 = vpop.permute.xlu0 %2384 }
 0x3ae   :  { %3943 = vst.msk [vmem:[#allocation2 + $0x54] sm:$0xf] %vm3921_vm12, %v3878_v61  ;;  %v6307_v13 = vpop.permute.xlu2 %2624  ;;  %v3458_v29 = vmax.f32 %v3343_v59, 0.0 }
 0x3af   :  { %2232 = vrot.lane.b32.xlu1 %v6234_v57, %s4560_s9  ;;  %v2815_v57 = vsel %vm2765_vm5, %v2750_v45, %v6119_v47 }
 0x3b0   :  { %4403 = vmatmul.msk.bf16.gmra.mxu1 %vm3191_vm10, %v3138_v1  ;;  %v2880_v8 = vsel %vm2830_vm6, %v2815_v57, %v6224_v46  ;;  %v2501_v46 = vsel %vm1550_vm3, %v2496_v2, %v2500_v0 }
 0x3b2   :  { %v1988_v19 = vpop.permute.xlu1 %1987 }
 0x3b3   :  { %2158 = vrot.lane.b32.xlu0 %v6218_v35, %s4558_s5  ;;  %v2945_v35 = vsel %vm2895_vm7, %v2880_v8, %v6213_v63  ;;  %v2689_v61 = vsel %vm524_vm1, %v5581_v36, %v1988_v19  ;;  %s3990_s5 = sshll.u32 %s4566_s0, 4  ;;  %s3991_s5 = int_to_ptr.vmem [resolvable:$true] %s3990_s5 }
 0x3b4   :  { %2326 = vrot.lane.b32.xlu2 %v2263_v50, %s4562_s13  ;;  %v3010_v47 = vsel %vm2960_vm8, %v2945_v35, %v6148_v18  ;;  %v2687_v18 = vsel %vm524_vm1, %v5547_v37, %v6173_v60  ;;  %s4567_s13 = smov 4  }
 0x3b5   :  { %v3345_v56 = vpop.f32.mrf.mxu1  ;;  %v2623_v7 = vpop.permute.xlu0 %2622  ;;  %v3075_v20 = vsel %vm3025_vm9, %v3010_v47, %v6244_v31  ;;  %v2752_v31 = vsel %vm2700_vm4, %v2687_v18, %v6276_v43 }
 0x3b6   :  { %v3459_v32 = vmax.f32 %v3345_v56, 0.0  ;;  %v6326_v44 = vpop.permute.xlu2 %2224  ;;  %v3140_v23 = vsel %vm3090_vm11, %v3075_v20, %v6236_v38  ;;  %v2817_v49 = vsel %vm2765_vm5, %v2752_v31, %v6267_v21 }
 0x3b7   :  { %2470 = vrot.lane.b32.xlu1 %v2407_v12, %s4563_s16  ;;  %v2882_v37 = vsel %vm2830_vm6, %v2817_v49, %v6196_v42 }
 0x3b8   :  { %v3507_v9 = vpack.c.bf16 %v3459_v32, %v3458_v29  ;;  %v2947_v60 = vsel %vm2895_vm7, %v2882_v37, %v2385_v10 }
 0x3b9   :  { %v3012_v50 = vsel %vm2960_vm8, %v2947_v60, %v6288_v3  ;;  %v2754_v3 = vsel %vm2700_vm4, %v2689_v61, %v6252_v34 }
 0x3ba   :  { %v2317_v16 = vpop.permute.xlu1 %2316  ;;  %4427 = vmatmul.msk.bf16.gmra.mxu2 %vm524_vm1, %v3507_v9  ;;  %v3077_v42 = vsel %vm3025_vm9, %v3012_v50, %v6227_v48 }
 0x3bb   :  { %2396 = vrot.lane.b32.xlu0 %v2333_v53, %s4561_s12  ;;  %v3142_v59 = vsel %vm3090_vm11, %v3077_v42, %v2623_v7  ;;  %s3992_s12 = sshll.u32 %s6481_s4, 4  ;;  %s3993_s12 = int_to_ptr.hbm [resolvable:$true] %s3992_s12 }
 0x3bc   :  { %2564 = vrot.lane.b32.xlu2 %v2501_v46, %s4565_s22 }
 0x3bd   :  { %v3348_v22 = vpop.f32.mrf.mxu1  ;;  %v2223_v63 = vpop.permute.xlu0 %2222 }
 0x3be   :  { %v3460_v38 = vmax.f32 %v3348_v22, 0.0  ;;  %v2463_v55 = vpop.permute.xlu2 %2462  ;;  %v2819_v26 = vsel %vm2765_vm5, %v2754_v3, %v2223_v63 }
 0x3bf   :  { %v2884_v36 = vsel %vm2830_vm6, %v2819_v26, %v2317_v16 }
 0x3c0   :  { %4404 = vmatmul.msk.bf16.gmra.mxu1 %vm3191_vm10, %v3140_v23  ;;  %v2949_v25 = vsel %vm2895_vm7, %v2884_v36, %v6284_v17 }
 0x3c2   :  { %v2555_v53 = vpop.permute.xlu1 %2554 }
 0x3c3   :  { %2634 = vrot.lane.b32.xlu0 %v2571_v11, %s4564_s19 }
 0x3c5   :  { %v3350_v14 = vpop.f32.mrf.mxu1  ;;  %v2461_v28 = vpop.permute.xlu0 %2460 }
 0x3c6   :  { %v3461_v51 = vmax.f32 %v3350_v14, 0.0  ;;  %v1992_v10 = vpop.permute.xlu2 %1991  ;;  %v3014_v34 = vsel %vm2960_vm8, %v2949_v25, %v2461_v28 }
 0x3c7   :  { %v3079_v7 = vsel %vm3025_vm9, %v3014_v34, %v2555_v53  ;;  %v2693_v28 = vsel %vm524_vm1, %v5724_v52, %v1992_v10 }
 0x3c8   :  { %v3508_v4 = vpack.c.bf16 %v3461_v51, %v3460_v38  ;;  %v3144_v2 = vsel %vm3090_vm11, %v3079_v7, %v6307_v13 }
 0x3c9   :  { %v3688_v43 = vpop.f32.mrf.mxu2 }
 0x3ca   :  { %v2151_v39 = vpop.permute.xlu1 %2150  ;;  %4428 = vmatmul.msk.bf16.gmra.mxu2 %vm524_vm1, %v3508_v4  ;;  %v3815_v12 = vmax.f32 %v3688_v43, 0.0 }
 0x3cc   :  { %v3879_v21 = vpack.c.bf16 %v3815_v12, %v3815_v12 }
 0x3cd   :  { %v3353_v6 = vpop.f32.mrf.mxu1  ;;  %v1990_v30 = vpop.permute.xlu0 %1989 }
 0x3ce   :  { %3944 = vst.msk [vmem:[#allocation2 + $0x58] sm:$0xf] %vm3921_vm12, %v3879_v21  ;;  %v3462_v5 = vmax.f32 %v3353_v6, 0.0  ;;  %v2321_v8 = vpop.permute.xlu2 %2320  ;;  %v2691_v0 = vsel %vm524_vm1, %v5647_v58, %v1990_v30 }
 0x3cf   :  { %v2756_v17 = vsel %vm2700_vm4, %v2691_v0, %v2151_v39 }
 0x3d0   :  { %4405 = vmatmul.msk.bf16.gmra.mxu1 %vm3191_vm10, %v3142_v59  ;;  %v2821_v9 = vsel %vm2765_vm5, %v2756_v17, %v6326_v44 }
 0x3d1   :  { %v3690_v24 = vpop.f32.mrf.mxu2 }
 0x3d2   :  { %v2389_v1 = vpop.permute.xlu1 %2388  ;;  %v3816_v27 = vmax.f32 %v3690_v24, 0.0 }
 0x3d4   :  { %v3880_v45 = vpack.c.bf16 %v3816_v27, %v3816_v27 }
 0x3d5   :  { %v3355_v19 = vpop.f32.mrf.mxu1  ;;  %v2319_v48 = vpop.permute.xlu0 %2318 }
 0x3d6   :  { %v3463_v40 = vmax.f32 %v3355_v19, 0.0  ;;  %3945 = vst.msk [vmem:[#allocation2 + $0x5c] sm:$0xf] %vm3921_vm12, %v3880_v45  ;;  %v2559_v16 = vpop.permute.xlu2 %2558  ;;  %v2886_v47 = vsel %vm2830_vm6, %v2821_v9, %v2319_v48 }
 0x3d7   :  { %v2951_v58 = vsel %vm2895_vm7, %v2886_v47, %v2389_v1 }
 0x3d8   :  { %v3509_v57 = vpack.c.bf16 %v3463_v40, %v3462_v5  ;;  %v3016_v18 = vsel %vm2960_vm8, %v2951_v58, %v2463_v55 }
 0x3da   :  { %v2627_v56 = vpop.permute.xlu1 %2626  ;;  %4429 = vmatmul.msk.bf16.gmra.mxu2 %vm524_vm1, %v3509_v57 }
 0x3dd   :  { %v3358_v29 = vpop.f32.mrf.mxu1  ;;  %v2557_v32 = vpop.permute.xlu0 %2556 }
 0x3de   :  { %v3464_v22 = vmax.f32 %v3358_v29, 0.0  ;;  %v3081_v31 = vsel %vm3025_vm9, %v3016_v18, %v2557_v32  ;;  %v2155_v49 = vpop.permute.xlu2 %2154 }
 0x3df   :  { %v3146_v14 = vsel %vm3090_vm11, %v3081_v31, %v2627_v56 }
 0x3e0   :  { %4406 = vmatmul.msk.bf16.gmra.mxu1 %vm3191_vm10, %v3144_v2 }
 0x3e2   :  { %v2227_v35 = vpop.permute.xlu1 %2226 }
 0x3e5   :  { %v3360_v46 = vpop.f32.mrf.mxu1  ;;  %v2153_v20 = vpop.permute.xlu0 %2152 }
 0x3e6   :  { %v3465_v63 = vmax.f32 %v3360_v46, 0.0  ;;  %v2758_v38 = vsel %vm2700_vm4, %v2693_v28, %v2153_v20  ;;  %v2393_v6 = vpop.permute.xlu2 %2392 }
 0x3e7   :  { %v2823_v60 = vsel %vm2765_vm5, %v2758_v38, %v2227_v35 }
 0x3e8   :  { %v3510_v54 = vpack.c.bf16 %v3465_v63, %v3464_v22  ;;  %v2888_v21 = vsel %vm2830_vm6, %v2823_v60, %v2321_v8 }
 0x3e9   :  { %v3693_v33 = vpop.f32.mrf.mxu2 }
 0x3ea   :  { %v3817_v13 = vmax.f32 %v3693_v33, 0.0  ;;  %v2465_v23 = vpop.permute.xlu1 %2464  ;;  %4430 = vmatmul.msk.bf16.gmra.mxu2 %vm524_vm1, %v3510_v54 }
 0x3ec   :  { %v3881_v44 = vpack.c.bf16 %v3817_v13, %v3817_v13 }
 0x3ed   :  { %v3363_v53 = vpop.f32.mrf.mxu1  ;;  %v2391_v11 = vpop.permute.xlu0 %2390 }
 0x3ee   :  { %3946 = vst.msk [vmem:[#allocation2 + $0x60] sm:$0xf] %vm3921_vm12, %v3881_v44  ;;  %v3466_v50 = vmax.f32 %v3363_v53, 0.0  ;;  %v2953_v52 = vsel %vm2895_vm7, %v2888_v21, %v2391_v11  ;;  %v2631_v36 = vpop.permute.xlu2 %2630 }
 0x3ef   :  { %v3018_v42 = vsel %vm2960_vm8, %v2953_v52, %v2465_v23 }
 0x3f0   :  { %4407 = vmatmul.msk.bf16.gmra.mxu1 %vm3191_vm10, %v3146_v14  ;;  %v3083_v26 = vsel %vm3025_vm9, %v3018_v42, %v2559_v16 }
 0x3f1   :  { %v3695_v51 = vpop.f32.mrf.mxu2 }
 0x3f2   :  { %v3818_v37 = vmax.f32 %v3695_v51, 0.0  ;;  %v1994_v55 = vpop.permute.xlu1 %1993 }
 0x3f3   :  { %v2695_v3 = vsel %vm524_vm1, %v5790_v15, %v1994_v55 }
 0x3f4   :  { %v3882_v4 = vpack.c.bf16 %v3818_v37, %v3818_v37  ;;  %v2760_v1 = vsel %vm2700_vm4, %v2695_v3, %v2155_v49 }
 0x3f5   :  { %v3365_v43 = vpop.f32.mrf.mxu1  ;;  %v2629_v39 = vpop.permute.xlu0 %2628 }
 0x3f6   :  { %3947 = vst.msk [vmem:[#allocation2 + $0x64] sm:$0xf] %vm3921_vm12, %v3882_v4  ;;  %v3467_v12 = vmax.f32 %v3365_v43, 0.0  ;;  %v3148_v24 = vsel %vm3090_vm11, %v3083_v26, %v2629_v39  ;;  %v2231_v2 = vpop.permute.xlu2 %2230 }
 0x3f8   :  { %v3511_v30 = vpack.c.bf16 %v3467_v12, %v3466_v50 }
 0x3fa   :  { %v2323_v61 = vpop.permute.xlu1 %2322  ;;  %4431 = vmatmul.msk.bf16.gmra.mxu2 %vm524_vm1, %v3511_v30 }
 0x3fd   :  { %v3368_v59 = vpop.f32.mrf.mxu1  ;;  %v2229_v10 = vpop.permute.xlu0 %2228 }
 0x3fe   :  { %v2825_v45 = vsel %vm2765_vm5, %v2760_v1, %v2229_v10  ;;  %v3468_v15 = vmax.f32 %v3368_v59, 0.0  ;;  %v2469_v54 = vpop.permute.xlu2 %2468 }
 0x3ff   :  { %v2890_v40 = vsel %vm2830_vm6, %v2825_v45, %v2323_v61 }
 0x400   :  { %4408 = vmatmul.msk.bf16.gmra.mxu1 %vm3191_vm10, %v3148_v24  ;;  %v2955_v56 = vsel %vm2895_vm7, %v2890_v40, %v2393_v6 }
 0x401   :  { %v3698_v27 = vpop.f32.mrf.mxu2 }
 0x402   :  { %v3819_v19 = vmax.f32 %v3698_v27, 0.0  ;;  %v2561_v48 = vpop.permute.xlu1 %2560 }
 0x404   :  { %v3883_v5 = vpack.c.bf16 %v3819_v19, %v3819_v19 }
 0x405   :  { %v3370_v25 = vpop.f32.mrf.mxu1  ;;  %v2467_v57 = vpop.permute.xlu0 %2466 }
 0x406   :  { %3948 = vst.msk [vmem:[#allocation2 + $0x68] sm:$0xf] %vm3921_vm12, %v3883_v5  ;;  %v3469_v34 = vmax.f32 %v3370_v25, 0.0  ;;  %v3020_v7 = vsel %vm2960_vm8, %v2955_v56, %v2467_v57  ;;  %v1998_v38 = vpop.permute.xlu2 %1997 }
 0x407   :  { %v3085_v17 = vsel %vm3025_vm9, %v3020_v7, %v2561_v48  ;;  %v2699_v4 = vsel %vm524_vm1, %v6145_v41, %v1998_v38 }
 0x408   :  { %v3512_v8 = vpack.c.bf16 %v3469_v34, %v3468_v15  ;;  %v3150_v47 = vsel %vm3090_vm11, %v3085_v17, %v2631_v36 }
 0x409   :  { %v3700_v29 = vpop.f32.mrf.mxu2 }
 0x40a   :  { %v3820_v32 = vmax.f32 %v3700_v29, 0.0  ;;  %v2157_v0 = vpop.permute.xlu1 %2156  ;;  %4432 = vmatmul.msk.bf16.gmra.mxu2 %vm524_vm1, %v3512_v8 }
 0x40c   :  { %v3884_v35 = vpack.c.bf16 %v3820_v32, %v3820_v32 }
 0x40d   :  { %v3373_v9 = vpop.f32.mrf.mxu1  ;;  %v1996_v16 = vpop.permute.xlu0 %1995 }
 0x40e   :  { %3949 = vst.msk [vmem:[#allocation2 + $0x6c] sm:$0xf] %vm3921_vm12, %v3884_v35  ;;  %v2697_v46 = vsel %vm524_vm1, %v5867_v62, %v1996_v16  ;;  %v3470_v33 = vmax.f32 %v3373_v9, 0.0  ;;  %v2327_v12 = vpop.permute.xlu2 %2326 }
 0x40f   :  { %v2762_v22 = vsel %vm2700_vm4, %v2697_v46, %v2157_v0 }
 0x410   :  { %4409 = vmatmul.msk.bf16.gmra.mxu1 %vm3191_vm10, %v3150_v47  ;;  %v2827_v23 = vsel %vm2765_vm5, %v2762_v22, %v2231_v2 }
 0x412   :  { %v2395_v20 = vpop.permute.xlu1 %2394 }
 0x415   :  { %v3375_v63 = vpop.f32.mrf.mxu1  ;;  %v2325_v58 = vpop.permute.xlu0 %2324 }
 0x416   :  { %v3471_v13 = vmax.f32 %v3375_v63, 0.0  ;;  %v2892_v18 = vsel %vm2830_vm6, %v2827_v23, %v2325_v58  ;;  %v2565_v1 = vpop.permute.xlu2 %2564 }
 0x417   :  { %v2957_v44 = vsel %vm2895_vm7, %v2892_v18, %v2395_v20 }
 0x418   :  { %v3513_v31 = vpack.c.bf16 %v3471_v13, %v3470_v33  ;;  %v3022_v11 = vsel %vm2960_vm8, %v2957_v44, %v2469_v54 }
 0x41a   :  { %4433 = vmatmul.msk.bf16.gmra.mxu2 %vm524_vm1, %v3513_v31  ;;  %v2633_v62 = vpop.permute.xlu1 %2632 }
 0x41d   :  { %v3378_v53 = vpop.f32.mrf.mxu1  ;;  %v2563_v49 = vpop.permute.xlu0 %2562 }
 0x41e   :  { %v3087_v14 = vsel %vm3025_vm9, %v3022_v11, %v2563_v49  ;;  %v3472_v55 = vmax.f32 %v3378_v53, 0.0 }
 0x41f   :  { %v3152_v28 = vsel %vm3090_vm11, %v3087_v14, %v2633_v62 }
 0x420   :  { %4410 = vmatmul.msk.bf16.gmra.mxu1 %vm3191_vm10, %v3152_v28 }
 0x422   :  { %v2233_v43 = vpop.permute.xlu1 %2232 }
 0x425   :  { %v3380_v51 = vpop.f32.mrf.mxu1  ;;  %v2159_v37 = vpop.permute.xlu0 %2158 }
 0x426   :  { %v3473_v60 = vmax.f32 %v3380_v51, 0.0  ;;  %v2764_v50 = vsel %vm2700_vm4, %v2699_v4, %v2159_v37 }
 0x427   :  { %v2829_v6 = vsel %vm2765_vm5, %v2764_v50, %v2233_v43 }
 0x428   :  { %v3514_v39 = vpack.c.bf16 %v3473_v60, %v3472_v55  ;;  %v2894_v59 = vsel %vm2830_vm6, %v2829_v6, %v2327_v12 }
 0x42a   :  { %v3703_v21 = vpop.f32.mrf.mxu2  ;;  %4434 = vmatmul.msk.bf16.gmra.mxu2 %vm524_vm1, %v3514_v39  ;;  %v2471_v10 = vpop.permute.xlu1 %2470 }
 0x42b   :  { %v3821_v52 = vmax.f32 %v3703_v21, 0.0 }
 0x42d   :  { %v3885_v30 = vpack.c.bf16 %v3821_v52, %v3821_v52  ;;  %v3383_v61 = vpop.f32.mrf.mxu1  ;;  %v2397_v42 = vpop.permute.xlu0 %2396 }
 0x42e   :  { %v2959_v41 = vsel %vm2895_vm7, %v2894_v59, %v2397_v42  ;;  %v3474_v48 = vmax.f32 %v3383_v61, 0.0 }
 0x42f   :  { %3950 = vst.msk [vmem:[#allocation2 + $0x70] sm:$0xf] %vm3921_vm12, %v3885_v30  ;;  %v3024_v3 = vsel %vm2960_vm8, %v2959_v41, %v2471_v10 }
 0x430   :  { %v3089_v45 = vsel %vm3025_vm9, %v3024_v3, %v2565_v1 }
 0x432   :  { %v3705_v26 = vpop.f32.mrf.mxu2 }
 0x433   :  { %v3822_v24 = vmax.f32 %v3705_v26, 0.0 }
 0x435   :  { %v3886_v27 = vpack.c.bf16 %v3822_v24, %v3822_v24  ;;  %v3385_v36 = vpop.f32.mrf.mxu1  ;;  %v2635_v19 = vpop.permute.xlu0 %2634 }
 0x436   :  { %v3475_v5 = vmax.f32 %v3385_v36, 0.0  ;;  %v3154_v40 = vsel %vm3090_vm11, %v3089_v45, %v2635_v19 }
 0x437   :  { %3951 = vst.msk [vmem:[#allocation2 + $0x74] sm:$0xf] %vm3921_vm12, %v3886_v27  ;;  %4411 = vmatmul.msk.bf16.gmra.mxu1 %vm3191_vm10, %v3154_v40 }
 0x438   :  { %v3515_v25 = vpack.c.bf16 %v3475_v5, %v3474_v48 }
 0x43a   :  { %4435 = vmatmul.msk.bf16.gmra.mxu2 %vm524_vm1, %v3515_v25 }
 0x43d   :  { %v3388_v57 = vpop.f32.mrf.mxu1  ;;  %v3708_v15 = vpop.f32.mrf.mxu2 }
 0x43e   :  { %v3823_v34 = vmax.f32 %v3708_v15, 0.0  ;;  %v3476_v29 = vmax.f32 %v3388_v57, 0.0 }
 0x440   :  { %v3887_v8 = vpack.c.bf16 %v3823_v34, %v3823_v34 }
 0x442   :  { %3952 = vst.msk [vmem:[#allocation2 + $0x78] sm:$0xf] %vm3921_vm12, %v3887_v8 }
 0x445   :  { %v3390_v56 = vpop.f32.mrf.mxu1  ;;  %v3710_v7 = vpop.f32.mrf.mxu2 }
 0x446   :  { %v3477_v32 = vmax.f32 %v3390_v56, 0.0  ;;  %v3824_v0 = vmax.f32 %v3710_v7, 0.0 }
 0x448   :  { %v3516_v2 = vpack.c.bf16 %v3477_v32, %v3476_v29  ;;  %v3888_v17 = vpack.c.bf16 %v3824_v0, %v3824_v0 }
 0x44a   :  { %3953 = vst.msk [vmem:[#allocation2 + $0x7c] sm:$0xf] %vm3921_vm12, %v3888_v17  ;;  %4436 = vmatmul.msk.bf16.gmra.mxu2 %vm524_vm1, %v3516_v2 }
 0x44d   :  { %v3393_v35 = vpop.f32.mrf.mxu1  ;;  %v3713_v9 = vpop.f32.mrf.mxu2 }
 0x44e   :  { %v3825_v16 = vmax.f32 %v3713_v9, 0.0  ;;  %v3478_v22 = vmax.f32 %v3393_v35, 0.0 }
 0x450   :  { %v3889_v47 = vpack.c.bf16 %v3825_v16, %v3825_v16 }
 0x452   :  { %3954 = vst.msk [vmem:[#allocation2 + $0x80] sm:$0xf] %vm3921_vm12, %v3889_v47 }
 0x455   :  { %v3395_v46 = vpop.f32.mrf.mxu1  ;;  %v3715_v20 = vpop.f32.mrf.mxu2 }
 0x456   :  { %v3479_v63 = vmax.f32 %v3395_v46, 0.0  ;;  %v3826_v58 = vmax.f32 %v3715_v20, 0.0 }
 0x458   :  { %v3517_v54 = vpack.c.bf16 %v3479_v63, %v3478_v22  ;;  %v3890_v33 = vpack.c.bf16 %v3826_v58, %v3826_v58 }
 0x45a   :  { %3955 = vst.msk [vmem:[#allocation2 + $0x84] sm:$0xf] %vm3921_vm12, %v3890_v33  ;;  %4437 = vmatmul.msk.bf16.gmra.mxu2 %vm524_vm1, %v3517_v54 }
 0x45d   :  { %v3398_v13 = vpop.f32.mrf.mxu1  ;;  %v3718_v23 = vpop.f32.mrf.mxu2 }
 0x45e   :  { %v3827_v18 = vmax.f32 %v3718_v23, 0.0  ;;  %v3480_v53 = vmax.f32 %v3398_v13, 0.0 }
 0x460   :  { %v3891_v31 = vpack.c.bf16 %v3827_v18, %v3827_v18 }
 0x462   :  { %3956 = vst.msk [vmem:[#allocation2 + $0x88] sm:$0xf] %vm3921_vm12, %v3891_v31 }
 0x465   :  { %v3400_v44 = vpop.f32.mrf.mxu1  ;;  %v3720_v62 = vpop.f32.mrf.mxu2 }
 0x466   :  { %v3481_v11 = vmax.f32 %v3400_v44, 0.0  ;;  %v3828_v49 = vmax.f32 %v3720_v62, 0.0 }
 0x468   :  { %v3518_v14 = vpack.c.bf16 %v3481_v11, %v3480_v53  ;;  %v3892_v28 = vpack.c.bf16 %v3828_v49, %v3828_v49 }
 0x46a   :  { %3957 = vst.msk [vmem:[#allocation2 + $0x8c] sm:$0xf] %vm3921_vm12, %v3892_v28  ;;  %4438 = vmatmul.msk.bf16.gmra.mxu2 %vm524_vm1, %v3518_v14 }
 0x46d   :  { %v3403_v38 = vpop.f32.mrf.mxu1  ;;  %v3723_v51 = vpop.f32.mrf.mxu2 }
 0x46e   :  { %v3829_v37 = vmax.f32 %v3723_v51, 0.0  ;;  %v3482_v43 = vmax.f32 %v3403_v38, 0.0 }
 0x470   :  { %v3893_v55 = vpack.c.bf16 %v3829_v37, %v3829_v37 }
 0x472   :  { %3958 = vst.msk [vmem:[#allocation2 + $0x90] sm:$0xf] %vm3921_vm12, %v3893_v55 }
 0x475   :  { %v3405_v60 = vpop.f32.mrf.mxu1  ;;  %v3725_v4 = vpop.f32.mrf.mxu2 }
 0x476   :  { %v3483_v39 = vmax.f32 %v3405_v60, 0.0  ;;  %v3830_v50 = vmax.f32 %v3725_v4, 0.0 }
 0x478   :  { %v3519_v12 = vpack.c.bf16 %v3483_v39, %v3482_v43  ;;  %v3894_v21 = vpack.c.bf16 %v3830_v50, %v3830_v50 }
 0x47a   :  { %3959 = vst.msk [vmem:[#allocation2 + $0x94] sm:$0xf] %vm3921_vm12, %v3894_v21  ;;  %4439 = vmatmul.msk.bf16.gmra.mxu2 %vm524_vm1, %v3519_v12 }
 0x47d   :  { %v3408_v6 = vpop.f32.mrf.mxu1  ;;  %v3728_v52 = vpop.f32.mrf.mxu2 }
 0x47e   :  { %v3831_v30 = vmax.f32 %v3728_v52, 0.0  ;;  %v3484_v41 = vmax.f32 %v3408_v6, 0.0 }
 0x480   :  { %v3895_v61 = vpack.c.bf16 %v3831_v30, %v3831_v30 }
 0x482   :  { %3960 = vst.msk [vmem:[#allocation2 + $0x98] sm:$0xf] %vm3921_vm12, %v3895_v61 }
 0x485   :  { %v3410_v42 = vpop.f32.mrf.mxu1  ;;  %v3730_v59 = vpop.f32.mrf.mxu2 }
 0x486   :  { %v3485_v10 = vmax.f32 %v3410_v42, 0.0  ;;  %v3832_v3 = vmax.f32 %v3730_v59, 0.0 }
 0x488   :  { %v3520_v26 = vpack.c.bf16 %v3485_v10, %v3484_v41  ;;  %v3896_v24 = vpack.c.bf16 %v3832_v3, %v3832_v3 }
 0x48a   :  { %3961 = vst.msk [vmem:[#allocation2 + $0x9c] sm:$0xf] %vm3921_vm12, %v3896_v24  ;;  %4440 = vmatmul.msk.bf16.gmra.mxu2 %vm524_vm1, %v3520_v26 }
 0x48d   :  { %v3413_v1 = vpop.f32.mrf.mxu1  ;;  %v3733_v27 = vpop.f32.mrf.mxu2 }
 0x48e   :  { %v3833_v36 = vmax.f32 %v3733_v27, 0.0  ;;  %v3486_v5 = vmax.f32 %v3413_v1, 0.0 }
 0x490   :  { %v3897_v45 = vpack.c.bf16 %v3833_v36, %v3833_v36 }
 0x492   :  { %3962 = vst.msk [vmem:[#allocation2 + $0xa0] sm:$0xf] %vm3921_vm12, %v3897_v45 }
 0x495   :  { %v3415_v19 = vpop.f32.mrf.mxu1  ;;  %v3735_v48 = vpop.f32.mrf.mxu2 }
 0x496   :  { %v3487_v40 = vmax.f32 %v3415_v19, 0.0  ;;  %v3834_v25 = vmax.f32 %v3735_v48, 0.0 }
 0x498   :  { %v3521_v57 = vpack.c.bf16 %v3487_v40, %v3486_v5  ;;  %v3898_v15 = vpack.c.bf16 %v3834_v25, %v3834_v25 }
 0x49a   :  { %3963 = vst.msk [vmem:[#allocation2 + $0xa4] sm:$0xf] %vm3921_vm12, %v3898_v15  ;;  %4441 = vmatmul.msk.bf16.gmra.mxu2 %vm524_vm1, %v3521_v57 }
 0x49d   :  { %v3418_v34 = vpop.f32.mrf.mxu1  ;;  %v3738_v8 = vpop.f32.mrf.mxu2 }
 0x49e   :  { %v3835_v56 = vmax.f32 %v3738_v8, 0.0  ;;  %v3488_v0 = vmax.f32 %v3418_v34, 0.0 }
 0x4a0   :  { %v3899_v7 = vpack.c.bf16 %v3835_v56, %v3835_v56 }
 0x4a2   :  { %3964 = vst.msk [vmem:[#allocation2 + $0xa8] sm:$0xf] %vm3921_vm12, %v3899_v7 }
 0x4a5   :  { %v3420_v29 = vpop.f32.mrf.mxu1  ;;  %v3740_v32 = vpop.f32.mrf.mxu2 }
 0x4a6   :  { %v3489_v2 = vmax.f32 %v3420_v29, 0.0  ;;  %v3836_v17 = vmax.f32 %v3740_v32, 0.0 }
 0x4a8   :  { %v3522_v35 = vpack.c.bf16 %v3489_v2, %v3488_v0  ;;  %v3900_v9 = vpack.c.bf16 %v3836_v17, %v3836_v17 }
 0x4aa   :  { %3965 = vst.msk [vmem:[#allocation2 + $0xac] sm:$0xf] %vm3921_vm12, %v3900_v9  ;;  %4442 = vmatmul.msk.bf16.gmra.mxu2 %vm524_vm1, %v3522_v35 }
 0x4ad   :  { %v3743_v16 = vpop.f32.mrf.mxu2 }
 0x4ae   :  { %v3837_v47 = vmax.f32 %v3743_v16, 0.0 }
 0x4b0   :  { %v3901_v46 = vpack.c.bf16 %v3837_v47, %v3837_v47 }
 0x4b2   :  { %3966 = vst.msk [vmem:[#allocation2 + $0xb0] sm:$0xf] %vm3921_vm12, %v3901_v46 }
 0x4b4   :  { %v3423_v20 = vpop.f32.mrf.mxu1 }
 0x4b5   :  { %v3745_v22 = vpop.f32.mrf.mxu2  ;;  %v3490_v33 = vmax.f32 %v3423_v20, 0.0 }
 0x4b6   :  { %v3838_v63 = vmax.f32 %v3745_v22, 0.0 }
 0x4b8   :  { %v3902_v58 = vpack.c.bf16 %v3838_v63, %v3838_v63 }
 0x4ba   :  { %3967 = vst.msk [vmem:[#allocation2 + $0xb4] sm:$0xf] %vm3921_vm12, %v3902_v58 }
 0x4bc   :  { %v3425_v54 = vpop.f32.mrf.mxu1 }
 0x4bd   :  { %v3491_v13 = vmax.f32 %v3425_v54, 0.0  ;;  %v3748_v23 = vpop.f32.mrf.mxu2 }
 0x4be   :  { %v3839_v18 = vmax.f32 %v3748_v23, 0.0 }
 0x4bf   :  { %v3523_v31 = vpack.c.bf16 %v3491_v13, %v3490_v33 }
 0x4c0   :  { %v3903_v44 = vpack.c.bf16 %v3839_v18, %v3839_v18 }
 0x4c1   :  { %4443 = vmatmul.msk.bf16.gmra.mxu2 %vm524_vm1, %v3523_v31 }
 0x4c2   :  { %3968 = vst.msk [vmem:[#allocation2 + $0xb8] sm:$0xf] %vm3921_vm12, %v3903_v44 }
 0x4c5   :  { %v3750_v62 = vpop.f32.mrf.mxu2 }
 0x4c6   :  { %v3840_v53 = vmax.f32 %v3750_v62, 0.0 }
 0x4c8   :  { %v3904_v11 = vpack.c.bf16 %v3840_v53, %v3840_v53 }
 0x4ca   :  { %3969 = vst.msk [vmem:[#allocation2 + $0xbc] sm:$0xf] %vm3921_vm12, %v3904_v11 }
 0x4cd   :  { %v3753_v49 = vpop.f32.mrf.mxu2 }
 0x4ce   :  { %v3841_v14 = vmax.f32 %v3753_v49, 0.0 }
 0x4d0   :  { %v3905_v28 = vpack.c.bf16 %v3841_v14, %v3841_v14 }
 0x4d2   :  { %3970 = vst.msk [vmem:[#allocation2 + $0xc0] sm:$0xf] %vm3921_vm12, %v3905_v28 }
 0x4d5   :  { %v3755_v38 = vpop.f32.mrf.mxu2 }
 0x4d6   :  { %v3842_v51 = vmax.f32 %v3755_v38, 0.0 }
 0x4d8   :  { %v3906_v37 = vpack.c.bf16 %v3842_v51, %v3842_v51 }
 0x4da   :  { %3971 = vst.msk [vmem:[#allocation2 + $0xc4] sm:$0xf] %vm3921_vm12, %v3906_v37 }
 0x4dd   :  { %v3758_v55 = vpop.f32.mrf.mxu2 }
 0x4de   :  { %v3843_v60 = vmax.f32 %v3758_v55, 0.0 }
 0x4e0   :  { %v3907_v4 = vpack.c.bf16 %v3843_v60, %v3843_v60 }
 0x4e2   :  { %3972 = vst.msk [vmem:[#allocation2 + $0xc8] sm:$0xf] %vm3921_vm12, %v3907_v4 }
 0x4e5   :  { %v3760_v43 = vpop.f32.mrf.mxu2 }
 0x4e6   :  { %v3844_v39 = vmax.f32 %v3760_v43, 0.0 }
 0x4e8   :  { %v3908_v50 = vpack.c.bf16 %v3844_v39, %v3844_v39 }
 0x4ea   :  { %3973 = vst.msk [vmem:[#allocation2 + $0xcc] sm:$0xf] %vm3921_vm12, %v3908_v50 }
 0x4ed   :  { %v3763_v12 = vpop.f32.mrf.mxu2 }
 0x4ee   :  { %v3845_v21 = vmax.f32 %v3763_v12, 0.0 }
 0x4f0   :  { %v3909_v6 = vpack.c.bf16 %v3845_v21, %v3845_v21 }
 0x4f2   :  { %3974 = vst.msk [vmem:[#allocation2 + $0xd0] sm:$0xf] %vm3921_vm12, %v3909_v6 }
 0x4f5   :  { %v3765_v52 = vpop.f32.mrf.mxu2 }
 0x4f6   :  { %v3846_v30 = vmax.f32 %v3765_v52, 0.0 }
 0x4f8   :  { %v3910_v61 = vpack.c.bf16 %v3846_v30, %v3846_v30 }
 0x4fa   :  { %3975 = vst.msk [vmem:[#allocation2 + $0xd4] sm:$0xf] %vm3921_vm12, %v3910_v61 }
 0x4fd   :  { %v3768_v42 = vpop.f32.mrf.mxu2 }
 0x4fe   :  { %v3847_v59 = vmax.f32 %v3768_v42, 0.0 }
 0x500   :  { %v3911_v41 = vpack.c.bf16 %v3847_v59, %v3847_v59 }
 0x502   :  { %3976 = vst.msk [vmem:[#allocation2 + $0xd8] sm:$0xf] %vm3921_vm12, %v3911_v41 }
 0x505   :  { %v3770_v10 = vpop.f32.mrf.mxu2 }
 0x506   :  { %v3848_v3 = vmax.f32 %v3770_v10, 0.0 }
 0x508   :  { %v3912_v26 = vpack.c.bf16 %v3848_v3, %v3848_v3 }
 0x50a   :  { %3977 = vst.msk [vmem:[#allocation2 + $0xdc] sm:$0xf] %vm3921_vm12, %v3912_v26 }
 0x50d   :  { %v3773_v24 = vpop.f32.mrf.mxu2 }
 0x50e   :  { %v3849_v1 = vmax.f32 %v3773_v24, 0.0 }
 0x510   :  { %v3913_v27 = vpack.c.bf16 %v3849_v1, %v3849_v1 }
 0x512   :  { %3978 = vst.msk [vmem:[#allocation2 + $0xe0] sm:$0xf] %vm3921_vm12, %v3913_v27 }
 0x515   :  { %v3775_v36 = vpop.f32.mrf.mxu2 }
 0x516   :  { %v3850_v45 = vmax.f32 %v3775_v36, 0.0 }
 0x518   :  { %v3914_v19 = vpack.c.bf16 %v3850_v45, %v3850_v45 }
 0x51a   :  { %3979 = vst.msk [vmem:[#allocation2 + $0xe4] sm:$0xf] %vm3921_vm12, %v3914_v19 }
 0x51d   :  { %v3778_v48 = vpop.f32.mrf.mxu2 }
 0x51e   :  { %v3851_v5 = vmax.f32 %v3778_v48, 0.0 }
 0x520   :  { %v3915_v40 = vpack.c.bf16 %v3851_v5, %v3851_v5 }
 0x522   :  { %3980 = vst.msk [vmem:[#allocation2 + $0xe8] sm:$0xf] %vm3921_vm12, %v3915_v40 }
 0x525   :  { %v3780_v25 = vpop.f32.mrf.mxu2 }
 0x526   :  { %v3852_v57 = vmax.f32 %v3780_v25, 0.0 }
 0x528   :  { %v3916_v15 = vpack.c.bf16 %v3852_v57, %v3852_v57 }
 0x52a   :  { %3981 = vst.msk [vmem:[#allocation2 + $0xec] sm:$0xf] %vm3921_vm12, %v3916_v15 }
 0x52d   :  { %v3783_v34 = vpop.f32.mrf.mxu2 }
 0x52e   :  { %v3853_v8 = vmax.f32 %v3783_v34, 0.0 }
 0x530   :  { %v3917_v56 = vpack.c.bf16 %v3853_v8, %v3853_v8 }
 0x532   :  { %3982 = vst.msk [vmem:[#allocation2 + $0xf0] sm:$0xf] %vm3921_vm12, %v3917_v56 }
 0x535   :  { %v3785_v7 = vpop.f32.mrf.mxu2 }
 0x536   :  { %v3854_v29 = vmax.f32 %v3785_v7, 0.0 }
 0x538   :  { %v3918_v32 = vpack.c.bf16 %v3854_v29, %v3854_v29 }
 0x53a   :  { %3983 = vst.msk [vmem:[#allocation2 + $0xf4] sm:$0xf] %vm3921_vm12, %v3918_v32 }
 0x544   :  { %v3788_v0 = vpop.f32.mrf.mxu2 }
 0x545   :  { %v3855_v2 = vmax.f32 %v3788_v0, 0.0 }
 0x547   :  { %v3919_v17 = vpack.c.bf16 %v3855_v2, %v3855_v2 }
 0x549   :  { %3984 = vst.msk [vmem:[#allocation2 + $0xf8] sm:$0xf] %vm3921_vm12, %v3919_v17 }
 0x54c   :  { %v3790_v35 = vpop.f32.mrf.mxu2 }
 0x54d   :  { %v3856_v9 = vmax.f32 %v3790_v35, 0.0 }
 0x54f   :  { %v3920_v16 = vpack.c.bf16 %v3856_v9, %v3856_v9 }
 0x551   :  { %3985 = vst.msk [vmem:[#allocation2 + $0xfc] sm:$0xf] %vm3921_vm12, %v3920_v16 }
 0x552   :  { %3998 = dma.vmem_to_hbm [thread:$0]  %s3991_s5, 4096, %s3993_s12, [#allocation3], %s4564_s19, %s4564_s19, %s4567_s13  }
 0x553   :  { %4556 = dma.done.wait [#allocation3], 4096  }
 0x554   :  { %4557 = vsyncadd [#allocation3], 4294963200 }
 0x555   :  { %4003 = vsyncpa [#allocation3], 1 }

</bundles_post_ra>
